<compile_context>
chip_gen: v7x
topology: tpu7x:2x2x1
jax: 0.10.0
libtpu: 0.0.40
codegen_flags: <defaults>
</compile_context>

<pallas_src>
import functools
import math

import jax
import jax.numpy as jnp
from jax.experimental import pallas as pl
from jax.experimental.pallas import tpu as pltpu


# ----------------------------- Pallas kernel -----------------------------

def _make_encoder_kernel(metas):
    """metas: per-layer (Hin, Win, Cin, Ho, Wo, Cout). Conv is 3x3, stride 2, pad 1."""
    n_layers = len(metas)

    def kernel(*refs):
        x_ref = refs[0]
        layer_refs = [refs[1 + 3 * l: 4 + 3 * l] for l in range(n_layers)]
        out_ref = refs[1 + 3 * n_layers]
        scratch_refs = refs[2 + 3 * n_layers:]

        # Row reader for the current layer's (zero-padded) input.
        read_row = lambda r: x_ref[0, r]                       # (Win+2, Cin)

        for l, (hin, win, cin, ho, wo, cout) in enumerate(metas):
            s_ref, w_ref, b_ref = layer_refs[l]
            sel = s_ref[...]                                   # (3*wo, win+2) bf16 0/1
            wts = w_ref[...]                                   # (9, cin, cout) bf16
            bias = b_ref[...]                                  # (1, cout) f32
            last = l == n_layers - 1

            if not last:
                scr = scratch_refs[l]                          # (ho+2, wo+2, cout) f32
                scr[...] = jnp.zeros(scr.shape, scr.dtype)     # zero padding border

            for i in range(ho):                                # static loop, small Ho
                acc = jnp.zeros((wo, cout), jnp.float32)
                for kh in range(3):
                    row = read_row(2 * i + kh).astype(jnp.bfloat16)   # (win+2, cin)
                    # Gather the three stride-2 shifted taps with one constant matmul.
                    taps = jnp.dot(sel, row, preferred_element_type=jnp.float32)
                    taps = taps.astype(jnp.bfloat16)                  # (3*wo, cin)
                    for kw in range(3):
                        acc = acc + jnp.dot(
                            taps[kw * wo:(kw + 1) * wo, :],
                            wts[3 * kh + kw],
                            preferred_element_type=jnp.float32)
                acc = jnp.maximum(acc + bias, 0.0)             # bias + ReLU in f32
                if last:
                    out_ref[0, i] = acc.astype(out_ref.dtype)
                else:
                    scr[i + 1, 1:wo + 1, :] = acc              # write interior, keep border 0

            if not last:
                read_row = (lambda r, _s=scratch_refs[l]: _s[r])

    return kernel


# ------------------------------ glue (JAX) -------------------------------

def _layer_metas(H, W, Cin, layers_channels):
    metas = []
    h, w, c = H, W, Cin
    for cout in layers_channels:
        ho = (h + 2 - 3) // 2 + 1
        wo = (w + 2 - 3) // 2 + 1
        metas.append((h, w, c, ho, wo, cout))
        h, w, c = ho, wo, cout
    return metas


def _selection_matrix(wp, wo, dtype):
    """S[kw*wo + j, s] = 1 iff s == 2*j + kw  (stride-2 column taps)."""
    j = jnp.arange(wo)[:, None]
    s = jnp.arange(wp)[None, :]
    blocks = [(s == 2 * j + kw).astype(dtype) for kw in range(3)]
    return jnp.concatenate(blocks, axis=0)                     # (3*wo, wp)


def _maxpool_fallback(x_nchw, params, add_flatten):
    # TODO(synk): useMaxPool=True path (stride-1 conv + MaxPool2d(2,2)) is plain JAX, not Pallas.
    y = x_nchw.astype(jnp.float32)
    for w, b in params:
        y = jax.lax.conv_general_dilated(
            y, w, (1, 1), ((1, 1), (1, 1)),
            dimension_numbers=("NCHW", "OIHW", "NCHW"))
        y = jnp.maximum(y + b.reshape(1, -1, 1, 1), 0.0)
        y = jax.lax.reduce_window(y, -jnp.inf, jax.lax.max,
                                  (1, 1, 2, 2), (1, 1, 2, 2), "VALID")
    if add_flatten:
        y = y.reshape(y.shape[0], -1)
    return y


def image_encoder_forward(x_nchw, params, use_max_pool=False, add_flatten=True):
    """Replicates ImageEncoder.forward. params: list of (weight OIHW, bias)."""
    if use_max_pool:
        return _maxpool_fallback(x_nchw, params, add_flatten)

    x = jnp.transpose(x_nchw, (0, 2, 3, 1)).astype(jnp.float32)      # NHWC
    N, H, W, Cin = x.shape
    metas = _layer_metas(H, W, Cin, [w.shape[0] for w, _ in params])

    xp = jnp.pad(x, ((0, 0), (1, 1), (1, 1), (0, 0))).astype(jnp.bfloat16)

    inputs = [xp]
    in_specs = [pl.BlockSpec((1, H + 2, W + 2, Cin), lambda n: (n, 0, 0, 0))]
    for (hin, win, cin, ho, wo, cout), (wgt, bias) in zip(metas, params):
        sel = _selection_matrix(win + 2, wo, jnp.bfloat16)           # (3*wo, win+2)
        wts = jnp.transpose(wgt, (2, 3, 1, 0)).reshape(9, cin, cout).astype(jnp.bfloat16)
        b2d = bias.reshape(1, cout).astype(jnp.float32)
        inputs += [sel, wts, b2d]
        in_specs += [
            pl.BlockSpec((3 * wo, win + 2), lambda n: (0, 0)),
            pl.BlockSpec((9, cin, cout), lambda n: (0, 0, 0)),
            pl.BlockSpec((1, cout), lambda n: (0, 0)),
        ]

    HoL, WoL, CoutL = metas[-1][3], metas[-1][4], metas[-1][5]
    scratch_shapes = [pltpu.VMEM((m[3] + 2, m[4] + 2, m[5]), jnp.float32)
                      for m in metas[:-1]]

    out_nhwc = pl.pallas_call(
        _make_encoder_kernel(metas),
        out_shape=jax.ShapeDtypeStruct((N, HoL, WoL, CoutL), jnp.float32),
        grid=(N,),
        in_specs=in_specs,
        out_specs=pl.BlockSpec((1, HoL, WoL, CoutL), lambda n: (n, 0, 0, 0)),
        scratch_shapes=scratch_shapes,
        compiler_params=pltpu.CompilerParams(dimension_semantics=("parallel",)),
    )(*inputs)

    out = jnp.transpose(out_nhwc, (0, 3, 1, 2))                      # back to NCHW
    if add_flatten:
        out = out.reshape(N, -1)
    return out


def init_params(key, input_channels, layers_channels):
    """Deterministic Conv2d params: weight (Cout, Cin, 3, 3), bias (Cout,)."""
    params = []
    pr_ch = input_channels
    for cout in layers_channels:
        key, kw_, kb_ = jax.random.split(key, 3)
        fan_in = pr_ch * 3 * 3
        bound = 1.0 / math.sqrt(fan_in)
        w = jax.random.uniform(kw_, (cout, pr_ch, 3, 3), jnp.float32, -bound, bound)
        b = jax.random.uniform(kb_, (cout,), jnp.float32, -bound, bound)
        params.append((w, b))
        pr_ch = cout
    return params


def reference_forward(x_nchw, params, add_flatten=True):
    """Pure-JAX reference mirroring nn.Conv2d(3, stride=2, pad=1) + ReLU stack."""
    y = x_nchw.astype(jnp.float32)
    for w, b in params:
        y = jax.lax.conv_general_dilated(
            y, w, window_strides=(2, 2), padding=((1, 1), (1, 1)),
            dimension_numbers=("NCHW", "OIHW", "NCHW"),
            precision=jax.lax.Precision.HIGHEST)
        y = jnp.maximum(y + b.reshape(1, -1, 1, 1), 0.0)
    if add_flatten:
        y = y.reshape(y.shape[0], -1)
    return y


# --------------------------------- main ----------------------------------

if __name__ == "__main__":
    key = jax.random.PRNGKey(0)
    k_x, k_p = jax.random.split(key)

    # ImageEncoder(input_channels=4, layers_channels=[8, 16], prefix="enc",
    #              useMaxPool=False, addFlatten=True)
    input_channels = 4
    layers_channels = [8, 16]
    x = jax.random.normal(k_x, (2, input_channels, 16, 16), jnp.float32)  # NCHW

    params = init_params(k_p, input_channels, layers_channels)

    fwd = jax.jit(functools.partial(image_encoder_forward,
                                    use_max_pool=False, add_flatten=True))
    out = jax.block_until_ready(fwd(x, params))

    ref = jax.block_until_ready(reference_forward(x, params, add_flatten=True))
    assert out.shape == ref.shape == (2, 16 * 4 * 4), out.shape
    max_err = float(jnp.abs(out - ref).max())
    assert jnp.allclose(out, ref, atol=2e-2, rtol=2e-2), max_err  # bf16 MXU operands

    print("KERNEL_OK")
</pallas_src>

<mosaic_0001>
module attributes {stable_mosaic.version = 11 : i64} {
  func.func @kernel(%arg0: i32, %arg1: memref<1x18x18x4xbf16, #tpu.memory_space<vmem>>, %arg2: memref<24x18xbf16, #tpu.memory_space<vmem>>, %arg3: memref<9x4x8xbf16, #tpu.memory_space<vmem>>, %arg4: memref<1x8xf32, #tpu.memory_space<vmem>>, %arg5: memref<12x10xbf16, #tpu.memory_space<vmem>>, %arg6: memref<9x8x16xbf16, #tpu.memory_space<vmem>>, %arg7: memref<1x16xf32, #tpu.memory_space<vmem>>, %arg8: memref<1x4x4x16xf32, #tpu.memory_space<vmem>>, %arg9: memref<10x10x8xf32, #tpu.memory_space<vmem>>) attributes {dimension_semantics = [#tpu.dimension_semantics<parallel>], iteration_bounds = array<i64: 2>, scalar_prefetch = 0 : i64, scratch_operands = 1 : i64, tpu.core_type = #tpu.core_type<tc>, window_params = [{transform_indices = @transform_0, window_bounds = array<i64: 1, 18, 18, 4>}, {pipeline_mode = #tpu.pipeline_mode<synchronous>, transform_indices = @transform_1, window_bounds = array<i64: 24, 18>}, {pipeline_mode = #tpu.pipeline_mode<synchronous>, transform_indices = @transform_2, window_bounds = array<i64: 9, 4, 8>}, {pipeline_mode = #tpu.pipeline_mode<synchronous>, transform_indices = @transform_3, window_bounds = array<i64: 1, 8>}, {pipeline_mode = #tpu.pipeline_mode<synchronous>, transform_indices = @transform_4, window_bounds = array<i64: 12, 10>}, {pipeline_mode = #tpu.pipeline_mode<synchronous>, transform_indices = @transform_5, window_bounds = array<i64: 9, 8, 16>}, {pipeline_mode = #tpu.pipeline_mode<synchronous>, transform_indices = @transform_6, window_bounds = array<i64: 1, 16>}, {transform_indices = @transform_7, window_bounds = array<i64: 1, 4, 4, 16>}]} {
    %c0 = arith.constant 0 : index
    %c0_0 = arith.constant 0 : index
    %0 = vector.load %arg2[%c0, %c0_0] : memref<24x18xbf16, #tpu.memory_space<vmem>>, vector<24x18xbf16>
    %c0_1 = arith.constant 0 : index
    %c0_2 = arith.constant 0 : index
    %c0_3 = arith.constant 0 : index
    %1 = vector.load %arg3[%c0_1, %c0_2, %c0_3] : memref<9x4x8xbf16, #tpu.memory_space<vmem>>, vector<9x4x8xbf16>
    %c0_4 = arith.constant 0 : index
    %c0_5 = arith.constant 0 : index
    %2 = vector.load %arg4[%c0_4, %c0_5] : memref<1x8xf32, #tpu.memory_space<vmem>>, vector<1x8xf32>
    %cst = arith.constant 0.000000e+00 : f32
    %3 = vector.broadcast %cst : f32 to vector<10x10x8xf32>
    %c0_6 = arith.constant 0 : index
    %c0_7 = arith.constant 0 : index
    %c0_8 = arith.constant 0 : index
    %4 = vector.load %arg9[%c0_6, %c0_7, %c0_8] : memref<10x10x8xf32, #tpu.memory_space<vmem>>, vector<10x10x8xf32>
    tpu.vector_store %arg9[%c0_6, %c0_7, %c0_8], %3 {strides = array<i32>} : memref<10x10x8xf32, #tpu.memory_space<vmem>>, vector<10x10x8xf32>,
    %cst_9 = arith.constant 0.000000e+00 : f32
    %5 = vector.broadcast %cst_9 : f32 to vector<8x8xf32>
    %c0_10 = arith.constant 0 : index
    %c0_11 = arith.constant 0 : index
    %c0_12 = arith.constant 0 : index
    %c0_13 = arith.constant 0 : index
    %6 = vector.load %arg1[%c0_10, %c0_11, %c0_12, %c0_13] : memref<1x18x18x4xbf16, #tpu.memory_space<vmem>>, vector<1x1x18x4xbf16>
    %7 = vector.shape_cast %6 : vector<1x1x18x4xbf16> to vector<18x4xbf16>
    %cst_14 = arith.constant dense<0.000000e+00> : vector<24x4xf32>
    %8 = tpu.matmul %0, %7, %cst_14 {dimension_numbers = #tpu.dot_dimension_numbers<[1], [0], [0], [1], [0, 0, 1, 1], [], []>} : vector<24x18xbf16>, vector<18x4xbf16>, vector<24x4xf32> -> vector<24x4xf32>
    %9 = arith.truncf %8 : vector<24x4xf32> to vector<24x4xbf16>
    %10 = vector.extract_strided_slice %9 {offsets = [0, 0], sizes = [8, 4], strides = [1, 1]} : vector<24x4xbf16> to vector<8x4xbf16>
    %11 = vector.extract_strided_slice %1 {offsets = [0, 0, 0], sizes = [1, 4, 8], strides = [1, 1, 1]} : vector<9x4x8xbf16> to vector<1x4x8xbf16>
    %12 = vector.shape_cast %11 : vector<1x4x8xbf16> to vector<4x8xbf16>
    %cst_15 = arith.constant dense<0.000000e+00> : vector<8x8xf32>
    %13 = tpu.matmul %10, %12, %cst_15 {dimension_numbers = #tpu.dot_dimension_numbers<[1], [0], [0], [1], [0, 0, 1, 1], [], []>} : vector<8x4xbf16>, vector<4x8xbf16>, vector<8x8xf32> -> vector<8x8xf32>
    %14 = arith.addf %5, %13 : vector<8x8xf32>
    %15 = vector.extract_strided_slice %9 {offsets = [8, 0], sizes = [8, 4], strides = [1, 1]} : vector<24x4xbf16> to vector<8x4xbf16>
    %16 = vector.extract_strided_slice %1 {offsets = [1, 0, 0], sizes = [1, 4, 8], strides = [1, 1, 1]} : vector<9x4x8xbf16> to vector<1x4x8xbf16>
    %17 = vector.shape_cast %16 : vector<1x4x8xbf16> to vector<4x8xbf16>
    %cst_16 = arith.constant dense<0.000000e+00> : vector<8x8xf32>
    %18 = tpu.matmul %15, %17, %cst_16 {dimension_numbers = #tpu.dot_dimension_numbers<[1], [0], [0], [1], [0, 0, 1, 1], [], []>} : vector<8x4xbf16>, vector<4x8xbf16>, vector<8x8xf32> -> vector<8x8xf32>
    %19 = arith.addf %14, %18 : vector<8x8xf32>
    %20 = vector.extract_strided_slice %9 {offsets = [16, 0], sizes = [8, 4], strides = [1, 1]} : vector<24x4xbf16> to vector<8x4xbf16>
    %21 = vector.extract_strided_slice %1 {offsets = [2, 0, 0], sizes = [1, 4, 8], strides = [1, 1, 1]} : vector<9x4x8xbf16> to vector<1x4x8xbf16>
    %22 = vector.shape_cast %21 : vector<1x4x8xbf16> to vector<4x8xbf16>
    %cst_17 = arith.constant dense<0.000000e+00> : vector<8x8xf32>
    %23 = tpu.matmul %20, %22, %cst_17 {dimension_numbers = #tpu.dot_dimension_numbers<[1], [0], [0], [1], [0, 0, 1, 1], [], []>} : vector<8x4xbf16>, vector<4x8xbf16>, vector<8x8xf32> -> vector<8x8xf32>
    %24 = arith.addf %19, %23 : vector<8x8xf32>
    %c0_18 = arith.constant 0 : index
    %c1 = arith.constant 1 : index
    %c0_19 = arith.constant 0 : index
    %c0_20 = arith.constant 0 : index
    %25 = vector.load %arg1[%c0_18, %c1, %c0_19, %c0_20] : memref<1x18x18x4xbf16, #tpu.memory_space<vmem>>, vector<1x1x18x4xbf16>
    %26 = vector.shape_cast %25 : vector<1x1x18x4xbf16> to vector<18x4xbf16>
    %cst_21 = arith.constant dense<0.000000e+00> : vector<24x4xf32>
    %27 = tpu.matmul %0, %26, %cst_21 {dimension_numbers = #tpu.dot_dimension_numbers<[1], [0], [0], [1], [0, 0, 1, 1], [], []>} : vector<24x18xbf16>, vector<18x4xbf16>, vector<24x4xf32> -> vector<24x4xf32>
    %28 = arith.truncf %27 : vector<24x4xf32> to vector<24x4xbf16>
    %29 = vector.extract_strided_slice %28 {offsets = [0, 0], sizes = [8, 4], strides = [1, 1]} : vector<24x4xbf16> to vector<8x4xbf16>
    %30 = vector.extract_strided_slice %1 {offsets = [3, 0, 0], sizes = [1, 4, 8], strides = [1, 1, 1]} : vector<9x4x8xbf16> to vector<1x4x8xbf16>
    %31 = vector.shape_cast %30 : vector<1x4x8xbf16> to vector<4x8xbf16>
    %cst_22 = arith.constant dense<0.000000e+00> : vector<8x8xf32>
    %32 = tpu.matmul %29, %31, %cst_22 {dimension_numbers = #tpu.dot_dimension_numbers<[1], [0], [0], [1], [0, 0, 1, 1], [], []>} : vector<8x4xbf16>, vector<4x8xbf16>, vector<8x8xf32> -> vector<8x8xf32>
    %33 = arith.addf %24, %32 : vector<8x8xf32>
    %34 = vector.extract_strided_slice %28 {offsets = [8, 0], sizes = [8, 4], strides = [1, 1]} : vector<24x4xbf16> to vector<8x4xbf16>
    %35 = vector.extract_strided_slice %1 {offsets = [4, 0, 0], sizes = [1, 4, 8], strides = [1, 1, 1]} : vector<9x4x8xbf16> to vector<1x4x8xbf16>
    %36 = vector.shape_cast %35 : vector<1x4x8xbf16> to vector<4x8xbf16>
    %cst_23 = arith.constant dense<0.000000e+00> : vector<8x8xf32>
    %37 = tpu.matmul %34, %36, %cst_23 {dimension_numbers = #tpu.dot_dimension_numbers<[1], [0], [0], [1], [0, 0, 1, 1], [], []>} : vector<8x4xbf16>, vector<4x8xbf16>, vector<8x8xf32> -> vector<8x8xf32>
    %38 = arith.addf %33, %37 : vector<8x8xf32>
    %39 = vector.extract_strided_slice %28 {offsets = [16, 0], sizes = [8, 4], strides = [1, 1]} : vector<24x4xbf16> to vector<8x4xbf16>
    %40 = vector.extract_strided_slice %1 {offsets = [5, 0, 0], sizes = [1, 4, 8], strides = [1, 1, 1]} : vector<9x4x8xbf16> to vector<1x4x8xbf16>
    %41 = vector.shape_cast %40 : vector<1x4x8xbf16> to vector<4x8xbf16>
    %cst_24 = arith.constant dense<0.000000e+00> : vector<8x8xf32>
    %42 = tpu.matmul %39, %41, %cst_24 {dimension_numbers = #tpu.dot_dimension_numbers<[1], [0], [0], [1], [0, 0, 1, 1], [], []>} : vector<8x4xbf16>, vector<4x8xbf16>, vector<8x8xf32> -> vector<8x8xf32>
    %43 = arith.addf %38, %42 : vector<8x8xf32>
    %c0_25 = arith.constant 0 : index
    %c2 = arith.constant 2 : index
    %c0_26 = arith.constant 0 : index
    %c0_27 = arith.constant 0 : index
    %44 = vector.load %arg1[%c0_25, %c2, %c0_26, %c0_27] : memref<1x18x18x4xbf16, #tpu.memory_space<vmem>>, vector<1x1x18x4xbf16>
    %45 = vector.shape_cast %44 : vector<1x1x18x4xbf16> to vector<18x4xbf16>
    %cst_28 = arith.constant dense<0.000000e+00> : vector<24x4xf32>
    %46 = tpu.matmul %0, %45, %cst_28 {dimension_numbers = #tpu.dot_dimension_numbers<[1], [0], [0], [1], [0, 0, 1, 1], [], []>} : vector<24x18xbf16>, vector<18x4xbf16>, vector<24x4xf32> -> vector<24x4xf32>
    %47 = arith.truncf %46 : vector<24x4xf32> to vector<24x4xbf16>
    %48 = vector.extract_strided_slice %47 {offsets = [0, 0], sizes = [8, 4], strides = [1, 1]} : vector<24x4xbf16> to vector<8x4xbf16>
    %49 = vector.extract_strided_slice %1 {offsets = [6, 0, 0], sizes = [1, 4, 8], strides = [1, 1, 1]} : vector<9x4x8xbf16> to vector<1x4x8xbf16>
    %50 = vector.shape_cast %49 : vector<1x4x8xbf16> to vector<4x8xbf16>
    %cst_29 = arith.constant dense<0.000000e+00> : vector<8x8xf32>
    %51 = tpu.matmul %48, %50, %cst_29 {dimension_numbers = #tpu.dot_dimension_numbers<[1], [0], [0], [1], [0, 0, 1, 1], [], []>} : vector<8x4xbf16>, vector<4x8xbf16>, vector<8x8xf32> -> vector<8x8xf32>
    %52 = arith.addf %43, %51 : vector<8x8xf32>
    %53 = vector.extract_strided_slice %47 {offsets = [8, 0], sizes = [8, 4], strides = [1, 1]} : vector<24x4xbf16> to vector<8x4xbf16>
    %54 = vector.extract_strided_slice %1 {offsets = [7, 0, 0], sizes = [1, 4, 8], strides = [1, 1, 1]} : vector<9x4x8xbf16> to vector<1x4x8xbf16>
    %55 = vector.shape_cast %54 : vector<1x4x8xbf16> to vector<4x8xbf16>
    %cst_30 = arith.constant dense<0.000000e+00> : vector<8x8xf32>
    %56 = tpu.matmul %53, %55, %cst_30 {dimension_numbers = #tpu.dot_dimension_numbers<[1], [0], [0], [1], [0, 0, 1, 1], [], []>} : vector<8x4xbf16>, vector<4x8xbf16>, vector<8x8xf32> -> vector<8x8xf32>
    %57 = arith.addf %52, %56 : vector<8x8xf32>
    %58 = vector.extract_strided_slice %47 {offsets = [16, 0], sizes = [8, 4], strides = [1, 1]} : vector<24x4xbf16> to vector<8x4xbf16>
    %59 = vector.extract_strided_slice %1 {offsets = [8, 0, 0], sizes = [1, 4, 8], strides = [1, 1, 1]} : vector<9x4x8xbf16> to vector<1x4x8xbf16>
    %60 = vector.shape_cast %59 : vector<1x4x8xbf16> to vector<4x8xbf16>
    %cst_31 = arith.constant dense<0.000000e+00> : vector<8x8xf32>
    %61 = tpu.matmul %58, %60, %cst_31 {dimension_numbers = #tpu.dot_dimension_numbers<[1], [0], [0], [1], [0, 0, 1, 1], [], []>} : vector<8x4xbf16>, vector<4x8xbf16>, vector<8x8xf32> -> vector<8x8xf32>
    %62 = arith.addf %57, %61 : vector<8x8xf32>
    %63 = vector.broadcast %2 : vector<1x8xf32> to vector<8x8xf32>
    %64 = arith.addf %62, %63 : vector<8x8xf32>
    %cst_32 = arith.constant 0.000000e+00 : f32
    %65 = vector.broadcast %cst_32 : f32 to vector<8x8xf32>
    %66 = arith.maximumf %64, %65 : vector<8x8xf32>
    %c1_33 = arith.constant 1 : index
    %c1_34 = arith.constant 1 : index
    %c0_35 = arith.constant 0 : index
    %67 = vector.load %arg9[%c1_33, %c1_34, %c0_35] : memref<10x10x8xf32, #tpu.memory_space<vmem>>, vector<1x8x8xf32>
    %68 = vector.shape_cast %67 : vector<1x8x8xf32> to vector<8x8xf32>
    %69 = vector.shape_cast %66 : vector<8x8xf32> to vector<1x8x8xf32>
    tpu.vector_store %arg9[%c1_33, %c1_34, %c0_35], %69 {strides = array<i32>} : memref<10x10x8xf32, #tpu.memory_space<vmem>>, vector<1x8x8xf32>,
    %cst_36 = arith.constant 0.000000e+00 : f32
    %70 = vector.broadcast %cst_36 : f32 to vector<8x8xf32>
    %c0_37 = arith.constant 0 : index
    %c2_38 = arith.constant 2 : index
    %c0_39 = arith.constant 0 : index
    %c0_40 = arith.constant 0 : index
    %71 = vector.load %arg1[%c0_37, %c2_38, %c0_39, %c0_40] : memref<1x18x18x4xbf16, #tpu.memory_space<vmem>>, vector<1x1x18x4xbf16>
    %72 = vector.shape_cast %71 : vector<1x1x18x4xbf16> to vector<18x4xbf16>
    %cst_41 = arith.constant dense<0.000000e+00> : vector<24x4xf32>
    %73 = tpu.matmul %0, %72, %cst_41 {dimension_numbers = #tpu.dot_dimension_numbers<[1], [0], [0], [1], [0, 0, 1, 1], [], []>} : vector<24x18xbf16>, vector<18x4xbf16>, vector<24x4xf32> -> vector<24x4xf32>
    %74 = arith.truncf %73 : vector<24x4xf32> to vector<24x4xbf16>
    %75 = vector.extract_strided_slice %74 {offsets = [0, 0], sizes = [8, 4], strides = [1, 1]} : vector<24x4xbf16> to vector<8x4xbf16>
    %76 = vector.extract_strided_slice %1 {offsets = [0, 0, 0], sizes = [1, 4, 8], strides = [1, 1, 1]} : vector<9x4x8xbf16> to vector<1x4x8xbf16>
    %77 = vector.shape_cast %76 : vector<1x4x8xbf16> to vector<4x8xbf16>
    %cst_42 = arith.constant dense<0.000000e+00> : vector<8x8xf32>
    %78 = tpu.matmul %75, %77, %cst_42 {dimension_numbers = #tpu.dot_dimension_numbers<[1], [0], [0], [1], [0, 0, 1, 1], [], []>} : vector<8x4xbf16>, vector<4x8xbf16>, vector<8x8xf32> -> vector<8x8xf32>
    %79 = arith.addf %70, %78 : vector<8x8xf32>
    %80 = vector.extract_strided_slice %74 {offsets = [8, 0], sizes = [8, 4], strides = [1, 1]} : vector<24x4xbf16> to vector<8x4xbf16>
    %81 = vector.extract_strided_slice %1 {offsets = [1, 0, 0], sizes = [1, 4, 8], strides = [1, 1, 1]} : vector<9x4x8xbf16> to vector<1x4x8xbf16>
    %82 = vector.shape_cast %81 : vector<1x4x8xbf16> to vector<4x8xbf16>
    %cst_43 = arith.constant dense<0.000000e+00> : vector<8x8xf32>
    %83 = tpu.matmul %80, %82, %cst_43 {dimension_numbers = #tpu.dot_dimension_numbers<[1], [0], [0], [1], [0, 0, 1, 1], [], []>} : vector<8x4xbf16>, vector<4x8xbf16>, vector<8x8xf32> -> vector<8x8xf32>
    %84 = arith.addf %79, %83 : vector<8x8xf32>
    %85 = vector.extract_strided_slice %74 {offsets = [16, 0], sizes = [8, 4], strides = [1, 1]} : vector<24x4xbf16> to vector<8x4xbf16>
    %86 = vector.extract_strided_slice %1 {offsets = [2, 0, 0], sizes = [1, 4, 8], strides = [1, 1, 1]} : vector<9x4x8xbf16> to vector<1x4x8xbf16>
    %87 = vector.shape_cast %86 : vector<1x4x8xbf16> to vector<4x8xbf16>
    %cst_44 = arith.constant dense<0.000000e+00> : vector<8x8xf32>
    %88 = tpu.matmul %85, %87, %cst_44 {dimension_numbers = #tpu.dot_dimension_numbers<[1], [0], [0], [1], [0, 0, 1, 1], [], []>} : vector<8x4xbf16>, vector<4x8xbf16>, vector<8x8xf32> -> vector<8x8xf32>
    %89 = arith.addf %84, %88 : vector<8x8xf32>
    %c0_45 = arith.constant 0 : index
    %c3 = arith.constant 3 : index
    %c0_46 = arith.constant 0 : index
    %c0_47 = arith.constant 0 : index
    %90 = vector.load %arg1[%c0_45, %c3, %c0_46, %c0_47] : memref<1x18x18x4xbf16, #tpu.memory_space<vmem>>, vector<1x1x18x4xbf16>
    %91 = vector.shape_cast %90 : vector<1x1x18x4xbf16> to vector<18x4xbf16>
    %cst_48 = arith.constant dense<0.000000e+00> : vector<24x4xf32>
    %92 = tpu.matmul %0, %91, %cst_48 {dimension_numbers = #tpu.dot_dimension_numbers<[1], [0], [0], [1], [0, 0, 1, 1], [], []>} : vector<24x18xbf16>, vector<18x4xbf16>, vector<24x4xf32> -> vector<24x4xf32>
    %93 = arith.truncf %92 : vector<24x4xf32> to vector<24x4xbf16>
    %94 = vector.extract_strided_slice %93 {offsets = [0, 0], sizes = [8, 4], strides = [1, 1]} : vector<24x4xbf16> to vector<8x4xbf16>
    %95 = vector.extract_strided_slice %1 {offsets = [3, 0, 0], sizes = [1, 4, 8], strides = [1, 1, 1]} : vector<9x4x8xbf16> to vector<1x4x8xbf16>
    %96 = vector.shape_cast %95 : vector<1x4x8xbf16> to vector<4x8xbf16>
    %cst_49 = arith.constant dense<0.000000e+00> : vector<8x8xf32>
    %97 = tpu.matmul %94, %96, %cst_49 {dimension_numbers = #tpu.dot_dimension_numbers<[1], [0], [0], [1], [0, 0, 1, 1], [], []>} : vector<8x4xbf16>, vector<4x8xbf16>, vector<8x8xf32> -> vector<8x8xf32>
    %98 = arith.addf %89, %97 : vector<8x8xf32>
    %99 = vector.extract_strided_slice %93 {offsets = [8, 0], sizes = [8, 4], strides = [1, 1]} : vector<24x4xbf16> to vector<8x4xbf16>
    %100 = vector.extract_strided_slice %1 {offsets = [4, 0, 0], sizes = [1, 4, 8], strides = [1, 1, 1]} : vector<9x4x8xbf16> to vector<1x4x8xbf16>
    %101 = vector.shape_cast %100 : vector<1x4x8xbf16> to vector<4x8xbf16>
    %cst_50 = arith.constant dense<0.000000e+00> : vector<8x8xf32>
    %102 = tpu.matmul %99, %101, %cst_50 {dimension_numbers = #tpu.dot_dimension_numbers<[1], [0], [0], [1], [0, 0, 1, 1], [], []>} : vector<8x4xbf16>, vector<4x8xbf16>, vector<8x8xf32> -> vector<8x8xf32>
    %103 = arith.addf %98, %102 : vector<8x8xf32>
    %104 = vector.extract_strided_slice %93 {offsets = [16, 0], sizes = [8, 4], strides = [1, 1]} : vector<24x4xbf16> to vector<8x4xbf16>
    %105 = vector.extract_strided_slice %1 {offsets = [5, 0, 0], sizes = [1, 4, 8], strides = [1, 1, 1]} : vector<9x4x8xbf16> to vector<1x4x8xbf16>
    %106 = vector.shape_cast %105 : vector<1x4x8xbf16> to vector<4x8xbf16>
    %cst_51 = arith.constant dense<0.000000e+00> : vector<8x8xf32>
    %107 = tpu.matmul %104, %106, %cst_51 {dimension_numbers = #tpu.dot_dimension_numbers<[1], [0], [0], [1], [0, 0, 1, 1], [], []>} : vector<8x4xbf16>, vector<4x8xbf16>, vector<8x8xf32> -> vector<8x8xf32>
    %108 = arith.addf %103, %107 : vector<8x8xf32>
    %c0_52 = arith.constant 0 : index
    %c4 = arith.constant 4 : index
    %c0_53 = arith.constant 0 : index
    %c0_54 = arith.constant 0 : index
    %109 = vector.load %arg1[%c0_52, %c4, %c0_53, %c0_54] : memref<1x18x18x4xbf16, #tpu.memory_space<vmem>>, vector<1x1x18x4xbf16>
    %110 = vector.shape_cast %109 : vector<1x1x18x4xbf16> to vector<18x4xbf16>
    %cst_55 = arith.constant dense<0.000000e+00> : vector<24x4xf32>
    %111 = tpu.matmul %0, %110, %cst_55 {dimension_numbers = #tpu.dot_dimension_numbers<[1], [0], [0], [1], [0, 0, 1, 1], [], []>} : vector<24x18xbf16>, vector<18x4xbf16>, vector<24x4xf32> -> vector<24x4xf32>
    %112 = arith.truncf %111 : vector<24x4xf32> to vector<24x4xbf16>
    %113 = vector.extract_strided_slice %112 {offsets = [0, 0], sizes = [8, 4], strides = [1, 1]} : vector<24x4xbf16> to vector<8x4xbf16>
    %114 = vector.extract_strided_slice %1 {offsets = [6, 0, 0], sizes = [1, 4, 8], strides = [1, 1, 1]} : vector<9x4x8xbf16> to vector<1x4x8xbf16>
    %115 = vector.shape_cast %114 : vector<1x4x8xbf16> to vector<4x8xbf16>
    %cst_56 = arith.constant dense<0.000000e+00> : vector<8x8xf32>
    %116 = tpu.matmul %113, %115, %cst_56 {dimension_numbers = #tpu.dot_dimension_numbers<[1], [0], [0], [1], [0, 0, 1, 1], [], []>} : vector<8x4xbf16>, vector<4x8xbf16>, vector<8x8xf32> -> vector<8x8xf32>
    %117 = arith.addf %108, %116 : vector<8x8xf32>
    %118 = vector.extract_strided_slice %112 {offsets = [8, 0], sizes = [8, 4], strides = [1, 1]} : vector<24x4xbf16> to vector<8x4xbf16>
    %119 = vector.extract_strided_slice %1 {offsets = [7, 0, 0], sizes = [1, 4, 8], strides = [1, 1, 1]} : vector<9x4x8xbf16> to vector<1x4x8xbf16>
    %120 = vector.shape_cast %119 : vector<1x4x8xbf16> to vector<4x8xbf16>
    %cst_57 = arith.constant dense<0.000000e+00> : vector<8x8xf32>
    %121 = tpu.matmul %118, %120, %cst_57 {dimension_numbers = #tpu.dot_dimension_numbers<[1], [0], [0], [1], [0, 0, 1, 1], [], []>} : vector<8x4xbf16>, vector<4x8xbf16>, vector<8x8xf32> -> vector<8x8xf32>
    %122 = arith.addf %117, %121 : vector<8x8xf32>
    %123 = vector.extract_strided_slice %112 {offsets = [16, 0], sizes = [8, 4], strides = [1, 1]} : vector<24x4xbf16> to vector<8x4xbf16>
    %124 = vector.extract_strided_slice %1 {offsets = [8, 0, 0], sizes = [1, 4, 8], strides = [1, 1, 1]} : vector<9x4x8xbf16> to vector<1x4x8xbf16>
    %125 = vector.shape_cast %124 : vector<1x4x8xbf16> to vector<4x8xbf16>
    %cst_58 = arith.constant dense<0.000000e+00> : vector<8x8xf32>
    %126 = tpu.matmul %123, %125, %cst_58 {dimension_numbers = #tpu.dot_dimension_numbers<[1], [0], [0], [1], [0, 0, 1, 1], [], []>} : vector<8x4xbf16>, vector<4x8xbf16>, vector<8x8xf32> -> vector<8x8xf32>
    %127 = arith.addf %122, %126 : vector<8x8xf32>
    %128 = vector.broadcast %2 : vector<1x8xf32> to vector<8x8xf32>
    %129 = arith.addf %127, %128 : vector<8x8xf32>
    %cst_59 = arith.constant 0.000000e+00 : f32
    %130 = vector.broadcast %cst_59 : f32 to vector<8x8xf32>
    %131 = arith.maximumf %129, %130 : vector<8x8xf32>
    %c2_60 = arith.constant 2 : index
    %c1_61 = arith.constant 1 : index
    %c0_62 = arith.constant 0 : index
    %132 = vector.load %arg9[%c2_60, %c1_61, %c0_62] : memref<10x10x8xf32, #tpu.memory_space<vmem>>, vector<1x8x8xf32>
    %133 = vector.shape_cast %132 : vector<1x8x8xf32> to vector<8x8xf32>
    %134 = vector.shape_cast %131 : vector<8x8xf32> to vector<1x8x8xf32>
    tpu.vector_store %arg9[%c2_60, %c1_61, %c0_62], %134 {strides = array<i32>} : memref<10x10x8xf32, #tpu.memory_space<vmem>>, vector<1x8x8xf32>,
    %cst_63 = arith.constant 0.000000e+00 : f32
    %135 = vector.broadcast %cst_63 : f32 to vector<8x8xf32>
    %c0_64 = arith.constant 0 : index
    %c4_65 = arith.constant 4 : index
    %c0_66 = arith.constant 0 : index
    %c0_67 = arith.constant 0 : index
    %136 = vector.load %arg1[%c0_64, %c4_65, %c0_66, %c0_67] : memref<1x18x18x4xbf16, #tpu.memory_space<vmem>>, vector<1x1x18x4xbf16>
    %137 = vector.shape_cast %136 : vector<1x1x18x4xbf16> to vector<18x4xbf16>
    %cst_68 = arith.constant dense<0.000000e+00> : vector<24x4xf32>
    %138 = tpu.matmul %0, %137, %cst_68 {dimension_numbers = #tpu.dot_dimension_numbers<[1], [0], [0], [1], [0, 0, 1, 1], [], []>} : vector<24x18xbf16>, vector<18x4xbf16>, vector<24x4xf32> -> vector<24x4xf32>
    %139 = arith.truncf %138 : vector<24x4xf32> to vector<24x4xbf16>
    %140 = vector.extract_strided_slice %139 {offsets = [0, 0], sizes = [8, 4], strides = [1, 1]} : vector<24x4xbf16> to vector<8x4xbf16>
    %141 = vector.extract_strided_slice %1 {offsets = [0, 0, 0], sizes = [1, 4, 8], strides = [1, 1, 1]} : vector<9x4x8xbf16> to vector<1x4x8xbf16>
    %142 = vector.shape_cast %141 : vector<1x4x8xbf16> to vector<4x8xbf16>
    %cst_69 = arith.constant dense<0.000000e+00> : vector<8x8xf32>
    %143 = tpu.matmul %140, %142, %cst_69 {dimension_numbers = #tpu.dot_dimension_numbers<[1], [0], [0], [1], [0, 0, 1, 1], [], []>} : vector<8x4xbf16>, vector<4x8xbf16>, vector<8x8xf32> -> vector<8x8xf32>
    %144 = arith.addf %135, %143 : vector<8x8xf32>
    %145 = vector.extract_strided_slice %139 {offsets = [8, 0], sizes = [8, 4], strides = [1, 1]} : vector<24x4xbf16> to vector<8x4xbf16>
    %146 = vector.extract_strided_slice %1 {offsets = [1, 0, 0], sizes = [1, 4, 8], strides = [1, 1, 1]} : vector<9x4x8xbf16> to vector<1x4x8xbf16>
    %147 = vector.shape_cast %146 : vector<1x4x8xbf16> to vector<4x8xbf16>
    %cst_70 = arith.constant dense<0.000000e+00> : vector<8x8xf32>
    %148 = tpu.matmul %145, %147, %cst_70 {dimension_numbers = #tpu.dot_dimension_numbers<[1], [0], [0], [1], [0, 0, 1, 1], [], []>} : vector<8x4xbf16>, vector<4x8xbf16>, vector<8x8xf32> -> vector<8x8xf32>
    %149 = arith.addf %144, %148 : vector<8x8xf32>
    %150 = vector.extract_strided_slice %139 {offsets = [16, 0], sizes = [8, 4], strides = [1, 1]} : vector<24x4xbf16> to vector<8x4xbf16>
    %151 = vector.extract_strided_slice %1 {offsets = [2, 0, 0], sizes = [1, 4, 8], strides = [1, 1, 1]} : vector<9x4x8xbf16> to vector<1x4x8xbf16>
    %152 = vector.shape_cast %151 : vector<1x4x8xbf16> to vector<4x8xbf16>
    %cst_71 = arith.constant dense<0.000000e+00> : vector<8x8xf32>
    %153 = tpu.matmul %150, %152, %cst_71 {dimension_numbers = #tpu.dot_dimension_numbers<[1], [0], [0], [1], [0, 0, 1, 1], [], []>} : vector<8x4xbf16>, vector<4x8xbf16>, vector<8x8xf32> -> vector<8x8xf32>
    %154 = arith.addf %149, %153 : vector<8x8xf32>
    %c0_72 = arith.constant 0 : index
    %c5 = arith.constant 5 : index
    %c0_73 = arith.constant 0 : index
    %c0_74 = arith.constant 0 : index
    %155 = vector.load %arg1[%c0_72, %c5, %c0_73, %c0_74] : memref<1x18x18x4xbf16, #tpu.memory_space<vmem>>, vector<1x1x18x4xbf16>
    %156 = vector.shape_cast %155 : vector<1x1x18x4xbf16> to vector<18x4xbf16>
    %cst_75 = arith.constant dense<0.000000e+00> : vector<24x4xf32>
    %157 = tpu.matmul %0, %156, %cst_75 {dimension_numbers = #tpu.dot_dimension_numbers<[1], [0], [0], [1], [0, 0, 1, 1], [], []>} : vector<24x18xbf16>, vector<18x4xbf16>, vector<24x4xf32> -> vector<24x4xf32>
    %158 = arith.truncf %157 : vector<24x4xf32> to vector<24x4xbf16>
    %159 = vector.extract_strided_slice %158 {offsets = [0, 0], sizes = [8, 4], strides = [1, 1]} : vector<24x4xbf16> to vector<8x4xbf16>
    %160 = vector.extract_strided_slice %1 {offsets = [3, 0, 0], sizes = [1, 4, 8], strides = [1, 1, 1]} : vector<9x4x8xbf16> to vector<1x4x8xbf16>
    %161 = vector.shape_cast %160 : vector<1x4x8xbf16> to vector<4x8xbf16>
    %cst_76 = arith.constant dense<0.000000e+00> : vector<8x8xf32>
    %162 = tpu.matmul %159, %161, %cst_76 {dimension_numbers = #tpu.dot_dimension_numbers<[1], [0], [0], [1], [0, 0, 1, 1], [], []>} : vector<8x4xbf16>, vector<4x8xbf16>, vector<8x8xf32> -> vector<8x8xf32>
    %163 = arith.addf %154, %162 : vector<8x8xf32>
    %164 = vector.extract_strided_slice %158 {offsets = [8, 0], sizes = [8, 4], strides = [1, 1]} : vector<24x4xbf16> to vector<8x4xbf16>
    %165 = vector.extract_strided_slice %1 {offsets = [4, 0, 0], sizes = [1, 4, 8], strides = [1, 1, 1]} : vector<9x4x8xbf16> to vector<1x4x8xbf16>
    %166 = vector.shape_cast %165 : vector<1x4x8xbf16> to vector<4x8xbf16>
    %cst_77 = arith.constant dense<0.000000e+00> : vector<8x8xf32>
    %167 = tpu.matmul %164, %166, %cst_77 {dimension_numbers = #tpu.dot_dimension_numbers<[1], [0], [0], [1], [0, 0, 1, 1], [], []>} : vector<8x4xbf16>, vector<4x8xbf16>, vector<8x8xf32> -> vector<8x8xf32>
    %168 = arith.addf %163, %167 : vector<8x8xf32>
    %169 = vector.extract_strided_slice %158 {offsets = [16, 0], sizes = [8, 4], strides = [1, 1]} : vector<24x4xbf16> to vector<8x4xbf16>
    %170 = vector.extract_strided_slice %1 {offsets = [5, 0, 0], sizes = [1, 4, 8], strides = [1, 1, 1]} : vector<9x4x8xbf16> to vector<1x4x8xbf16>
    %171 = vector.shape_cast %170 : vector<1x4x8xbf16> to vector<4x8xbf16>
    %cst_78 = arith.constant dense<0.000000e+00> : vector<8x8xf32>
    %172 = tpu.matmul %169, %171, %cst_78 {dimension_numbers = #tpu.dot_dimension_numbers<[1], [0], [0], [1], [0, 0, 1, 1], [], []>} : vector<8x4xbf16>, vector<4x8xbf16>, vector<8x8xf32> -> vector<8x8xf32>
    %173 = arith.addf %168, %172 : vector<8x8xf32>
    %c0_79 = arith.constant 0 : index
    %c6 = arith.constant 6 : index
    %c0_80 = arith.constant 0 : index
    %c0_81 = arith.constant 0 : index
    %174 = vector.load %arg1[%c0_79, %c6, %c0_80, %c0_81] : memref<1x18x18x4xbf16, #tpu.memory_space<vmem>>, vector<1x1x18x4xbf16>
    %175 = vector.shape_cast %174 : vector<1x1x18x4xbf16> to vector<18x4xbf16>
    %cst_82 = arith.constant dense<0.000000e+00> : vector<24x4xf32>
    %176 = tpu.matmul %0, %175, %cst_82 {dimension_numbers = #tpu.dot_dimension_numbers<[1], [0], [0], [1], [0, 0, 1, 1], [], []>} : vector<24x18xbf16>, vector<18x4xbf16>, vector<24x4xf32> -> vector<24x4xf32>
    %177 = arith.truncf %176 : vector<24x4xf32> to vector<24x4xbf16>
    %178 = vector.extract_strided_slice %177 {offsets = [0, 0], sizes = [8, 4], strides = [1, 1]} : vector<24x4xbf16> to vector<8x4xbf16>
    %179 = vector.extract_strided_slice %1 {offsets = [6, 0, 0], sizes = [1, 4, 8], strides = [1, 1, 1]} : vector<9x4x8xbf16> to vector<1x4x8xbf16>
    %180 = vector.shape_cast %179 : vector<1x4x8xbf16> to vector<4x8xbf16>
    %cst_83 = arith.constant dense<0.000000e+00> : vector<8x8xf32>
    %181 = tpu.matmul %178, %180, %cst_83 {dimension_numbers = #tpu.dot_dimension_numbers<[1], [0], [0], [1], [0, 0, 1, 1], [], []>} : vector<8x4xbf16>, vector<4x8xbf16>, vector<8x8xf32> -> vector<8x8xf32>
    %182 = arith.addf %173, %181 : vector<8x8xf32>
    %183 = vector.extract_strided_slice %177 {offsets = [8, 0], sizes = [8, 4], strides = [1, 1]} : vector<24x4xbf16> to vector<8x4xbf16>
    %184 = vector.extract_strided_slice %1 {offsets = [7, 0, 0], sizes = [1, 4, 8], strides = [1, 1, 1]} : vector<9x4x8xbf16> to vector<1x4x8xbf16>
    %185 = vector.shape_cast %184 : vector<1x4x8xbf16> to vector<4x8xbf16>
    %cst_84 = arith.constant dense<0.000000e+00> : vector<8x8xf32>
    %186 = tpu.matmul %183, %185, %cst_84 {dimension_numbers = #tpu.dot_dimension_numbers<[1], [0], [0], [1], [0, 0, 1, 1], [], []>} : vector<8x4xbf16>, vector<4x8xbf16>, vector<8x8xf32> -> vector<8x8xf32>
    %187 = arith.addf %182, %186 : vector<8x8xf32>
    %188 = vector.extract_strided_slice %177 {offsets = [16, 0], sizes = [8, 4], strides = [1, 1]} : vector<24x4xbf16> to vector<8x4xbf16>
    %189 = vector.extract_strided_slice %1 {offsets = [8, 0, 0], sizes = [1, 4, 8], strides = [1, 1, 1]} : vector<9x4x8xbf16> to vector<1x4x8xbf16>
    %190 = vector.shape_cast %189 : vector<1x4x8xbf16> to vector<4x8xbf16>
    %cst_85 = arith.constant dense<0.000000e+00> : vector<8x8xf32>
    %191 = tpu.matmul %188, %190, %cst_85 {dimension_numbers = #tpu.dot_dimension_numbers<[1], [0], [0], [1], [0, 0, 1, 1], [], []>} : vector<8x4xbf16>, vector<4x8xbf16>, vector<8x8xf32> -> vector<8x8xf32>
    %192 = arith.addf %187, %191 : vector<8x8xf32>
    %193 = vector.broadcast %2 : vector<1x8xf32> to vector<8x8xf32>
    %194 = arith.addf %192, %193 : vector<8x8xf32>
    %cst_86 = arith.constant 0.000000e+00 : f32
    %195 = vector.broadcast %cst_86 : f32 to vector<8x8xf32>
    %196 = arith.maximumf %194, %195 : vector<8x8xf32>
    %c3_87 = arith.constant 3 : index
    %c1_88 = arith.constant 1 : index
    %c0_89 = arith.constant 0 : index
    %197 = vector.load %arg9[%c3_87, %c1_88, %c0_89] : memref<10x10x8xf32, #tpu.memory_space<vmem>>, vector<1x8x8xf32>
    %198 = vector.shape_cast %197 : vector<1x8x8xf32> to vector<8x8xf32>
    %199 = vector.shape_cast %196 : vector<8x8xf32> to vector<1x8x8xf32>
    tpu.vector_store %arg9[%c3_87, %c1_88, %c0_89], %199 {strides = array<i32>} : memref<10x10x8xf32, #tpu.memory_space<vmem>>, vector<1x8x8xf32>,
    %cst_90 = arith.constant 0.000000e+00 : f32
    %200 = vector.broadcast %cst_90 : f32 to vector<8x8xf32>
    %c0_91 = arith.constant 0 : index
    %c6_92 = arith.constant 6 : index
    %c0_93 = arith.constant 0 : index
    %c0_94 = arith.constant 0 : index
    %201 = vector.load %arg1[%c0_91, %c6_92, %c0_93, %c0_94] : memref<1x18x18x4xbf16, #tpu.memory_space<vmem>>, vector<1x1x18x4xbf16>
    %202 = vector.shape_cast %201 : vector<1x1x18x4xbf16> to vector<18x4xbf16>
    %cst_95 = arith.constant dense<0.000000e+00> : vector<24x4xf32>
    %203 = tpu.matmul %0, %202, %cst_95 {dimension_numbers = #tpu.dot_dimension_numbers<[1], [0], [0], [1], [0, 0, 1, 1], [], []>} : vector<24x18xbf16>, vector<18x4xbf16>, vector<24x4xf32> -> vector<24x4xf32>
    %204 = arith.truncf %203 : vector<24x4xf32> to vector<24x4xbf16>
    %205 = vector.extract_strided_slice %204 {offsets = [0, 0], sizes = [8, 4], strides = [1, 1]} : vector<24x4xbf16> to vector<8x4xbf16>
    %206 = vector.extract_strided_slice %1 {offsets = [0, 0, 0], sizes = [1, 4, 8], strides = [1, 1, 1]} : vector<9x4x8xbf16> to vector<1x4x8xbf16>
    %207 = vector.shape_cast %206 : vector<1x4x8xbf16> to vector<4x8xbf16>
    %cst_96 = arith.constant dense<0.000000e+00> : vector<8x8xf32>
    %208 = tpu.matmul %205, %207, %cst_96 {dimension_numbers = #tpu.dot_dimension_numbers<[1], [0], [0], [1], [0, 0, 1, 1], [], []>} : vector<8x4xbf16>, vector<4x8xbf16>, vector<8x8xf32> -> vector<8x8xf32>
    %209 = arith.addf %200, %208 : vector<8x8xf32>
    %210 = vector.extract_strided_slice %204 {offsets = [8, 0], sizes = [8, 4], strides = [1, 1]} : vector<24x4xbf16> to vector<8x4xbf16>
    %211 = vector.extract_strided_slice %1 {offsets = [1, 0, 0], sizes = [1, 4, 8], strides = [1, 1, 1]} : vector<9x4x8xbf16> to vector<1x4x8xbf16>
    %212 = vector.shape_cast %211 : vector<1x4x8xbf16> to vector<4x8xbf16>
    %cst_97 = arith.constant dense<0.000000e+00> : vector<8x8xf32>
    %213 = tpu.matmul %210, %212, %cst_97 {dimension_numbers = #tpu.dot_dimension_numbers<[1], [0], [0], [1], [0, 0, 1, 1], [], []>} : vector<8x4xbf16>, vector<4x8xbf16>, vector<8x8xf32> -> vector<8x8xf32>
    %214 = arith.addf %209, %213 : vector<8x8xf32>
    %215 = vector.extract_strided_slice %204 {offsets = [16, 0], sizes = [8, 4], strides = [1, 1]} : vector<24x4xbf16> to vector<8x4xbf16>
    %216 = vector.extract_strided_slice %1 {offsets = [2, 0, 0], sizes = [1, 4, 8], strides = [1, 1, 1]} : vector<9x4x8xbf16> to vector<1x4x8xbf16>
    %217 = vector.shape_cast %216 : vector<1x4x8xbf16> to vector<4x8xbf16>
    %cst_98 = arith.constant dense<0.000000e+00> : vector<8x8xf32>
    %218 = tpu.matmul %215, %217, %cst_98 {dimension_numbers = #tpu.dot_dimension_numbers<[1], [0], [0], [1], [0, 0, 1, 1], [], []>} : vector<8x4xbf16>, vector<4x8xbf16>, vector<8x8xf32> -> vector<8x8xf32>
    %219 = arith.addf %214, %218 : vector<8x8xf32>
    %c0_99 = arith.constant 0 : index
    %c7 = arith.constant 7 : index
    %c0_100 = arith.constant 0 : index
    %c0_101 = arith.constant 0 : index
    %220 = vector.load %arg1[%c0_99, %c7, %c0_100, %c0_101] : memref<1x18x18x4xbf16, #tpu.memory_space<vmem>>, vector<1x1x18x4xbf16>
    %221 = vector.shape_cast %220 : vector<1x1x18x4xbf16> to vector<18x4xbf16>
    %cst_102 = arith.constant dense<0.000000e+00> : vector<24x4xf32>
    %222 = tpu.matmul %0, %221, %cst_102 {dimension_numbers = #tpu.dot_dimension_numbers<[1], [0], [0], [1], [0, 0, 1, 1], [], []>} : vector<24x18xbf16>, vector<18x4xbf16>, vector<24x4xf32> -> vector<24x4xf32>
    %223 = arith.truncf %222 : vector<24x4xf32> to vector<24x4xbf16>
    %224 = vector.extract_strided_slice %223 {offsets = [0, 0], sizes = [8, 4], strides = [1, 1]} : vector<24x4xbf16> to vector<8x4xbf16>
    %225 = vector.extract_strided_slice %1 {offsets = [3, 0, 0], sizes = [1, 4, 8], strides = [1, 1, 1]} : vector<9x4x8xbf16> to vector<1x4x8xbf16>
    %226 = vector.shape_cast %225 : vector<1x4x8xbf16> to vector<4x8xbf16>
    %cst_103 = arith.constant dense<0.000000e+00> : vector<8x8xf32>
    %227 = tpu.matmul %224, %226, %cst_103 {dimension_numbers = #tpu.dot_dimension_numbers<[1], [0], [0], [1], [0, 0, 1, 1], [], []>} : vector<8x4xbf16>, vector<4x8xbf16>, vector<8x8xf32> -> vector<8x8xf32>
    %228 = arith.addf %219, %227 : vector<8x8xf32>
    %229 = vector.extract_strided_slice %223 {offsets = [8, 0], sizes = [8, 4], strides = [1, 1]} : vector<24x4xbf16> to vector<8x4xbf16>
    %230 = vector.extract_strided_slice %1 {offsets = [4, 0, 0], sizes = [1, 4, 8], strides = [1, 1, 1]} : vector<9x4x8xbf16> to vector<1x4x8xbf16>
    %231 = vector.shape_cast %230 : vector<1x4x8xbf16> to vector<4x8xbf16>
    %cst_104 = arith.constant dense<0.000000e+00> : vector<8x8xf32>
    %232 = tpu.matmul %229, %231, %cst_104 {dimension_numbers = #tpu.dot_dimension_numbers<[1], [0], [0], [1], [0, 0, 1, 1], [], []>} : vector<8x4xbf16>, vector<4x8xbf16>, vector<8x8xf32> -> vector<8x8xf32>
    %233 = arith.addf %228, %232 : vector<8x8xf32>
    %234 = vector.extract_strided_slice %223 {offsets = [16, 0], sizes = [8, 4], strides = [1, 1]} : vector<24x4xbf16> to vector<8x4xbf16>
    %235 = vector.extract_strided_slice %1 {offsets = [5, 0, 0], sizes = [1, 4, 8], strides = [1, 1, 1]} : vector<9x4x8xbf16> to vector<1x4x8xbf16>
    %236 = vector.shape_cast %235 : vector<1x4x8xbf16> to vector<4x8xbf16>
    %cst_105 = arith.constant dense<0.000000e+00> : vector<8x8xf32>
    %237 = tpu.matmul %234, %236, %cst_105 {dimension_numbers = #tpu.dot_dimension_numbers<[1], [0], [0], [1], [0, 0, 1, 1], [], []>} : vector<8x4xbf16>, vector<4x8xbf16>, vector<8x8xf32> -> vector<8x8xf32>
    %238 = arith.addf %233, %237 : vector<8x8xf32>
    %c0_106 = arith.constant 0 : index
    %c8 = arith.constant 8 : index
    %c0_107 = arith.constant 0 : index
    %c0_108 = arith.constant 0 : index
    %239 = vector.load %arg1[%c0_106, %c8, %c0_107, %c0_108] : memref<1x18x18x4xbf16, #tpu.memory_space<vmem>>, vector<1x1x18x4xbf16>
    %240 = vector.shape_cast %239 : vector<1x1x18x4xbf16> to vector<18x4xbf16>
    %cst_109 = arith.constant dense<0.000000e+00> : vector<24x4xf32>
    %241 = tpu.matmul %0, %240, %cst_109 {dimension_numbers = #tpu.dot_dimension_numbers<[1], [0], [0], [1], [0, 0, 1, 1], [], []>} : vector<24x18xbf16>, vector<18x4xbf16>, vector<24x4xf32> -> vector<24x4xf32>
    %242 = arith.truncf %241 : vector<24x4xf32> to vector<24x4xbf16>
    %243 = vector.extract_strided_slice %242 {offsets = [0, 0], sizes = [8, 4], strides = [1, 1]} : vector<24x4xbf16> to vector<8x4xbf16>
    %244 = vector.extract_strided_slice %1 {offsets = [6, 0, 0], sizes = [1, 4, 8], strides = [1, 1, 1]} : vector<9x4x8xbf16> to vector<1x4x8xbf16>
    %245 = vector.shape_cast %244 : vector<1x4x8xbf16> to vector<4x8xbf16>
    %cst_110 = arith.constant dense<0.000000e+00> : vector<8x8xf32>
    %246 = tpu.matmul %243, %245, %cst_110 {dimension_numbers = #tpu.dot_dimension_numbers<[1], [0], [0], [1], [0, 0, 1, 1], [], []>} : vector<8x4xbf16>, vector<4x8xbf16>, vector<8x8xf32> -> vector<8x8xf32>
    %247 = arith.addf %238, %246 : vector<8x8xf32>
    %248 = vector.extract_strided_slice %242 {offsets = [8, 0], sizes = [8, 4], strides = [1, 1]} : vector<24x4xbf16> to vector<8x4xbf16>
    %249 = vector.extract_strided_slice %1 {offsets = [7, 0, 0], sizes = [1, 4, 8], strides = [1, 1, 1]} : vector<9x4x8xbf16> to vector<1x4x8xbf16>
    %250 = vector.shape_cast %249 : vector<1x4x8xbf16> to vector<4x8xbf16>
    %cst_111 = arith.constant dense<0.000000e+00> : vector<8x8xf32>
    %251 = tpu.matmul %248, %250, %cst_111 {dimension_numbers = #tpu.dot_dimension_numbers<[1], [0], [0], [1], [0, 0, 1, 1], [], []>} : vector<8x4xbf16>, vector<4x8xbf16>, vector<8x8xf32> -> vector<8x8xf32>
    %252 = arith.addf %247, %251 : vector<8x8xf32>
    %253 = vector.extract_strided_slice %242 {offsets = [16, 0], sizes = [8, 4], strides = [1, 1]} : vector<24x4xbf16> to vector<8x4xbf16>
    %254 = vector.extract_strided_slice %1 {offsets = [8, 0, 0], sizes = [1, 4, 8], strides = [1, 1, 1]} : vector<9x4x8xbf16> to vector<1x4x8xbf16>
    %255 = vector.shape_cast %254 : vector<1x4x8xbf16> to vector<4x8xbf16>
    %cst_112 = arith.constant dense<0.000000e+00> : vector<8x8xf32>
    %256 = tpu.matmul %253, %255, %cst_112 {dimension_numbers = #tpu.dot_dimension_numbers<[1], [0], [0], [1], [0, 0, 1, 1], [], []>} : vector<8x4xbf16>, vector<4x8xbf16>, vector<8x8xf32> -> vector<8x8xf32>
    %257 = arith.addf %252, %256 : vector<8x8xf32>
    %258 = vector.broadcast %2 : vector<1x8xf32> to vector<8x8xf32>
    %259 = arith.addf %257, %258 : vector<8x8xf32>
    %cst_113 = arith.constant 0.000000e+00 : f32
    %260 = vector.broadcast %cst_113 : f32 to vector<8x8xf32>
    %261 = arith.maximumf %259, %260 : vector<8x8xf32>
    %c4_114 = arith.constant 4 : index
    %c1_115 = arith.constant 1 : index
    %c0_116 = arith.constant 0 : index
    %262 = vector.load %arg9[%c4_114, %c1_115, %c0_116] : memref<10x10x8xf32, #tpu.memory_space<vmem>>, vector<1x8x8xf32>
    %263 = vector.shape_cast %262 : vector<1x8x8xf32> to vector<8x8xf32>
    %264 = vector.shape_cast %261 : vector<8x8xf32> to vector<1x8x8xf32>
    tpu.vector_store %arg9[%c4_114, %c1_115, %c0_116], %264 {strides = array<i32>} : memref<10x10x8xf32, #tpu.memory_space<vmem>>, vector<1x8x8xf32>,
    %cst_117 = arith.constant 0.000000e+00 : f32
    %265 = vector.broadcast %cst_117 : f32 to vector<8x8xf32>
    %c0_118 = arith.constant 0 : index
    %c8_119 = arith.constant 8 : index
    %c0_120 = arith.constant 0 : index
    %c0_121 = arith.constant 0 : index
    %266 = vector.load %arg1[%c0_118, %c8_119, %c0_120, %c0_121] : memref<1x18x18x4xbf16, #tpu.memory_space<vmem>>, vector<1x1x18x4xbf16>
    %267 = vector.shape_cast %266 : vector<1x1x18x4xbf16> to vector<18x4xbf16>
    %cst_122 = arith.constant dense<0.000000e+00> : vector<24x4xf32>
    %268 = tpu.matmul %0, %267, %cst_122 {dimension_numbers = #tpu.dot_dimension_numbers<[1], [0], [0], [1], [0, 0, 1, 1], [], []>} : vector<24x18xbf16>, vector<18x4xbf16>, vector<24x4xf32> -> vector<24x4xf32>
    %269 = arith.truncf %268 : vector<24x4xf32> to vector<24x4xbf16>
    %270 = vector.extract_strided_slice %269 {offsets = [0, 0], sizes = [8, 4], strides = [1, 1]} : vector<24x4xbf16> to vector<8x4xbf16>
    %271 = vector.extract_strided_slice %1 {offsets = [0, 0, 0], sizes = [1, 4, 8], strides = [1, 1, 1]} : vector<9x4x8xbf16> to vector<1x4x8xbf16>
    %272 = vector.shape_cast %271 : vector<1x4x8xbf16> to vector<4x8xbf16>
    %cst_123 = arith.constant dense<0.000000e+00> : vector<8x8xf32>
    %273 = tpu.matmul %270, %272, %cst_123 {dimension_numbers = #tpu.dot_dimension_numbers<[1], [0], [0], [1], [0, 0, 1, 1], [], []>} : vector<8x4xbf16>, vector<4x8xbf16>, vector<8x8xf32> -> vector<8x8xf32>
    %274 = arith.addf %265, %273 : vector<8x8xf32>
    %275 = vector.extract_strided_slice %269 {offsets = [8, 0], sizes = [8, 4], strides = [1, 1]} : vector<24x4xbf16> to vector<8x4xbf16>
    %276 = vector.extract_strided_slice %1 {offsets = [1, 0, 0], sizes = [1, 4, 8], strides = [1, 1, 1]} : vector<9x4x8xbf16> to vector<1x4x8xbf16>
    %277 = vector.shape_cast %276 : vector<1x4x8xbf16> to vector<4x8xbf16>
    %cst_124 = arith.constant dense<0.000000e+00> : vector<8x8xf32>
    %278 = tpu.matmul %275, %277, %cst_124 {dimension_numbers = #tpu.dot_dimension_numbers<[1], [0], [0], [1], [0, 0, 1, 1], [], []>} : vector<8x4xbf16>, vector<4x8xbf16>, vector<8x8xf32> -> vector<8x8xf32>
    %279 = arith.addf %274, %278 : vector<8x8xf32>
    %280 = vector.extract_strided_slice %269 {offsets = [16, 0], sizes = [8, 4], strides = [1, 1]} : vector<24x4xbf16> to vector<8x4xbf16>
    %281 = vector.extract_strided_slice %1 {offsets = [2, 0, 0], sizes = [1, 4, 8], strides = [1, 1, 1]} : vector<9x4x8xbf16> to vector<1x4x8xbf16>
    %282 = vector.shape_cast %281 : vector<1x4x8xbf16> to vector<4x8xbf16>
    %cst_125 = arith.constant dense<0.000000e+00> : vector<8x8xf32>
    %283 = tpu.matmul %280, %282, %cst_125 {dimension_numbers = #tpu.dot_dimension_numbers<[1], [0], [0], [1], [0, 0, 1, 1], [], []>} : vector<8x4xbf16>, vector<4x8xbf16>, vector<8x8xf32> -> vector<8x8xf32>
    %284 = arith.addf %279, %283 : vector<8x8xf32>
    %c0_126 = arith.constant 0 : index
    %c9 = arith.constant 9 : index
    %c0_127 = arith.constant 0 : index
    %c0_128 = arith.constant 0 : index
    %285 = vector.load %arg1[%c0_126, %c9, %c0_127, %c0_128] : memref<1x18x18x4xbf16, #tpu.memory_space<vmem>>, vector<1x1x18x4xbf16>
    %286 = vector.shape_cast %285 : vector<1x1x18x4xbf16> to vector<18x4xbf16>
    %cst_129 = arith.constant dense<0.000000e+00> : vector<24x4xf32>
    %287 = tpu.matmul %0, %286, %cst_129 {dimension_numbers = #tpu.dot_dimension_numbers<[1], [0], [0], [1], [0, 0, 1, 1], [], []>} : vector<24x18xbf16>, vector<18x4xbf16>, vector<24x4xf32> -> vector<24x4xf32>
    %288 = arith.truncf %287 : vector<24x4xf32> to vector<24x4xbf16>
    %289 = vector.extract_strided_slice %288 {offsets = [0, 0], sizes = [8, 4], strides = [1, 1]} : vector<24x4xbf16> to vector<8x4xbf16>
    %290 = vector.extract_strided_slice %1 {offsets = [3, 0, 0], sizes = [1, 4, 8], strides = [1, 1, 1]} : vector<9x4x8xbf16> to vector<1x4x8xbf16>
    %291 = vector.shape_cast %290 : vector<1x4x8xbf16> to vector<4x8xbf16>
    %cst_130 = arith.constant dense<0.000000e+00> : vector<8x8xf32>
    %292 = tpu.matmul %289, %291, %cst_130 {dimension_numbers = #tpu.dot_dimension_numbers<[1], [0], [0], [1], [0, 0, 1, 1], [], []>} : vector<8x4xbf16>, vector<4x8xbf16>, vector<8x8xf32> -> vector<8x8xf32>
    %293 = arith.addf %284, %292 : vector<8x8xf32>
    %294 = vector.extract_strided_slice %288 {offsets = [8, 0], sizes = [8, 4], strides = [1, 1]} : vector<24x4xbf16> to vector<8x4xbf16>
    %295 = vector.extract_strided_slice %1 {offsets = [4, 0, 0], sizes = [1, 4, 8], strides = [1, 1, 1]} : vector<9x4x8xbf16> to vector<1x4x8xbf16>
    %296 = vector.shape_cast %295 : vector<1x4x8xbf16> to vector<4x8xbf16>
    %cst_131 = arith.constant dense<0.000000e+00> : vector<8x8xf32>
    %297 = tpu.matmul %294, %296, %cst_131 {dimension_numbers = #tpu.dot_dimension_numbers<[1], [0], [0], [1], [0, 0, 1, 1], [], []>} : vector<8x4xbf16>, vector<4x8xbf16>, vector<8x8xf32> -> vector<8x8xf32>
    %298 = arith.addf %293, %297 : vector<8x8xf32>
    %299 = vector.extract_strided_slice %288 {offsets = [16, 0], sizes = [8, 4], strides = [1, 1]} : vector<24x4xbf16> to vector<8x4xbf16>
    %300 = vector.extract_strided_slice %1 {offsets = [5, 0, 0], sizes = [1, 4, 8], strides = [1, 1, 1]} : vector<9x4x8xbf16> to vector<1x4x8xbf16>
    %301 = vector.shape_cast %300 : vector<1x4x8xbf16> to vector<4x8xbf16>
    %cst_132 = arith.constant dense<0.000000e+00> : vector<8x8xf32>
    %302 = tpu.matmul %299, %301, %cst_132 {dimension_numbers = #tpu.dot_dimension_numbers<[1], [0], [0], [1], [0, 0, 1, 1], [], []>} : vector<8x4xbf16>, vector<4x8xbf16>, vector<8x8xf32> -> vector<8x8xf32>
    %303 = arith.addf %298, %302 : vector<8x8xf32>
    %c0_133 = arith.constant 0 : index
    %c10 = arith.constant 10 : index
    %c0_134 = arith.constant 0 : index
    %c0_135 = arith.constant 0 : index
    %304 = vector.load %arg1[%c0_133, %c10, %c0_134, %c0_135] : memref<1x18x18x4xbf16, #tpu.memory_space<vmem>>, vector<1x1x18x4xbf16>
    %305 = vector.shape_cast %304 : vector<1x1x18x4xbf16> to vector<18x4xbf16>
    %cst_136 = arith.constant dense<0.000000e+00> : vector<24x4xf32>
    %306 = tpu.matmul %0, %305, %cst_136 {dimension_numbers = #tpu.dot_dimension_numbers<[1], [0], [0], [1], [0, 0, 1, 1], [], []>} : vector<24x18xbf16>, vector<18x4xbf16>, vector<24x4xf32> -> vector<24x4xf32>
    %307 = arith.truncf %306 : vector<24x4xf32> to vector<24x4xbf16>
    %308 = vector.extract_strided_slice %307 {offsets = [0, 0], sizes = [8, 4], strides = [1, 1]} : vector<24x4xbf16> to vector<8x4xbf16>
    %309 = vector.extract_strided_slice %1 {offsets = [6, 0, 0], sizes = [1, 4, 8], strides = [1, 1, 1]} : vector<9x4x8xbf16> to vector<1x4x8xbf16>
    %310 = vector.shape_cast %309 : vector<1x4x8xbf16> to vector<4x8xbf16>
    %cst_137 = arith.constant dense<0.000000e+00> : vector<8x8xf32>
    %311 = tpu.matmul %308, %310, %cst_137 {dimension_numbers = #tpu.dot_dimension_numbers<[1], [0], [0], [1], [0, 0, 1, 1], [], []>} : vector<8x4xbf16>, vector<4x8xbf16>, vector<8x8xf32> -> vector<8x8xf32>
    %312 = arith.addf %303, %311 : vector<8x8xf32>
    %313 = vector.extract_strided_slice %307 {offsets = [8, 0], sizes = [8, 4], strides = [1, 1]} : vector<24x4xbf16> to vector<8x4xbf16>
    %314 = vector.extract_strided_slice %1 {offsets = [7, 0, 0], sizes = [1, 4, 8], strides = [1, 1, 1]} : vector<9x4x8xbf16> to vector<1x4x8xbf16>
    %315 = vector.shape_cast %314 : vector<1x4x8xbf16> to vector<4x8xbf16>
    %cst_138 = arith.constant dense<0.000000e+00> : vector<8x8xf32>
    %316 = tpu.matmul %313, %315, %cst_138 {dimension_numbers = #tpu.dot_dimension_numbers<[1], [0], [0], [1], [0, 0, 1, 1], [], []>} : vector<8x4xbf16>, vector<4x8xbf16>, vector<8x8xf32> -> vector<8x8xf32>
    %317 = arith.addf %312, %316 : vector<8x8xf32>
    %318 = vector.extract_strided_slice %307 {offsets = [16, 0], sizes = [8, 4], strides = [1, 1]} : vector<24x4xbf16> to vector<8x4xbf16>
    %319 = vector.extract_strided_slice %1 {offsets = [8, 0, 0], sizes = [1, 4, 8], strides = [1, 1, 1]} : vector<9x4x8xbf16> to vector<1x4x8xbf16>
    %320 = vector.shape_cast %319 : vector<1x4x8xbf16> to vector<4x8xbf16>
    %cst_139 = arith.constant dense<0.000000e+00> : vector<8x8xf32>
    %321 = tpu.matmul %318, %320, %cst_139 {dimension_numbers = #tpu.dot_dimension_numbers<[1], [0], [0], [1], [0, 0, 1, 1], [], []>} : vector<8x4xbf16>, vector<4x8xbf16>, vector<8x8xf32> -> vector<8x8xf32>
    %322 = arith.addf %317, %321 : vector<8x8xf32>
    %323 = vector.broadcast %2 : vector<1x8xf32> to vector<8x8xf32>
    %324 = arith.addf %322, %323 : vector<8x8xf32>
    %cst_140 = arith.constant 0.000000e+00 : f32
    %325 = vector.broadcast %cst_140 : f32 to vector<8x8xf32>
    %326 = arith.maximumf %324, %325 : vector<8x8xf32>
    %c5_141 = arith.constant 5 : index
    %c1_142 = arith.constant 1 : index
    %c0_143 = arith.constant 0 : index
    %327 = vector.load %arg9[%c5_141, %c1_142, %c0_143] : memref<10x10x8xf32, #tpu.memory_space<vmem>>, vector<1x8x8xf32>
    %328 = vector.shape_cast %327 : vector<1x8x8xf32> to vector<8x8xf32>
    %329 = vector.shape_cast %326 : vector<8x8xf32> to vector<1x8x8xf32>
    tpu.vector_store %arg9[%c5_141, %c1_142, %c0_143], %329 {strides = array<i32>} : memref<10x10x8xf32, #tpu.memory_space<vmem>>, vector<1x8x8xf32>,
    %cst_144 = arith.constant 0.000000e+00 : f32
    %330 = vector.broadcast %cst_144 : f32 to vector<8x8xf32>
    %c0_145 = arith.constant 0 : index
    %c10_146 = arith.constant 10 : index
    %c0_147 = arith.constant 0 : index
    %c0_148 = arith.constant 0 : index
    %331 = vector.load %arg1[%c0_145, %c10_146, %c0_147, %c0_148] : memref<1x18x18x4xbf16, #tpu.memory_space<vmem>>, vector<1x1x18x4xbf16>
    %332 = vector.shape_cast %331 : vector<1x1x18x4xbf16> to vector<18x4xbf16>
    %cst_149 = arith.constant dense<0.000000e+00> : vector<24x4xf32>
    %333 = tpu.matmul %0, %332, %cst_149 {dimension_numbers = #tpu.dot_dimension_numbers<[1], [0], [0], [1], [0, 0, 1, 1], [], []>} : vector<24x18xbf16>, vector<18x4xbf16>, vector<24x4xf32> -> vector<24x4xf32>
    %334 = arith.truncf %333 : vector<24x4xf32> to vector<24x4xbf16>
    %335 = vector.extract_strided_slice %334 {offsets = [0, 0], sizes = [8, 4], strides = [1, 1]} : vector<24x4xbf16> to vector<8x4xbf16>
    %336 = vector.extract_strided_slice %1 {offsets = [0, 0, 0], sizes = [1, 4, 8], strides = [1, 1, 1]} : vector<9x4x8xbf16> to vector<1x4x8xbf16>
    %337 = vector.shape_cast %336 : vector<1x4x8xbf16> to vector<4x8xbf16>
    %cst_150 = arith.constant dense<0.000000e+00> : vector<8x8xf32>
    %338 = tpu.matmul %335, %337, %cst_150 {dimension_numbers = #tpu.dot_dimension_numbers<[1], [0], [0], [1], [0, 0, 1, 1], [], []>} : vector<8x4xbf16>, vector<4x8xbf16>, vector<8x8xf32> -> vector<8x8xf32>
    %339 = arith.addf %330, %338 : vector<8x8xf32>
    %340 = vector.extract_strided_slice %334 {offsets = [8, 0], sizes = [8, 4], strides = [1, 1]} : vector<24x4xbf16> to vector<8x4xbf16>
    %341 = vector.extract_strided_slice %1 {offsets = [1, 0, 0], sizes = [1, 4, 8], strides = [1, 1, 1]} : vector<9x4x8xbf16> to vector<1x4x8xbf16>
    %342 = vector.shape_cast %341 : vector<1x4x8xbf16> to vector<4x8xbf16>
    %cst_151 = arith.constant dense<0.000000e+00> : vector<8x8xf32>
    %343 = tpu.matmul %340, %342, %cst_151 {dimension_numbers = #tpu.dot_dimension_numbers<[1], [0], [0], [1], [0, 0, 1, 1], [], []>} : vector<8x4xbf16>, vector<4x8xbf16>, vector<8x8xf32> -> vector<8x8xf32>
    %344 = arith.addf %339, %343 : vector<8x8xf32>
    %345 = vector.extract_strided_slice %334 {offsets = [16, 0], sizes = [8, 4], strides = [1, 1]} : vector<24x4xbf16> to vector<8x4xbf16>
    %346 = vector.extract_strided_slice %1 {offsets = [2, 0, 0], sizes = [1, 4, 8], strides = [1, 1, 1]} : vector<9x4x8xbf16> to vector<1x4x8xbf16>
    %347 = vector.shape_cast %346 : vector<1x4x8xbf16> to vector<4x8xbf16>
    %cst_152 = arith.constant dense<0.000000e+00> : vector<8x8xf32>
    %348 = tpu.matmul %345, %347, %cst_152 {dimension_numbers = #tpu.dot_dimension_numbers<[1], [0], [0], [1], [0, 0, 1, 1], [], []>} : vector<8x4xbf16>, vector<4x8xbf16>, vector<8x8xf32> -> vector<8x8xf32>
    %349 = arith.addf %344, %348 : vector<8x8xf32>
    %c0_153 = arith.constant 0 : index
    %c11 = arith.constant 11 : index
    %c0_154 = arith.constant 0 : index
    %c0_155 = arith.constant 0 : index
    %350 = vector.load %arg1[%c0_153, %c11, %c0_154, %c0_155] : memref<1x18x18x4xbf16, #tpu.memory_space<vmem>>, vector<1x1x18x4xbf16>
    %351 = vector.shape_cast %350 : vector<1x1x18x4xbf16> to vector<18x4xbf16>
    %cst_156 = arith.constant dense<0.000000e+00> : vector<24x4xf32>
    %352 = tpu.matmul %0, %351, %cst_156 {dimension_numbers = #tpu.dot_dimension_numbers<[1], [0], [0], [1], [0, 0, 1, 1], [], []>} : vector<24x18xbf16>, vector<18x4xbf16>, vector<24x4xf32> -> vector<24x4xf32>
    %353 = arith.truncf %352 : vector<24x4xf32> to vector<24x4xbf16>
    %354 = vector.extract_strided_slice %353 {offsets = [0, 0], sizes = [8, 4], strides = [1, 1]} : vector<24x4xbf16> to vector<8x4xbf16>
    %355 = vector.extract_strided_slice %1 {offsets = [3, 0, 0], sizes = [1, 4, 8], strides = [1, 1, 1]} : vector<9x4x8xbf16> to vector<1x4x8xbf16>
    %356 = vector.shape_cast %355 : vector<1x4x8xbf16> to vector<4x8xbf16>
    %cst_157 = arith.constant dense<0.000000e+00> : vector<8x8xf32>
    %357 = tpu.matmul %354, %356, %cst_157 {dimension_numbers = #tpu.dot_dimension_numbers<[1], [0], [0], [1], [0, 0, 1, 1], [], []>} : vector<8x4xbf16>, vector<4x8xbf16>, vector<8x8xf32> -> vector<8x8xf32>
    %358 = arith.addf %349, %357 : vector<8x8xf32>
    %359 = vector.extract_strided_slice %353 {offsets = [8, 0], sizes = [8, 4], strides = [1, 1]} : vector<24x4xbf16> to vector<8x4xbf16>
    %360 = vector.extract_strided_slice %1 {offsets = [4, 0, 0], sizes = [1, 4, 8], strides = [1, 1, 1]} : vector<9x4x8xbf16> to vector<1x4x8xbf16>
    %361 = vector.shape_cast %360 : vector<1x4x8xbf16> to vector<4x8xbf16>
    %cst_158 = arith.constant dense<0.000000e+00> : vector<8x8xf32>
    %362 = tpu.matmul %359, %361, %cst_158 {dimension_numbers = #tpu.dot_dimension_numbers<[1], [0], [0], [1], [0, 0, 1, 1], [], []>} : vector<8x4xbf16>, vector<4x8xbf16>, vector<8x8xf32> -> vector<8x8xf32>
    %363 = arith.addf %358, %362 : vector<8x8xf32>
    %364 = vector.extract_strided_slice %353 {offsets = [16, 0], sizes = [8, 4], strides = [1, 1]} : vector<24x4xbf16> to vector<8x4xbf16>
    %365 = vector.extract_strided_slice %1 {offsets = [5, 0, 0], sizes = [1, 4, 8], strides = [1, 1, 1]} : vector<9x4x8xbf16> to vector<1x4x8xbf16>
    %366 = vector.shape_cast %365 : vector<1x4x8xbf16> to vector<4x8xbf16>
    %cst_159 = arith.constant dense<0.000000e+00> : vector<8x8xf32>
    %367 = tpu.matmul %364, %366, %cst_159 {dimension_numbers = #tpu.dot_dimension_numbers<[1], [0], [0], [1], [0, 0, 1, 1], [], []>} : vector<8x4xbf16>, vector<4x8xbf16>, vector<8x8xf32> -> vector<8x8xf32>
    %368 = arith.addf %363, %367 : vector<8x8xf32>
    %c0_160 = arith.constant 0 : index
    %c12 = arith.constant 12 : index
    %c0_161 = arith.constant 0 : index
    %c0_162 = arith.constant 0 : index
    %369 = vector.load %arg1[%c0_160, %c12, %c0_161, %c0_162] : memref<1x18x18x4xbf16, #tpu.memory_space<vmem>>, vector<1x1x18x4xbf16>
    %370 = vector.shape_cast %369 : vector<1x1x18x4xbf16> to vector<18x4xbf16>
    %cst_163 = arith.constant dense<0.000000e+00> : vector<24x4xf32>
    %371 = tpu.matmul %0, %370, %cst_163 {dimension_numbers = #tpu.dot_dimension_numbers<[1], [0], [0], [1], [0, 0, 1, 1], [], []>} : vector<24x18xbf16>, vector<18x4xbf16>, vector<24x4xf32> -> vector<24x4xf32>
    %372 = arith.truncf %371 : vector<24x4xf32> to vector<24x4xbf16>
    %373 = vector.extract_strided_slice %372 {offsets = [0, 0], sizes = [8, 4], strides = [1, 1]} : vector<24x4xbf16> to vector<8x4xbf16>
    %374 = vector.extract_strided_slice %1 {offsets = [6, 0, 0], sizes = [1, 4, 8], strides = [1, 1, 1]} : vector<9x4x8xbf16> to vector<1x4x8xbf16>
    %375 = vector.shape_cast %374 : vector<1x4x8xbf16> to vector<4x8xbf16>
    %cst_164 = arith.constant dense<0.000000e+00> : vector<8x8xf32>
    %376 = tpu.matmul %373, %375, %cst_164 {dimension_numbers = #tpu.dot_dimension_numbers<[1], [0], [0], [1], [0, 0, 1, 1], [], []>} : vector<8x4xbf16>, vector<4x8xbf16>, vector<8x8xf32> -> vector<8x8xf32>
    %377 = arith.addf %368, %376 : vector<8x8xf32>
    %378 = vector.extract_strided_slice %372 {offsets = [8, 0], sizes = [8, 4], strides = [1, 1]} : vector<24x4xbf16> to vector<8x4xbf16>
    %379 = vector.extract_strided_slice %1 {offsets = [7, 0, 0], sizes = [1, 4, 8], strides = [1, 1, 1]} : vector<9x4x8xbf16> to vector<1x4x8xbf16>
    %380 = vector.shape_cast %379 : vector<1x4x8xbf16> to vector<4x8xbf16>
    %cst_165 = arith.constant dense<0.000000e+00> : vector<8x8xf32>
    %381 = tpu.matmul %378, %380, %cst_165 {dimension_numbers = #tpu.dot_dimension_numbers<[1], [0], [0], [1], [0, 0, 1, 1], [], []>} : vector<8x4xbf16>, vector<4x8xbf16>, vector<8x8xf32> -> vector<8x8xf32>
    %382 = arith.addf %377, %381 : vector<8x8xf32>
    %383 = vector.extract_strided_slice %372 {offsets = [16, 0], sizes = [8, 4], strides = [1, 1]} : vector<24x4xbf16> to vector<8x4xbf16>
    %384 = vector.extract_strided_slice %1 {offsets = [8, 0, 0], sizes = [1, 4, 8], strides = [1, 1, 1]} : vector<9x4x8xbf16> to vector<1x4x8xbf16>
    %385 = vector.shape_cast %384 : vector<1x4x8xbf16> to vector<4x8xbf16>
    %cst_166 = arith.constant dense<0.000000e+00> : vector<8x8xf32>
    %386 = tpu.matmul %383, %385, %cst_166 {dimension_numbers = #tpu.dot_dimension_numbers<[1], [0], [0], [1], [0, 0, 1, 1], [], []>} : vector<8x4xbf16>, vector<4x8xbf16>, vector<8x8xf32> -> vector<8x8xf32>
    %387 = arith.addf %382, %386 : vector<8x8xf32>
    %388 = vector.broadcast %2 : vector<1x8xf32> to vector<8x8xf32>
    %389 = arith.addf %387, %388 : vector<8x8xf32>
    %cst_167 = arith.constant 0.000000e+00 : f32
    %390 = vector.broadcast %cst_167 : f32 to vector<8x8xf32>
    %391 = arith.maximumf %389, %390 : vector<8x8xf32>
    %c6_168 = arith.constant 6 : index
    %c1_169 = arith.constant 1 : index
    %c0_170 = arith.constant 0 : index
    %392 = vector.load %arg9[%c6_168, %c1_169, %c0_170] : memref<10x10x8xf32, #tpu.memory_space<vmem>>, vector<1x8x8xf32>
    %393 = vector.shape_cast %392 : vector<1x8x8xf32> to vector<8x8xf32>
    %394 = vector.shape_cast %391 : vector<8x8xf32> to vector<1x8x8xf32>
    tpu.vector_store %arg9[%c6_168, %c1_169, %c0_170], %394 {strides = array<i32>} : memref<10x10x8xf32, #tpu.memory_space<vmem>>, vector<1x8x8xf32>,
    %cst_171 = arith.constant 0.000000e+00 : f32
    %395 = vector.broadcast %cst_171 : f32 to vector<8x8xf32>
    %c0_172 = arith.constant 0 : index
    %c12_173 = arith.constant 12 : index
    %c0_174 = arith.constant 0 : index
    %c0_175 = arith.constant 0 : index
    %396 = vector.load %arg1[%c0_172, %c12_173, %c0_174, %c0_175] : memref<1x18x18x4xbf16, #tpu.memory_space<vmem>>, vector<1x1x18x4xbf16>
    %397 = vector.shape_cast %396 : vector<1x1x18x4xbf16> to vector<18x4xbf16>
    %cst_176 = arith.constant dense<0.000000e+00> : vector<24x4xf32>
    %398 = tpu.matmul %0, %397, %cst_176 {dimension_numbers = #tpu.dot_dimension_numbers<[1], [0], [0], [1], [0, 0, 1, 1], [], []>} : vector<24x18xbf16>, vector<18x4xbf16>, vector<24x4xf32> -> vector<24x4xf32>
    %399 = arith.truncf %398 : vector<24x4xf32> to vector<24x4xbf16>
    %400 = vector.extract_strided_slice %399 {offsets = [0, 0], sizes = [8, 4], strides = [1, 1]} : vector<24x4xbf16> to vector<8x4xbf16>
    %401 = vector.extract_strided_slice %1 {offsets = [0, 0, 0], sizes = [1, 4, 8], strides = [1, 1, 1]} : vector<9x4x8xbf16> to vector<1x4x8xbf16>
    %402 = vector.shape_cast %401 : vector<1x4x8xbf16> to vector<4x8xbf16>
    %cst_177 = arith.constant dense<0.000000e+00> : vector<8x8xf32>
    %403 = tpu.matmul %400, %402, %cst_177 {dimension_numbers = #tpu.dot_dimension_numbers<[1], [0], [0], [1], [0, 0, 1, 1], [], []>} : vector<8x4xbf16>, vector<4x8xbf16>, vector<8x8xf32> -> vector<8x8xf32>
    %404 = arith.addf %395, %403 : vector<8x8xf32>
    %405 = vector.extract_strided_slice %399 {offsets = [8, 0], sizes = [8, 4], strides = [1, 1]} : vector<24x4xbf16> to vector<8x4xbf16>
    %406 = vector.extract_strided_slice %1 {offsets = [1, 0, 0], sizes = [1, 4, 8], strides = [1, 1, 1]} : vector<9x4x8xbf16> to vector<1x4x8xbf16>
    %407 = vector.shape_cast %406 : vector<1x4x8xbf16> to vector<4x8xbf16>
    %cst_178 = arith.constant dense<0.000000e+00> : vector<8x8xf32>
    %408 = tpu.matmul %405, %407, %cst_178 {dimension_numbers = #tpu.dot_dimension_numbers<[1], [0], [0], [1], [0, 0, 1, 1], [], []>} : vector<8x4xbf16>, vector<4x8xbf16>, vector<8x8xf32> -> vector<8x8xf32>
    %409 = arith.addf %404, %408 : vector<8x8xf32>
    %410 = vector.extract_strided_slice %399 {offsets = [16, 0], sizes = [8, 4], strides = [1, 1]} : vector<24x4xbf16> to vector<8x4xbf16>
    %411 = vector.extract_strided_slice %1 {offsets = [2, 0, 0], sizes = [1, 4, 8], strides = [1, 1, 1]} : vector<9x4x8xbf16> to vector<1x4x8xbf16>
    %412 = vector.shape_cast %411 : vector<1x4x8xbf16> to vector<4x8xbf16>
    %cst_179 = arith.constant dense<0.000000e+00> : vector<8x8xf32>
    %413 = tpu.matmul %410, %412, %cst_179 {dimension_numbers = #tpu.dot_dimension_numbers<[1], [0], [0], [1], [0, 0, 1, 1], [], []>} : vector<8x4xbf16>, vector<4x8xbf16>, vector<8x8xf32> -> vector<8x8xf32>
    %414 = arith.addf %409, %413 : vector<8x8xf32>
    %c0_180 = arith.constant 0 : index
    %c13 = arith.constant 13 : index
    %c0_181 = arith.constant 0 : index
    %c0_182 = arith.constant 0 : index
    %415 = vector.load %arg1[%c0_180, %c13, %c0_181, %c0_182] : memref<1x18x18x4xbf16, #tpu.memory_space<vmem>>, vector<1x1x18x4xbf16>
    %416 = vector.shape_cast %415 : vector<1x1x18x4xbf16> to vector<18x4xbf16>
    %cst_183 = arith.constant dense<0.000000e+00> : vector<24x4xf32>
    %417 = tpu.matmul %0, %416, %cst_183 {dimension_numbers = #tpu.dot_dimension_numbers<[1], [0], [0], [1], [0, 0, 1, 1], [], []>} : vector<24x18xbf16>, vector<18x4xbf16>, vector<24x4xf32> -> vector<24x4xf32>
    %418 = arith.truncf %417 : vector<24x4xf32> to vector<24x4xbf16>
    %419 = vector.extract_strided_slice %418 {offsets = [0, 0], sizes = [8, 4], strides = [1, 1]} : vector<24x4xbf16> to vector<8x4xbf16>
    %420 = vector.extract_strided_slice %1 {offsets = [3, 0, 0], sizes = [1, 4, 8], strides = [1, 1, 1]} : vector<9x4x8xbf16> to vector<1x4x8xbf16>
    %421 = vector.shape_cast %420 : vector<1x4x8xbf16> to vector<4x8xbf16>
    %cst_184 = arith.constant dense<0.000000e+00> : vector<8x8xf32>
    %422 = tpu.matmul %419, %421, %cst_184 {dimension_numbers = #tpu.dot_dimension_numbers<[1], [0], [0], [1], [0, 0, 1, 1], [], []>} : vector<8x4xbf16>, vector<4x8xbf16>, vector<8x8xf32> -> vector<8x8xf32>
    %423 = arith.addf %414, %422 : vector<8x8xf32>
    %424 = vector.extract_strided_slice %418 {offsets = [8, 0], sizes = [8, 4], strides = [1, 1]} : vector<24x4xbf16> to vector<8x4xbf16>
    %425 = vector.extract_strided_slice %1 {offsets = [4, 0, 0], sizes = [1, 4, 8], strides = [1, 1, 1]} : vector<9x4x8xbf16> to vector<1x4x8xbf16>
    %426 = vector.shape_cast %425 : vector<1x4x8xbf16> to vector<4x8xbf16>
    %cst_185 = arith.constant dense<0.000000e+00> : vector<8x8xf32>
    %427 = tpu.matmul %424, %426, %cst_185 {dimension_numbers = #tpu.dot_dimension_numbers<[1], [0], [0], [1], [0, 0, 1, 1], [], []>} : vector<8x4xbf16>, vector<4x8xbf16>, vector<8x8xf32> -> vector<8x8xf32>
    %428 = arith.addf %423, %427 : vector<8x8xf32>
    %429 = vector.extract_strided_slice %418 {offsets = [16, 0], sizes = [8, 4], strides = [1, 1]} : vector<24x4xbf16> to vector<8x4xbf16>
    %430 = vector.extract_strided_slice %1 {offsets = [5, 0, 0], sizes = [1, 4, 8], strides = [1, 1, 1]} : vector<9x4x8xbf16> to vector<1x4x8xbf16>
    %431 = vector.shape_cast %430 : vector<1x4x8xbf16> to vector<4x8xbf16>
    %cst_186 = arith.constant dense<0.000000e+00> : vector<8x8xf32>
    %432 = tpu.matmul %429, %431, %cst_186 {dimension_numbers = #tpu.dot_dimension_numbers<[1], [0], [0], [1], [0, 0, 1, 1], [], []>} : vector<8x4xbf16>, vector<4x8xbf16>, vector<8x8xf32> -> vector<8x8xf32>
    %433 = arith.addf %428, %432 : vector<8x8xf32>
    %c0_187 = arith.constant 0 : index
    %c14 = arith.constant 14 : index
    %c0_188 = arith.constant 0 : index
    %c0_189 = arith.constant 0 : index
    %434 = vector.load %arg1[%c0_187, %c14, %c0_188, %c0_189] : memref<1x18x18x4xbf16, #tpu.memory_space<vmem>>, vector<1x1x18x4xbf16>
    %435 = vector.shape_cast %434 : vector<1x1x18x4xbf16> to vector<18x4xbf16>
    %cst_190 = arith.constant dense<0.000000e+00> : vector<24x4xf32>
    %436 = tpu.matmul %0, %435, %cst_190 {dimension_numbers = #tpu.dot_dimension_numbers<[1], [0], [0], [1], [0, 0, 1, 1], [], []>} : vector<24x18xbf16>, vector<18x4xbf16>, vector<24x4xf32> -> vector<24x4xf32>
    %437 = arith.truncf %436 : vector<24x4xf32> to vector<24x4xbf16>
    %438 = vector.extract_strided_slice %437 {offsets = [0, 0], sizes = [8, 4], strides = [1, 1]} : vector<24x4xbf16> to vector<8x4xbf16>
    %439 = vector.extract_strided_slice %1 {offsets = [6, 0, 0], sizes = [1, 4, 8], strides = [1, 1, 1]} : vector<9x4x8xbf16> to vector<1x4x8xbf16>
    %440 = vector.shape_cast %439 : vector<1x4x8xbf16> to vector<4x8xbf16>
    %cst_191 = arith.constant dense<0.000000e+00> : vector<8x8xf32>
    %441 = tpu.matmul %438, %440, %cst_191 {dimension_numbers = #tpu.dot_dimension_numbers<[1], [0], [0], [1], [0, 0, 1, 1], [], []>} : vector<8x4xbf16>, vector<4x8xbf16>, vector<8x8xf32> -> vector<8x8xf32>
    %442 = arith.addf %433, %441 : vector<8x8xf32>
    %443 = vector.extract_strided_slice %437 {offsets = [8, 0], sizes = [8, 4], strides = [1, 1]} : vector<24x4xbf16> to vector<8x4xbf16>
    %444 = vector.extract_strided_slice %1 {offsets = [7, 0, 0], sizes = [1, 4, 8], strides = [1, 1, 1]} : vector<9x4x8xbf16> to vector<1x4x8xbf16>
    %445 = vector.shape_cast %444 : vector<1x4x8xbf16> to vector<4x8xbf16>
    %cst_192 = arith.constant dense<0.000000e+00> : vector<8x8xf32>
    %446 = tpu.matmul %443, %445, %cst_192 {dimension_numbers = #tpu.dot_dimension_numbers<[1], [0], [0], [1], [0, 0, 1, 1], [], []>} : vector<8x4xbf16>, vector<4x8xbf16>, vector<8x8xf32> -> vector<8x8xf32>
    %447 = arith.addf %442, %446 : vector<8x8xf32>
    %448 = vector.extract_strided_slice %437 {offsets = [16, 0], sizes = [8, 4], strides = [1, 1]} : vector<24x4xbf16> to vector<8x4xbf16>
    %449 = vector.extract_strided_slice %1 {offsets = [8, 0, 0], sizes = [1, 4, 8], strides = [1, 1, 1]} : vector<9x4x8xbf16> to vector<1x4x8xbf16>
    %450 = vector.shape_cast %449 : vector<1x4x8xbf16> to vector<4x8xbf16>
    %cst_193 = arith.constant dense<0.000000e+00> : vector<8x8xf32>
    %451 = tpu.matmul %448, %450, %cst_193 {dimension_numbers = #tpu.dot_dimension_numbers<[1], [0], [0], [1], [0, 0, 1, 1], [], []>} : vector<8x4xbf16>, vector<4x8xbf16>, vector<8x8xf32> -> vector<8x8xf32>
    %452 = arith.addf %447, %451 : vector<8x8xf32>
    %453 = vector.broadcast %2 : vector<1x8xf32> to vector<8x8xf32>
    %454 = arith.addf %452, %453 : vector<8x8xf32>
    %cst_194 = arith.constant 0.000000e+00 : f32
    %455 = vector.broadcast %cst_194 : f32 to vector<8x8xf32>
    %456 = arith.maximumf %454, %455 : vector<8x8xf32>
    %c7_195 = arith.constant 7 : index
    %c1_196 = arith.constant 1 : index
    %c0_197 = arith.constant 0 : index
    %457 = vector.load %arg9[%c7_195, %c1_196, %c0_197] : memref<10x10x8xf32, #tpu.memory_space<vmem>>, vector<1x8x8xf32>
    %458 = vector.shape_cast %457 : vector<1x8x8xf32> to vector<8x8xf32>
    %459 = vector.shape_cast %456 : vector<8x8xf32> to vector<1x8x8xf32>
    tpu.vector_store %arg9[%c7_195, %c1_196, %c0_197], %459 {strides = array<i32>} : memref<10x10x8xf32, #tpu.memory_space<vmem>>, vector<1x8x8xf32>,
    %cst_198 = arith.constant 0.000000e+00 : f32
    %460 = vector.broadcast %cst_198 : f32 to vector<8x8xf32>
    %c0_199 = arith.constant 0 : index
    %c14_200 = arith.constant 14 : index
    %c0_201 = arith.constant 0 : index
    %c0_202 = arith.constant 0 : index
    %461 = vector.load %arg1[%c0_199, %c14_200, %c0_201, %c0_202] : memref<1x18x18x4xbf16, #tpu.memory_space<vmem>>, vector<1x1x18x4xbf16>
    %462 = vector.shape_cast %461 : vector<1x1x18x4xbf16> to vector<18x4xbf16>
    %cst_203 = arith.constant dense<0.000000e+00> : vector<24x4xf32>
    %463 = tpu.matmul %0, %462, %cst_203 {dimension_numbers = #tpu.dot_dimension_numbers<[1], [0], [0], [1], [0, 0, 1, 1], [], []>} : vector<24x18xbf16>, vector<18x4xbf16>, vector<24x4xf32> -> vector<24x4xf32>
    %464 = arith.truncf %463 : vector<24x4xf32> to vector<24x4xbf16>
    %465 = vector.extract_strided_slice %464 {offsets = [0, 0], sizes = [8, 4], strides = [1, 1]} : vector<24x4xbf16> to vector<8x4xbf16>
    %466 = vector.extract_strided_slice %1 {offsets = [0, 0, 0], sizes = [1, 4, 8], strides = [1, 1, 1]} : vector<9x4x8xbf16> to vector<1x4x8xbf16>
    %467 = vector.shape_cast %466 : vector<1x4x8xbf16> to vector<4x8xbf16>
    %cst_204 = arith.constant dense<0.000000e+00> : vector<8x8xf32>
    %468 = tpu.matmul %465, %467, %cst_204 {dimension_numbers = #tpu.dot_dimension_numbers<[1], [0], [0], [1], [0, 0, 1, 1], [], []>} : vector<8x4xbf16>, vector<4x8xbf16>, vector<8x8xf32> -> vector<8x8xf32>
    %469 = arith.addf %460, %468 : vector<8x8xf32>
    %470 = vector.extract_strided_slice %464 {offsets = [8, 0], sizes = [8, 4], strides = [1, 1]} : vector<24x4xbf16> to vector<8x4xbf16>
    %471 = vector.extract_strided_slice %1 {offsets = [1, 0, 0], sizes = [1, 4, 8], strides = [1, 1, 1]} : vector<9x4x8xbf16> to vector<1x4x8xbf16>
    %472 = vector.shape_cast %471 : vector<1x4x8xbf16> to vector<4x8xbf16>
    %cst_205 = arith.constant dense<0.000000e+00> : vector<8x8xf32>
    %473 = tpu.matmul %470, %472, %cst_205 {dimension_numbers = #tpu.dot_dimension_numbers<[1], [0], [0], [1], [0, 0, 1, 1], [], []>} : vector<8x4xbf16>, vector<4x8xbf16>, vector<8x8xf32> -> vector<8x8xf32>
    %474 = arith.addf %469, %473 : vector<8x8xf32>
    %475 = vector.extract_strided_slice %464 {offsets = [16, 0], sizes = [8, 4], strides = [1, 1]} : vector<24x4xbf16> to vector<8x4xbf16>
    %476 = vector.extract_strided_slice %1 {offsets = [2, 0, 0], sizes = [1, 4, 8], strides = [1, 1, 1]} : vector<9x4x8xbf16> to vector<1x4x8xbf16>
    %477 = vector.shape_cast %476 : vector<1x4x8xbf16> to vector<4x8xbf16>
    %cst_206 = arith.constant dense<0.000000e+00> : vector<8x8xf32>
    %478 = tpu.matmul %475, %477, %cst_206 {dimension_numbers = #tpu.dot_dimension_numbers<[1], [0], [0], [1], [0, 0, 1, 1], [], []>} : vector<8x4xbf16>, vector<4x8xbf16>, vector<8x8xf32> -> vector<8x8xf32>
    %479 = arith.addf %474, %478 : vector<8x8xf32>
    %c0_207 = arith.constant 0 : index
    %c15 = arith.constant 15 : index
    %c0_208 = arith.constant 0 : index
    %c0_209 = arith.constant 0 : index
    %480 = vector.load %arg1[%c0_207, %c15, %c0_208, %c0_209] : memref<1x18x18x4xbf16, #tpu.memory_space<vmem>>, vector<1x1x18x4xbf16>
    %481 = vector.shape_cast %480 : vector<1x1x18x4xbf16> to vector<18x4xbf16>
    %cst_210 = arith.constant dense<0.000000e+00> : vector<24x4xf32>
    %482 = tpu.matmul %0, %481, %cst_210 {dimension_numbers = #tpu.dot_dimension_numbers<[1], [0], [0], [1], [0, 0, 1, 1], [], []>} : vector<24x18xbf16>, vector<18x4xbf16>, vector<24x4xf32> -> vector<24x4xf32>
    %483 = arith.truncf %482 : vector<24x4xf32> to vector<24x4xbf16>
    %484 = vector.extract_strided_slice %483 {offsets = [0, 0], sizes = [8, 4], strides = [1, 1]} : vector<24x4xbf16> to vector<8x4xbf16>
    %485 = vector.extract_strided_slice %1 {offsets = [3, 0, 0], sizes = [1, 4, 8], strides = [1, 1, 1]} : vector<9x4x8xbf16> to vector<1x4x8xbf16>
    %486 = vector.shape_cast %485 : vector<1x4x8xbf16> to vector<4x8xbf16>
    %cst_211 = arith.constant dense<0.000000e+00> : vector<8x8xf32>
    %487 = tpu.matmul %484, %486, %cst_211 {dimension_numbers = #tpu.dot_dimension_numbers<[1], [0], [0], [1], [0, 0, 1, 1], [], []>} : vector<8x4xbf16>, vector<4x8xbf16>, vector<8x8xf32> -> vector<8x8xf32>
    %488 = arith.addf %479, %487 : vector<8x8xf32>
    %489 = vector.extract_strided_slice %483 {offsets = [8, 0], sizes = [8, 4], strides = [1, 1]} : vector<24x4xbf16> to vector<8x4xbf16>
    %490 = vector.extract_strided_slice %1 {offsets = [4, 0, 0], sizes = [1, 4, 8], strides = [1, 1, 1]} : vector<9x4x8xbf16> to vector<1x4x8xbf16>
    %491 = vector.shape_cast %490 : vector<1x4x8xbf16> to vector<4x8xbf16>
    %cst_212 = arith.constant dense<0.000000e+00> : vector<8x8xf32>
    %492 = tpu.matmul %489, %491, %cst_212 {dimension_numbers = #tpu.dot_dimension_numbers<[1], [0], [0], [1], [0, 0, 1, 1], [], []>} : vector<8x4xbf16>, vector<4x8xbf16>, vector<8x8xf32> -> vector<8x8xf32>
    %493 = arith.addf %488, %492 : vector<8x8xf32>
    %494 = vector.extract_strided_slice %483 {offsets = [16, 0], sizes = [8, 4], strides = [1, 1]} : vector<24x4xbf16> to vector<8x4xbf16>
    %495 = vector.extract_strided_slice %1 {offsets = [5, 0, 0], sizes = [1, 4, 8], strides = [1, 1, 1]} : vector<9x4x8xbf16> to vector<1x4x8xbf16>
    %496 = vector.shape_cast %495 : vector<1x4x8xbf16> to vector<4x8xbf16>
    %cst_213 = arith.constant dense<0.000000e+00> : vector<8x8xf32>
    %497 = tpu.matmul %494, %496, %cst_213 {dimension_numbers = #tpu.dot_dimension_numbers<[1], [0], [0], [1], [0, 0, 1, 1], [], []>} : vector<8x4xbf16>, vector<4x8xbf16>, vector<8x8xf32> -> vector<8x8xf32>
    %498 = arith.addf %493, %497 : vector<8x8xf32>
    %c0_214 = arith.constant 0 : index
    %c16 = arith.constant 16 : index
    %c0_215 = arith.constant 0 : index
    %c0_216 = arith.constant 0 : index
    %499 = vector.load %arg1[%c0_214, %c16, %c0_215, %c0_216] : memref<1x18x18x4xbf16, #tpu.memory_space<vmem>>, vector<1x1x18x4xbf16>
    %500 = vector.shape_cast %499 : vector<1x1x18x4xbf16> to vector<18x4xbf16>
    %cst_217 = arith.constant dense<0.000000e+00> : vector<24x4xf32>
    %501 = tpu.matmul %0, %500, %cst_217 {dimension_numbers = #tpu.dot_dimension_numbers<[1], [0], [0], [1], [0, 0, 1, 1], [], []>} : vector<24x18xbf16>, vector<18x4xbf16>, vector<24x4xf32> -> vector<24x4xf32>
    %502 = arith.truncf %501 : vector<24x4xf32> to vector<24x4xbf16>
    %503 = vector.extract_strided_slice %502 {offsets = [0, 0], sizes = [8, 4], strides = [1, 1]} : vector<24x4xbf16> to vector<8x4xbf16>
    %504 = vector.extract_strided_slice %1 {offsets = [6, 0, 0], sizes = [1, 4, 8], strides = [1, 1, 1]} : vector<9x4x8xbf16> to vector<1x4x8xbf16>
    %505 = vector.shape_cast %504 : vector<1x4x8xbf16> to vector<4x8xbf16>
    %cst_218 = arith.constant dense<0.000000e+00> : vector<8x8xf32>
    %506 = tpu.matmul %503, %505, %cst_218 {dimension_numbers = #tpu.dot_dimension_numbers<[1], [0], [0], [1], [0, 0, 1, 1], [], []>} : vector<8x4xbf16>, vector<4x8xbf16>, vector<8x8xf32> -> vector<8x8xf32>
    %507 = arith.addf %498, %506 : vector<8x8xf32>
    %508 = vector.extract_strided_slice %502 {offsets = [8, 0], sizes = [8, 4], strides = [1, 1]} : vector<24x4xbf16> to vector<8x4xbf16>
    %509 = vector.extract_strided_slice %1 {offsets = [7, 0, 0], sizes = [1, 4, 8], strides = [1, 1, 1]} : vector<9x4x8xbf16> to vector<1x4x8xbf16>
    %510 = vector.shape_cast %509 : vector<1x4x8xbf16> to vector<4x8xbf16>
    %cst_219 = arith.constant dense<0.000000e+00> : vector<8x8xf32>
    %511 = tpu.matmul %508, %510, %cst_219 {dimension_numbers = #tpu.dot_dimension_numbers<[1], [0], [0], [1], [0, 0, 1, 1], [], []>} : vector<8x4xbf16>, vector<4x8xbf16>, vector<8x8xf32> -> vector<8x8xf32>
    %512 = arith.addf %507, %511 : vector<8x8xf32>
    %513 = vector.extract_strided_slice %502 {offsets = [16, 0], sizes = [8, 4], strides = [1, 1]} : vector<24x4xbf16> to vector<8x4xbf16>
    %514 = vector.extract_strided_slice %1 {offsets = [8, 0, 0], sizes = [1, 4, 8], strides = [1, 1, 1]} : vector<9x4x8xbf16> to vector<1x4x8xbf16>
    %515 = vector.shape_cast %514 : vector<1x4x8xbf16> to vector<4x8xbf16>
    %cst_220 = arith.constant dense<0.000000e+00> : vector<8x8xf32>
    %516 = tpu.matmul %513, %515, %cst_220 {dimension_numbers = #tpu.dot_dimension_numbers<[1], [0], [0], [1], [0, 0, 1, 1], [], []>} : vector<8x4xbf16>, vector<4x8xbf16>, vector<8x8xf32> -> vector<8x8xf32>
    %517 = arith.addf %512, %516 : vector<8x8xf32>
    %518 = vector.broadcast %2 : vector<1x8xf32> to vector<8x8xf32>
    %519 = arith.addf %517, %518 : vector<8x8xf32>
    %cst_221 = arith.constant 0.000000e+00 : f32
    %520 = vector.broadcast %cst_221 : f32 to vector<8x8xf32>
    %521 = arith.maximumf %519, %520 : vector<8x8xf32>
    %c8_222 = arith.constant 8 : index
    %c1_223 = arith.constant 1 : index
    %c0_224 = arith.constant 0 : index
    %522 = vector.load %arg9[%c8_222, %c1_223, %c0_224] : memref<10x10x8xf32, #tpu.memory_space<vmem>>, vector<1x8x8xf32>
    %523 = vector.shape_cast %522 : vector<1x8x8xf32> to vector<8x8xf32>
    %524 = vector.shape_cast %521 : vector<8x8xf32> to vector<1x8x8xf32>
    tpu.vector_store %arg9[%c8_222, %c1_223, %c0_224], %524 {strides = array<i32>} : memref<10x10x8xf32, #tpu.memory_space<vmem>>, vector<1x8x8xf32>,
    %c0_225 = arith.constant 0 : index
    %c0_226 = arith.constant 0 : index
    %525 = vector.load %arg5[%c0_225, %c0_226] : memref<12x10xbf16, #tpu.memory_space<vmem>>, vector<12x10xbf16>
    %c0_227 = arith.constant 0 : index
    %c0_228 = arith.constant 0 : index
    %c0_229 = arith.constant 0 : index
    %526 = vector.load %arg6[%c0_227, %c0_228, %c0_229] : memref<9x8x16xbf16, #tpu.memory_space<vmem>>, vector<9x8x16xbf16>
    %c0_230 = arith.constant 0 : index
    %c0_231 = arith.constant 0 : index
    %527 = vector.load %arg7[%c0_230, %c0_231] : memref<1x16xf32, #tpu.memory_space<vmem>>, vector<1x16xf32>
    %cst_232 = arith.constant 0.000000e+00 : f32
    %528 = vector.broadcast %cst_232 : f32 to vector<4x16xf32>
    %c0_233 = arith.constant 0 : index
    %c0_234 = arith.constant 0 : index
    %c0_235 = arith.constant 0 : index
    %529 = vector.load %arg9[%c0_233, %c0_234, %c0_235] : memref<10x10x8xf32, #tpu.memory_space<vmem>>, vector<1x10x8xf32>
    %530 = vector.shape_cast %529 : vector<1x10x8xf32> to vector<10x8xf32>
    %531 = arith.truncf %530 : vector<10x8xf32> to vector<10x8xbf16>
    %cst_236 = arith.constant dense<0.000000e+00> : vector<12x8xf32>
    %532 = tpu.matmul %525, %531, %cst_236 {dimension_numbers = #tpu.dot_dimension_numbers<[1], [0], [0], [1], [0, 0, 1, 1], [], []>} : vector<12x10xbf16>, vector<10x8xbf16>, vector<12x8xf32> -> vector<12x8xf32>
    %533 = arith.truncf %532 : vector<12x8xf32> to vector<12x8xbf16>
    %534 = vector.extract_strided_slice %533 {offsets = [0, 0], sizes = [4, 8], strides = [1, 1]} : vector<12x8xbf16> to vector<4x8xbf16>
    %535 = vector.extract_strided_slice %526 {offsets = [0, 0, 0], sizes = [1, 8, 16], strides = [1, 1, 1]} : vector<9x8x16xbf16> to vector<1x8x16xbf16>
    %536 = vector.shape_cast %535 : vector<1x8x16xbf16> to vector<8x16xbf16>
    %cst_237 = arith.constant dense<0.000000e+00> : vector<4x16xf32>
    %537 = tpu.matmul %534, %536, %cst_237 {dimension_numbers = #tpu.dot_dimension_numbers<[1], [0], [0], [1], [0, 0, 1, 1], [], []>} : vector<4x8xbf16>, vector<8x16xbf16>, vector<4x16xf32> -> vector<4x16xf32>
    %538 = arith.addf %528, %537 : vector<4x16xf32>
    %539 = vector.extract_strided_slice %533 {offsets = [4, 0], sizes = [4, 8], strides = [1, 1]} : vector<12x8xbf16> to vector<4x8xbf16>
    %540 = vector.extract_strided_slice %526 {offsets = [1, 0, 0], sizes = [1, 8, 16], strides = [1, 1, 1]} : vector<9x8x16xbf16> to vector<1x8x16xbf16>
    %541 = vector.shape_cast %540 : vector<1x8x16xbf16> to vector<8x16xbf16>
    %cst_238 = arith.constant dense<0.000000e+00> : vector<4x16xf32>
    %542 = tpu.matmul %539, %541, %cst_238 {dimension_numbers = #tpu.dot_dimension_numbers<[1], [0], [0], [1], [0, 0, 1, 1], [], []>} : vector<4x8xbf16>, vector<8x16xbf16>, vector<4x16xf32> -> vector<4x16xf32>
    %543 = arith.addf %538, %542 : vector<4x16xf32>
    %544 = vector.extract_strided_slice %533 {offsets = [8, 0], sizes = [4, 8], strides = [1, 1]} : vector<12x8xbf16> to vector<4x8xbf16>
    %545 = vector.extract_strided_slice %526 {offsets = [2, 0, 0], sizes = [1, 8, 16], strides = [1, 1, 1]} : vector<9x8x16xbf16> to vector<1x8x16xbf16>
    %546 = vector.shape_cast %545 : vector<1x8x16xbf16> to vector<8x16xbf16>
    %cst_239 = arith.constant dense<0.000000e+00> : vector<4x16xf32>
    %547 = tpu.matmul %544, %546, %cst_239 {dimension_numbers = #tpu.dot_dimension_numbers<[1], [0], [0], [1], [0, 0, 1, 1], [], []>} : vector<4x8xbf16>, vector<8x16xbf16>, vector<4x16xf32> -> vector<4x16xf32>
    %548 = arith.addf %543, %547 : vector<4x16xf32>
    %c1_240 = arith.constant 1 : index
    %c0_241 = arith.constant 0 : index
    %c0_242 = arith.constant 0 : index
    %549 = vector.load %arg9[%c1_240, %c0_241, %c0_242] : memref<10x10x8xf32, #tpu.memory_space<vmem>>, vector<1x10x8xf32>
    %550 = vector.shape_cast %549 : vector<1x10x8xf32> to vector<10x8xf32>
    %551 = arith.truncf %550 : vector<10x8xf32> to vector<10x8xbf16>
    %cst_243 = arith.constant dense<0.000000e+00> : vector<12x8xf32>
    %552 = tpu.matmul %525, %551, %cst_243 {dimension_numbers = #tpu.dot_dimension_numbers<[1], [0], [0], [1], [0, 0, 1, 1], [], []>} : vector<12x10xbf16>, vector<10x8xbf16>, vector<12x8xf32> -> vector<12x8xf32>
    %553 = arith.truncf %552 : vector<12x8xf32> to vector<12x8xbf16>
    %554 = vector.extract_strided_slice %553 {offsets = [0, 0], sizes = [4, 8], strides = [1, 1]} : vector<12x8xbf16> to vector<4x8xbf16>
    %555 = vector.extract_strided_slice %526 {offsets = [3, 0, 0], sizes = [1, 8, 16], strides = [1, 1, 1]} : vector<9x8x16xbf16> to vector<1x8x16xbf16>
    %556 = vector.shape_cast %555 : vector<1x8x16xbf16> to vector<8x16xbf16>
    %cst_244 = arith.constant dense<0.000000e+00> : vector<4x16xf32>
    %557 = tpu.matmul %554, %556, %cst_244 {dimension_numbers = #tpu.dot_dimension_numbers<[1], [0], [0], [1], [0, 0, 1, 1], [], []>} : vector<4x8xbf16>, vector<8x16xbf16>, vector<4x16xf32> -> vector<4x16xf32>
    %558 = arith.addf %548, %557 : vector<4x16xf32>
    %559 = vector.extract_strided_slice %553 {offsets = [4, 0], sizes = [4, 8], strides = [1, 1]} : vector<12x8xbf16> to vector<4x8xbf16>
    %560 = vector.extract_strided_slice %526 {offsets = [4, 0, 0], sizes = [1, 8, 16], strides = [1, 1, 1]} : vector<9x8x16xbf16> to vector<1x8x16xbf16>
    %561 = vector.shape_cast %560 : vector<1x8x16xbf16> to vector<8x16xbf16>
    %cst_245 = arith.constant dense<0.000000e+00> : vector<4x16xf32>
    %562 = tpu.matmul %559, %561, %cst_245 {dimension_numbers = #tpu.dot_dimension_numbers<[1], [0], [0], [1], [0, 0, 1, 1], [], []>} : vector<4x8xbf16>, vector<8x16xbf16>, vector<4x16xf32> -> vector<4x16xf32>
    %563 = arith.addf %558, %562 : vector<4x16xf32>
    %564 = vector.extract_strided_slice %553 {offsets = [8, 0], sizes = [4, 8], strides = [1, 1]} : vector<12x8xbf16> to vector<4x8xbf16>
    %565 = vector.extract_strided_slice %526 {offsets = [5, 0, 0], sizes = [1, 8, 16], strides = [1, 1, 1]} : vector<9x8x16xbf16> to vector<1x8x16xbf16>
    %566 = vector.shape_cast %565 : vector<1x8x16xbf16> to vector<8x16xbf16>
    %cst_246 = arith.constant dense<0.000000e+00> : vector<4x16xf32>
    %567 = tpu.matmul %564, %566, %cst_246 {dimension_numbers = #tpu.dot_dimension_numbers<[1], [0], [0], [1], [0, 0, 1, 1], [], []>} : vector<4x8xbf16>, vector<8x16xbf16>, vector<4x16xf32> -> vector<4x16xf32>
    %568 = arith.addf %563, %567 : vector<4x16xf32>
    %c2_247 = arith.constant 2 : index
    %c0_248 = arith.constant 0 : index
    %c0_249 = arith.constant 0 : index
    %569 = vector.load %arg9[%c2_247, %c0_248, %c0_249] : memref<10x10x8xf32, #tpu.memory_space<vmem>>, vector<1x10x8xf32>
    %570 = vector.shape_cast %569 : vector<1x10x8xf32> to vector<10x8xf32>
    %571 = arith.truncf %570 : vector<10x8xf32> to vector<10x8xbf16>
    %cst_250 = arith.constant dense<0.000000e+00> : vector<12x8xf32>
    %572 = tpu.matmul %525, %571, %cst_250 {dimension_numbers = #tpu.dot_dimension_numbers<[1], [0], [0], [1], [0, 0, 1, 1], [], []>} : vector<12x10xbf16>, vector<10x8xbf16>, vector<12x8xf32> -> vector<12x8xf32>
    %573 = arith.truncf %572 : vector<12x8xf32> to vector<12x8xbf16>
    %574 = vector.extract_strided_slice %573 {offsets = [0, 0], sizes = [4, 8], strides = [1, 1]} : vector<12x8xbf16> to vector<4x8xbf16>
    %575 = vector.extract_strided_slice %526 {offsets = [6, 0, 0], sizes = [1, 8, 16], strides = [1, 1, 1]} : vector<9x8x16xbf16> to vector<1x8x16xbf16>
    %576 = vector.shape_cast %575 : vector<1x8x16xbf16> to vector<8x16xbf16>
    %cst_251 = arith.constant dense<0.000000e+00> : vector<4x16xf32>
    %577 = tpu.matmul %574, %576, %cst_251 {dimension_numbers = #tpu.dot_dimension_numbers<[1], [0], [0], [1], [0, 0, 1, 1], [], []>} : vector<4x8xbf16>, vector<8x16xbf16>, vector<4x16xf32> -> vector<4x16xf32>
    %578 = arith.addf %568, %577 : vector<4x16xf32>
    %579 = vector.extract_strided_slice %573 {offsets = [4, 0], sizes = [4, 8], strides = [1, 1]} : vector<12x8xbf16> to vector<4x8xbf16>
    %580 = vector.extract_strided_slice %526 {offsets = [7, 0, 0], sizes = [1, 8, 16], strides = [1, 1, 1]} : vector<9x8x16xbf16> to vector<1x8x16xbf16>
    %581 = vector.shape_cast %580 : vector<1x8x16xbf16> to vector<8x16xbf16>
    %cst_252 = arith.constant dense<0.000000e+00> : vector<4x16xf32>
    %582 = tpu.matmul %579, %581, %cst_252 {dimension_numbers = #tpu.dot_dimension_numbers<[1], [0], [0], [1], [0, 0, 1, 1], [], []>} : vector<4x8xbf16>, vector<8x16xbf16>, vector<4x16xf32> -> vector<4x16xf32>
    %583 = arith.addf %578, %582 : vector<4x16xf32>
    %584 = vector.extract_strided_slice %573 {offsets = [8, 0], sizes = [4, 8], strides = [1, 1]} : vector<12x8xbf16> to vector<4x8xbf16>
    %585 = vector.extract_strided_slice %526 {offsets = [8, 0, 0], sizes = [1, 8, 16], strides = [1, 1, 1]} : vector<9x8x16xbf16> to vector<1x8x16xbf16>
    %586 = vector.shape_cast %585 : vector<1x8x16xbf16> to vector<8x16xbf16>
    %cst_253 = arith.constant dense<0.000000e+00> : vector<4x16xf32>
    %587 = tpu.matmul %584, %586, %cst_253 {dimension_numbers = #tpu.dot_dimension_numbers<[1], [0], [0], [1], [0, 0, 1, 1], [], []>} : vector<4x8xbf16>, vector<8x16xbf16>, vector<4x16xf32> -> vector<4x16xf32>
    %588 = arith.addf %583, %587 : vector<4x16xf32>
    %589 = vector.broadcast %527 : vector<1x16xf32> to vector<4x16xf32>
    %590 = arith.addf %588, %589 : vector<4x16xf32>
    %cst_254 = arith.constant 0.000000e+00 : f32
    %591 = vector.broadcast %cst_254 : f32 to vector<4x16xf32>
    %592 = arith.maximumf %590, %591 : vector<4x16xf32>
    %c0_255 = arith.constant 0 : index
    %c0_256 = arith.constant 0 : index
    %c0_257 = arith.constant 0 : index
    %c0_258 = arith.constant 0 : index
    %593 = vector.load %arg8[%c0_255, %c0_256, %c0_257, %c0_258] : memref<1x4x4x16xf32, #tpu.memory_space<vmem>>, vector<1x1x4x16xf32>
    %594 = vector.shape_cast %593 : vector<1x1x4x16xf32> to vector<4x16xf32>
    %595 = vector.shape_cast %592 : vector<4x16xf32> to vector<1x1x4x16xf32>
    tpu.vector_store %arg8[%c0_255, %c0_256, %c0_257, %c0_258], %595 {strides = array<i32>} : memref<1x4x4x16xf32, #tpu.memory_space<vmem>>, vector<1x1x4x16xf32>,
    %cst_259 = arith.constant 0.000000e+00 : f32
    %596 = vector.broadcast %cst_259 : f32 to vector<4x16xf32>
    %c2_260 = arith.constant 2 : index
    %c0_261 = arith.constant 0 : index
    %c0_262 = arith.constant 0 : index
    %597 = vector.load %arg9[%c2_260, %c0_261, %c0_262] : memref<10x10x8xf32, #tpu.memory_space<vmem>>, vector<1x10x8xf32>
    %598 = vector.shape_cast %597 : vector<1x10x8xf32> to vector<10x8xf32>
    %599 = arith.truncf %598 : vector<10x8xf32> to vector<10x8xbf16>
    %cst_263 = arith.constant dense<0.000000e+00> : vector<12x8xf32>
    %600 = tpu.matmul %525, %599, %cst_263 {dimension_numbers = #tpu.dot_dimension_numbers<[1], [0], [0], [1], [0, 0, 1, 1], [], []>} : vector<12x10xbf16>, vector<10x8xbf16>, vector<12x8xf32> -> vector<12x8xf32>
    %601 = arith.truncf %600 : vector<12x8xf32> to vector<12x8xbf16>
    %602 = vector.extract_strided_slice %601 {offsets = [0, 0], sizes = [4, 8], strides = [1, 1]} : vector<12x8xbf16> to vector<4x8xbf16>
    %603 = vector.extract_strided_slice %526 {offsets = [0, 0, 0], sizes = [1, 8, 16], strides = [1, 1, 1]} : vector<9x8x16xbf16> to vector<1x8x16xbf16>
    %604 = vector.shape_cast %603 : vector<1x8x16xbf16> to vector<8x16xbf16>
    %cst_264 = arith.constant dense<0.000000e+00> : vector<4x16xf32>
    %605 = tpu.matmul %602, %604, %cst_264 {dimension_numbers = #tpu.dot_dimension_numbers<[1], [0], [0], [1], [0, 0, 1, 1], [], []>} : vector<4x8xbf16>, vector<8x16xbf16>, vector<4x16xf32> -> vector<4x16xf32>
    %606 = arith.addf %596, %605 : vector<4x16xf32>
    %607 = vector.extract_strided_slice %601 {offsets = [4, 0], sizes = [4, 8], strides = [1, 1]} : vector<12x8xbf16> to vector<4x8xbf16>
    %608 = vector.extract_strided_slice %526 {offsets = [1, 0, 0], sizes = [1, 8, 16], strides = [1, 1, 1]} : vector<9x8x16xbf16> to vector<1x8x16xbf16>
    %609 = vector.shape_cast %608 : vector<1x8x16xbf16> to vector<8x16xbf16>
    %cst_265 = arith.constant dense<0.000000e+00> : vector<4x16xf32>
    %610 = tpu.matmul %607, %609, %cst_265 {dimension_numbers = #tpu.dot_dimension_numbers<[1], [0], [0], [1], [0, 0, 1, 1], [], []>} : vector<4x8xbf16>, vector<8x16xbf16>, vector<4x16xf32> -> vector<4x16xf32>
    %611 = arith.addf %606, %610 : vector<4x16xf32>
    %612 = vector.extract_strided_slice %601 {offsets = [8, 0], sizes = [4, 8], strides = [1, 1]} : vector<12x8xbf16> to vector<4x8xbf16>
    %613 = vector.extract_strided_slice %526 {offsets = [2, 0, 0], sizes = [1, 8, 16], strides = [1, 1, 1]} : vector<9x8x16xbf16> to vector<1x8x16xbf16>
    %614 = vector.shape_cast %613 : vector<1x8x16xbf16> to vector<8x16xbf16>
    %cst_266 = arith.constant dense<0.000000e+00> : vector<4x16xf32>
    %615 = tpu.matmul %612, %614, %cst_266 {dimension_numbers = #tpu.dot_dimension_numbers<[1], [0], [0], [1], [0, 0, 1, 1], [], []>} : vector<4x8xbf16>, vector<8x16xbf16>, vector<4x16xf32> -> vector<4x16xf32>
    %616 = arith.addf %611, %615 : vector<4x16xf32>
    %c3_267 = arith.constant 3 : index
    %c0_268 = arith.constant 0 : index
    %c0_269 = arith.constant 0 : index
    %617 = vector.load %arg9[%c3_267, %c0_268, %c0_269] : memref<10x10x8xf32, #tpu.memory_space<vmem>>, vector<1x10x8xf32>
    %618 = vector.shape_cast %617 : vector<1x10x8xf32> to vector<10x8xf32>
    %619 = arith.truncf %618 : vector<10x8xf32> to vector<10x8xbf16>
    %cst_270 = arith.constant dense<0.000000e+00> : vector<12x8xf32>
    %620 = tpu.matmul %525, %619, %cst_270 {dimension_numbers = #tpu.dot_dimension_numbers<[1], [0], [0], [1], [0, 0, 1, 1], [], []>} : vector<12x10xbf16>, vector<10x8xbf16>, vector<12x8xf32> -> vector<12x8xf32>
    %621 = arith.truncf %620 : vector<12x8xf32> to vector<12x8xbf16>
    %622 = vector.extract_strided_slice %621 {offsets = [0, 0], sizes = [4, 8], strides = [1, 1]} : vector<12x8xbf16> to vector<4x8xbf16>
    %623 = vector.extract_strided_slice %526 {offsets = [3, 0, 0], sizes = [1, 8, 16], strides = [1, 1, 1]} : vector<9x8x16xbf16> to vector<1x8x16xbf16>
    %624 = vector.shape_cast %623 : vector<1x8x16xbf16> to vector<8x16xbf16>
    %cst_271 = arith.constant dense<0.000000e+00> : vector<4x16xf32>
    %625 = tpu.matmul %622, %624, %cst_271 {dimension_numbers = #tpu.dot_dimension_numbers<[1], [0], [0], [1], [0, 0, 1, 1], [], []>} : vector<4x8xbf16>, vector<8x16xbf16>, vector<4x16xf32> -> vector<4x16xf32>
    %626 = arith.addf %616, %625 : vector<4x16xf32>
    %627 = vector.extract_strided_slice %621 {offsets = [4, 0], sizes = [4, 8], strides = [1, 1]} : vector<12x8xbf16> to vector<4x8xbf16>
    %628 = vector.extract_strided_slice %526 {offsets = [4, 0, 0], sizes = [1, 8, 16], strides = [1, 1, 1]} : vector<9x8x16xbf16> to vector<1x8x16xbf16>
    %629 = vector.shape_cast %628 : vector<1x8x16xbf16> to vector<8x16xbf16>
    %cst_272 = arith.constant dense<0.000000e+00> : vector<4x16xf32>
    %630 = tpu.matmul %627, %629, %cst_272 {dimension_numbers = #tpu.dot_dimension_numbers<[1], [0], [0], [1], [0, 0, 1, 1], [], []>} : vector<4x8xbf16>, vector<8x16xbf16>, vector<4x16xf32> -> vector<4x16xf32>
    %631 = arith.addf %626, %630 : vector<4x16xf32>
    %632 = vector.extract_strided_slice %621 {offsets = [8, 0], sizes = [4, 8], strides = [1, 1]} : vector<12x8xbf16> to vector<4x8xbf16>
    %633 = vector.extract_strided_slice %526 {offsets = [5, 0, 0], sizes = [1, 8, 16], strides = [1, 1, 1]} : vector<9x8x16xbf16> to vector<1x8x16xbf16>
    %634 = vector.shape_cast %633 : vector<1x8x16xbf16> to vector<8x16xbf16>
    %cst_273 = arith.constant dense<0.000000e+00> : vector<4x16xf32>
    %635 = tpu.matmul %632, %634, %cst_273 {dimension_numbers = #tpu.dot_dimension_numbers<[1], [0], [0], [1], [0, 0, 1, 1], [], []>} : vector<4x8xbf16>, vector<8x16xbf16>, vector<4x16xf32> -> vector<4x16xf32>
    %636 = arith.addf %631, %635 : vector<4x16xf32>
    %c4_274 = arith.constant 4 : index
    %c0_275 = arith.constant 0 : index
    %c0_276 = arith.constant 0 : index
    %637 = vector.load %arg9[%c4_274, %c0_275, %c0_276] : memref<10x10x8xf32, #tpu.memory_space<vmem>>, vector<1x10x8xf32>
    %638 = vector.shape_cast %637 : vector<1x10x8xf32> to vector<10x8xf32>
    %639 = arith.truncf %638 : vector<10x8xf32> to vector<10x8xbf16>
    %cst_277 = arith.constant dense<0.000000e+00> : vector<12x8xf32>
    %640 = tpu.matmul %525, %639, %cst_277 {dimension_numbers = #tpu.dot_dimension_numbers<[1], [0], [0], [1], [0, 0, 1, 1], [], []>} : vector<12x10xbf16>, vector<10x8xbf16>, vector<12x8xf32> -> vector<12x8xf32>
    %641 = arith.truncf %640 : vector<12x8xf32> to vector<12x8xbf16>
    %642 = vector.extract_strided_slice %641 {offsets = [0, 0], sizes = [4, 8], strides = [1, 1]} : vector<12x8xbf16> to vector<4x8xbf16>
    %643 = vector.extract_strided_slice %526 {offsets = [6, 0, 0], sizes = [1, 8, 16], strides = [1, 1, 1]} : vector<9x8x16xbf16> to vector<1x8x16xbf16>
    %644 = vector.shape_cast %643 : vector<1x8x16xbf16> to vector<8x16xbf16>
    %cst_278 = arith.constant dense<0.000000e+00> : vector<4x16xf32>
    %645 = tpu.matmul %642, %644, %cst_278 {dimension_numbers = #tpu.dot_dimension_numbers<[1], [0], [0], [1], [0, 0, 1, 1], [], []>} : vector<4x8xbf16>, vector<8x16xbf16>, vector<4x16xf32> -> vector<4x16xf32>
    %646 = arith.addf %636, %645 : vector<4x16xf32>
    %647 = vector.extract_strided_slice %641 {offsets = [4, 0], sizes = [4, 8], strides = [1, 1]} : vector<12x8xbf16> to vector<4x8xbf16>
    %648 = vector.extract_strided_slice %526 {offsets = [7, 0, 0], sizes = [1, 8, 16], strides = [1, 1, 1]} : vector<9x8x16xbf16> to vector<1x8x16xbf16>
    %649 = vector.shape_cast %648 : vector<1x8x16xbf16> to vector<8x16xbf16>
    %cst_279 = arith.constant dense<0.000000e+00> : vector<4x16xf32>
    %650 = tpu.matmul %647, %649, %cst_279 {dimension_numbers = #tpu.dot_dimension_numbers<[1], [0], [0], [1], [0, 0, 1, 1], [], []>} : vector<4x8xbf16>, vector<8x16xbf16>, vector<4x16xf32> -> vector<4x16xf32>
    %651 = arith.addf %646, %650 : vector<4x16xf32>
    %652 = vector.extract_strided_slice %641 {offsets = [8, 0], sizes = [4, 8], strides = [1, 1]} : vector<12x8xbf16> to vector<4x8xbf16>
    %653 = vector.extract_strided_slice %526 {offsets = [8, 0, 0], sizes = [1, 8, 16], strides = [1, 1, 1]} : vector<9x8x16xbf16> to vector<1x8x16xbf16>
    %654 = vector.shape_cast %653 : vector<1x8x16xbf16> to vector<8x16xbf16>
    %cst_280 = arith.constant dense<0.000000e+00> : vector<4x16xf32>
    %655 = tpu.matmul %652, %654, %cst_280 {dimension_numbers = #tpu.dot_dimension_numbers<[1], [0], [0], [1], [0, 0, 1, 1], [], []>} : vector<4x8xbf16>, vector<8x16xbf16>, vector<4x16xf32> -> vector<4x16xf32>
    %656 = arith.addf %651, %655 : vector<4x16xf32>
    %657 = vector.broadcast %527 : vector<1x16xf32> to vector<4x16xf32>
    %658 = arith.addf %656, %657 : vector<4x16xf32>
    %cst_281 = arith.constant 0.000000e+00 : f32
    %659 = vector.broadcast %cst_281 : f32 to vector<4x16xf32>
    %660 = arith.maximumf %658, %659 : vector<4x16xf32>
    %c0_282 = arith.constant 0 : index
    %c1_283 = arith.constant 1 : index
    %c0_284 = arith.constant 0 : index
    %c0_285 = arith.constant 0 : index
    %661 = vector.load %arg8[%c0_282, %c1_283, %c0_284, %c0_285] : memref<1x4x4x16xf32, #tpu.memory_space<vmem>>, vector<1x1x4x16xf32>
    %662 = vector.shape_cast %661 : vector<1x1x4x16xf32> to vector<4x16xf32>
    %663 = vector.shape_cast %660 : vector<4x16xf32> to vector<1x1x4x16xf32>
    tpu.vector_store %arg8[%c0_282, %c1_283, %c0_284, %c0_285], %663 {strides = array<i32>} : memref<1x4x4x16xf32, #tpu.memory_space<vmem>>, vector<1x1x4x16xf32>,
    %cst_286 = arith.constant 0.000000e+00 : f32
    %664 = vector.broadcast %cst_286 : f32 to vector<4x16xf32>
    %c4_287 = arith.constant 4 : index
    %c0_288 = arith.constant 0 : index
    %c0_289 = arith.constant 0 : index
    %665 = vector.load %arg9[%c4_287, %c0_288, %c0_289] : memref<10x10x8xf32, #tpu.memory_space<vmem>>, vector<1x10x8xf32>
    %666 = vector.shape_cast %665 : vector<1x10x8xf32> to vector<10x8xf32>
    %667 = arith.truncf %666 : vector<10x8xf32> to vector<10x8xbf16>
    %cst_290 = arith.constant dense<0.000000e+00> : vector<12x8xf32>
    %668 = tpu.matmul %525, %667, %cst_290 {dimension_numbers = #tpu.dot_dimension_numbers<[1], [0], [0], [1], [0, 0, 1, 1], [], []>} : vector<12x10xbf16>, vector<10x8xbf16>, vector<12x8xf32> -> vector<12x8xf32>
    %669 = arith.truncf %668 : vector<12x8xf32> to vector<12x8xbf16>
    %670 = vector.extract_strided_slice %669 {offsets = [0, 0], sizes = [4, 8], strides = [1, 1]} : vector<12x8xbf16> to vector<4x8xbf16>
    %671 = vector.extract_strided_slice %526 {offsets = [0, 0, 0], sizes = [1, 8, 16], strides = [1, 1, 1]} : vector<9x8x16xbf16> to vector<1x8x16xbf16>
    %672 = vector.shape_cast %671 : vector<1x8x16xbf16> to vector<8x16xbf16>
    %cst_291 = arith.constant dense<0.000000e+00> : vector<4x16xf32>
    %673 = tpu.matmul %670, %672, %cst_291 {dimension_numbers = #tpu.dot_dimension_numbers<[1], [0], [0], [1], [0, 0, 1, 1], [], []>} : vector<4x8xbf16>, vector<8x16xbf16>, vector<4x16xf32> -> vector<4x16xf32>
    %674 = arith.addf %664, %673 : vector<4x16xf32>
    %675 = vector.extract_strided_slice %669 {offsets = [4, 0], sizes = [4, 8], strides = [1, 1]} : vector<12x8xbf16> to vector<4x8xbf16>
    %676 = vector.extract_strided_slice %526 {offsets = [1, 0, 0], sizes = [1, 8, 16], strides = [1, 1, 1]} : vector<9x8x16xbf16> to vector<1x8x16xbf16>
    %677 = vector.shape_cast %676 : vector<1x8x16xbf16> to vector<8x16xbf16>
    %cst_292 = arith.constant dense<0.000000e+00> : vector<4x16xf32>
    %678 = tpu.matmul %675, %677, %cst_292 {dimension_numbers = #tpu.dot_dimension_numbers<[1], [0], [0], [1], [0, 0, 1, 1], [], []>} : vector<4x8xbf16>, vector<8x16xbf16>, vector<4x16xf32> -> vector<4x16xf32>
    %679 = arith.addf %674, %678 : vector<4x16xf32>
    %680 = vector.extract_strided_slice %669 {offsets = [8, 0], sizes = [4, 8], strides = [1, 1]} : vector<12x8xbf16> to vector<4x8xbf16>
    %681 = vector.extract_strided_slice %526 {offsets = [2, 0, 0], sizes = [1, 8, 16], strides = [1, 1, 1]} : vector<9x8x16xbf16> to vector<1x8x16xbf16>
    %682 = vector.shape_cast %681 : vector<1x8x16xbf16> to vector<8x16xbf16>
    %cst_293 = arith.constant dense<0.000000e+00> : vector<4x16xf32>
    %683 = tpu.matmul %680, %682, %cst_293 {dimension_numbers = #tpu.dot_dimension_numbers<[1], [0], [0], [1], [0, 0, 1, 1], [], []>} : vector<4x8xbf16>, vector<8x16xbf16>, vector<4x16xf32> -> vector<4x16xf32>
    %684 = arith.addf %679, %683 : vector<4x16xf32>
    %c5_294 = arith.constant 5 : index
    %c0_295 = arith.constant 0 : index
    %c0_296 = arith.constant 0 : index
    %685 = vector.load %arg9[%c5_294, %c0_295, %c0_296] : memref<10x10x8xf32, #tpu.memory_space<vmem>>, vector<1x10x8xf32>
    %686 = vector.shape_cast %685 : vector<1x10x8xf32> to vector<10x8xf32>
    %687 = arith.truncf %686 : vector<10x8xf32> to vector<10x8xbf16>
    %cst_297 = arith.constant dense<0.000000e+00> : vector<12x8xf32>
    %688 = tpu.matmul %525, %687, %cst_297 {dimension_numbers = #tpu.dot_dimension_numbers<[1], [0], [0], [1], [0, 0, 1, 1], [], []>} : vector<12x10xbf16>, vector<10x8xbf16>, vector<12x8xf32> -> vector<12x8xf32>
    %689 = arith.truncf %688 : vector<12x8xf32> to vector<12x8xbf16>
    %690 = vector.extract_strided_slice %689 {offsets = [0, 0], sizes = [4, 8], strides = [1, 1]} : vector<12x8xbf16> to vector<4x8xbf16>
    %691 = vector.extract_strided_slice %526 {offsets = [3, 0, 0], sizes = [1, 8, 16], strides = [1, 1, 1]} : vector<9x8x16xbf16> to vector<1x8x16xbf16>
    %692 = vector.shape_cast %691 : vector<1x8x16xbf16> to vector<8x16xbf16>
    %cst_298 = arith.constant dense<0.000000e+00> : vector<4x16xf32>
    %693 = tpu.matmul %690, %692, %cst_298 {dimension_numbers = #tpu.dot_dimension_numbers<[1], [0], [0], [1], [0, 0, 1, 1], [], []>} : vector<4x8xbf16>, vector<8x16xbf16>, vector<4x16xf32> -> vector<4x16xf32>
    %694 = arith.addf %684, %693 : vector<4x16xf32>
    %695 = vector.extract_strided_slice %689 {offsets = [4, 0], sizes = [4, 8], strides = [1, 1]} : vector<12x8xbf16> to vector<4x8xbf16>
    %696 = vector.extract_strided_slice %526 {offsets = [4, 0, 0], sizes = [1, 8, 16], strides = [1, 1, 1]} : vector<9x8x16xbf16> to vector<1x8x16xbf16>
    %697 = vector.shape_cast %696 : vector<1x8x16xbf16> to vector<8x16xbf16>
    %cst_299 = arith.constant dense<0.000000e+00> : vector<4x16xf32>
    %698 = tpu.matmul %695, %697, %cst_299 {dimension_numbers = #tpu.dot_dimension_numbers<[1], [0], [0], [1], [0, 0, 1, 1], [], []>} : vector<4x8xbf16>, vector<8x16xbf16>, vector<4x16xf32> -> vector<4x16xf32>
    %699 = arith.addf %694, %698 : vector<4x16xf32>
    %700 = vector.extract_strided_slice %689 {offsets = [8, 0], sizes = [4, 8], strides = [1, 1]} : vector<12x8xbf16> to vector<4x8xbf16>
    %701 = vector.extract_strided_slice %526 {offsets = [5, 0, 0], sizes = [1, 8, 16], strides = [1, 1, 1]} : vector<9x8x16xbf16> to vector<1x8x16xbf16>
    %702 = vector.shape_cast %701 : vector<1x8x16xbf16> to vector<8x16xbf16>
    %cst_300 = arith.constant dense<0.000000e+00> : vector<4x16xf32>
    %703 = tpu.matmul %700, %702, %cst_300 {dimension_numbers = #tpu.dot_dimension_numbers<[1], [0], [0], [1], [0, 0, 1, 1], [], []>} : vector<4x8xbf16>, vector<8x16xbf16>, vector<4x16xf32> -> vector<4x16xf32>
    %704 = arith.addf %699, %703 : vector<4x16xf32>
    %c6_301 = arith.constant 6 : index
    %c0_302 = arith.constant 0 : index
    %c0_303 = arith.constant 0 : index
    %705 = vector.load %arg9[%c6_301, %c0_302, %c0_303] : memref<10x10x8xf32, #tpu.memory_space<vmem>>, vector<1x10x8xf32>
    %706 = vector.shape_cast %705 : vector<1x10x8xf32> to vector<10x8xf32>
    %707 = arith.truncf %706 : vector<10x8xf32> to vector<10x8xbf16>
    %cst_304 = arith.constant dense<0.000000e+00> : vector<12x8xf32>
    %708 = tpu.matmul %525, %707, %cst_304 {dimension_numbers = #tpu.dot_dimension_numbers<[1], [0], [0], [1], [0, 0, 1, 1], [], []>} : vector<12x10xbf16>, vector<10x8xbf16>, vector<12x8xf32> -> vector<12x8xf32>
    %709 = arith.truncf %708 : vector<12x8xf32> to vector<12x8xbf16>
    %710 = vector.extract_strided_slice %709 {offsets = [0, 0], sizes = [4, 8], strides = [1, 1]} : vector<12x8xbf16> to vector<4x8xbf16>
    %711 = vector.extract_strided_slice %526 {offsets = [6, 0, 0], sizes = [1, 8, 16], strides = [1, 1, 1]} : vector<9x8x16xbf16> to vector<1x8x16xbf16>
    %712 = vector.shape_cast %711 : vector<1x8x16xbf16> to vector<8x16xbf16>
    %cst_305 = arith.constant dense<0.000000e+00> : vector<4x16xf32>
    %713 = tpu.matmul %710, %712, %cst_305 {dimension_numbers = #tpu.dot_dimension_numbers<[1], [0], [0], [1], [0, 0, 1, 1], [], []>} : vector<4x8xbf16>, vector<8x16xbf16>, vector<4x16xf32> -> vector<4x16xf32>
    %714 = arith.addf %704, %713 : vector<4x16xf32>
    %715 = vector.extract_strided_slice %709 {offsets = [4, 0], sizes = [4, 8], strides = [1, 1]} : vector<12x8xbf16> to vector<4x8xbf16>
    %716 = vector.extract_strided_slice %526 {offsets = [7, 0, 0], sizes = [1, 8, 16], strides = [1, 1, 1]} : vector<9x8x16xbf16> to vector<1x8x16xbf16>
    %717 = vector.shape_cast %716 : vector<1x8x16xbf16> to vector<8x16xbf16>
    %cst_306 = arith.constant dense<0.000000e+00> : vector<4x16xf32>
    %718 = tpu.matmul %715, %717, %cst_306 {dimension_numbers = #tpu.dot_dimension_numbers<[1], [0], [0], [1], [0, 0, 1, 1], [], []>} : vector<4x8xbf16>, vector<8x16xbf16>, vector<4x16xf32> -> vector<4x16xf32>
    %719 = arith.addf %714, %718 : vector<4x16xf32>
    %720 = vector.extract_strided_slice %709 {offsets = [8, 0], sizes = [4, 8], strides = [1, 1]} : vector<12x8xbf16> to vector<4x8xbf16>
    %721 = vector.extract_strided_slice %526 {offsets = [8, 0, 0], sizes = [1, 8, 16], strides = [1, 1, 1]} : vector<9x8x16xbf16> to vector<1x8x16xbf16>
    %722 = vector.shape_cast %721 : vector<1x8x16xbf16> to vector<8x16xbf16>
    %cst_307 = arith.constant dense<0.000000e+00> : vector<4x16xf32>
    %723 = tpu.matmul %720, %722, %cst_307 {dimension_numbers = #tpu.dot_dimension_numbers<[1], [0], [0], [1], [0, 0, 1, 1], [], []>} : vector<4x8xbf16>, vector<8x16xbf16>, vector<4x16xf32> -> vector<4x16xf32>
    %724 = arith.addf %719, %723 : vector<4x16xf32>
    %725 = vector.broadcast %527 : vector<1x16xf32> to vector<4x16xf32>
    %726 = arith.addf %724, %725 : vector<4x16xf32>
    %cst_308 = arith.constant 0.000000e+00 : f32
    %727 = vector.broadcast %cst_308 : f32 to vector<4x16xf32>
    %728 = arith.maximumf %726, %727 : vector<4x16xf32>
    %c0_309 = arith.constant 0 : index
    %c2_310 = arith.constant 2 : index
    %c0_311 = arith.constant 0 : index
    %c0_312 = arith.constant 0 : index
    %729 = vector.load %arg8[%c0_309, %c2_310, %c0_311, %c0_312] : memref<1x4x4x16xf32, #tpu.memory_space<vmem>>, vector<1x1x4x16xf32>
    %730 = vector.shape_cast %729 : vector<1x1x4x16xf32> to vector<4x16xf32>
    %731 = vector.shape_cast %728 : vector<4x16xf32> to vector<1x1x4x16xf32>
    tpu.vector_store %arg8[%c0_309, %c2_310, %c0_311, %c0_312], %731 {strides = array<i32>} : memref<1x4x4x16xf32, #tpu.memory_space<vmem>>, vector<1x1x4x16xf32>,
    %cst_313 = arith.constant 0.000000e+00 : f32
    %732 = vector.broadcast %cst_313 : f32 to vector<4x16xf32>
    %c6_314 = arith.constant 6 : index
    %c0_315 = arith.constant 0 : index
    %c0_316 = arith.constant 0 : index
    %733 = vector.load %arg9[%c6_314, %c0_315, %c0_316] : memref<10x10x8xf32, #tpu.memory_space<vmem>>, vector<1x10x8xf32>
    %734 = vector.shape_cast %733 : vector<1x10x8xf32> to vector<10x8xf32>
    %735 = arith.truncf %734 : vector<10x8xf32> to vector<10x8xbf16>
    %cst_317 = arith.constant dense<0.000000e+00> : vector<12x8xf32>
    %736 = tpu.matmul %525, %735, %cst_317 {dimension_numbers = #tpu.dot_dimension_numbers<[1], [0], [0], [1], [0, 0, 1, 1], [], []>} : vector<12x10xbf16>, vector<10x8xbf16>, vector<12x8xf32> -> vector<12x8xf32>
    %737 = arith.truncf %736 : vector<12x8xf32> to vector<12x8xbf16>
    %738 = vector.extract_strided_slice %737 {offsets = [0, 0], sizes = [4, 8], strides = [1, 1]} : vector<12x8xbf16> to vector<4x8xbf16>
    %739 = vector.extract_strided_slice %526 {offsets = [0, 0, 0], sizes = [1, 8, 16], strides = [1, 1, 1]} : vector<9x8x16xbf16> to vector<1x8x16xbf16>
    %740 = vector.shape_cast %739 : vector<1x8x16xbf16> to vector<8x16xbf16>
    %cst_318 = arith.constant dense<0.000000e+00> : vector<4x16xf32>
    %741 = tpu.matmul %738, %740, %cst_318 {dimension_numbers = #tpu.dot_dimension_numbers<[1], [0], [0], [1], [0, 0, 1, 1], [], []>} : vector<4x8xbf16>, vector<8x16xbf16>, vector<4x16xf32> -> vector<4x16xf32>
    %742 = arith.addf %732, %741 : vector<4x16xf32>
    %743 = vector.extract_strided_slice %737 {offsets = [4, 0], sizes = [4, 8], strides = [1, 1]} : vector<12x8xbf16> to vector<4x8xbf16>
    %744 = vector.extract_strided_slice %526 {offsets = [1, 0, 0], sizes = [1, 8, 16], strides = [1, 1, 1]} : vector<9x8x16xbf16> to vector<1x8x16xbf16>
    %745 = vector.shape_cast %744 : vector<1x8x16xbf16> to vector<8x16xbf16>
    %cst_319 = arith.constant dense<0.000000e+00> : vector<4x16xf32>
    %746 = tpu.matmul %743, %745, %cst_319 {dimension_numbers = #tpu.dot_dimension_numbers<[1], [0], [0], [1], [0, 0, 1, 1], [], []>} : vector<4x8xbf16>, vector<8x16xbf16>, vector<4x16xf32> -> vector<4x16xf32>
    %747 = arith.addf %742, %746 : vector<4x16xf32>
    %748 = vector.extract_strided_slice %737 {offsets = [8, 0], sizes = [4, 8], strides = [1, 1]} : vector<12x8xbf16> to vector<4x8xbf16>
    %749 = vector.extract_strided_slice %526 {offsets = [2, 0, 0], sizes = [1, 8, 16], strides = [1, 1, 1]} : vector<9x8x16xbf16> to vector<1x8x16xbf16>
    %750 = vector.shape_cast %749 : vector<1x8x16xbf16> to vector<8x16xbf16>
    %cst_320 = arith.constant dense<0.000000e+00> : vector<4x16xf32>
    %751 = tpu.matmul %748, %750, %cst_320 {dimension_numbers = #tpu.dot_dimension_numbers<[1], [0], [0], [1], [0, 0, 1, 1], [], []>} : vector<4x8xbf16>, vector<8x16xbf16>, vector<4x16xf32> -> vector<4x16xf32>
    %752 = arith.addf %747, %751 : vector<4x16xf32>
    %c7_321 = arith.constant 7 : index
    %c0_322 = arith.constant 0 : index
    %c0_323 = arith.constant 0 : index
    %753 = vector.load %arg9[%c7_321, %c0_322, %c0_323] : memref<10x10x8xf32, #tpu.memory_space<vmem>>, vector<1x10x8xf32>
    %754 = vector.shape_cast %753 : vector<1x10x8xf32> to vector<10x8xf32>
    %755 = arith.truncf %754 : vector<10x8xf32> to vector<10x8xbf16>
    %cst_324 = arith.constant dense<0.000000e+00> : vector<12x8xf32>
    %756 = tpu.matmul %525, %755, %cst_324 {dimension_numbers = #tpu.dot_dimension_numbers<[1], [0], [0], [1], [0, 0, 1, 1], [], []>} : vector<12x10xbf16>, vector<10x8xbf16>, vector<12x8xf32> -> vector<12x8xf32>
    %757 = arith.truncf %756 : vector<12x8xf32> to vector<12x8xbf16>
    %758 = vector.extract_strided_slice %757 {offsets = [0, 0], sizes = [4, 8], strides = [1, 1]} : vector<12x8xbf16> to vector<4x8xbf16>
    %759 = vector.extract_strided_slice %526 {offsets = [3, 0, 0], sizes = [1, 8, 16], strides = [1, 1, 1]} : vector<9x8x16xbf16> to vector<1x8x16xbf16>
    %760 = vector.shape_cast %759 : vector<1x8x16xbf16> to vector<8x16xbf16>
    %cst_325 = arith.constant dense<0.000000e+00> : vector<4x16xf32>
    %761 = tpu.matmul %758, %760, %cst_325 {dimension_numbers = #tpu.dot_dimension_numbers<[1], [0], [0], [1], [0, 0, 1, 1], [], []>} : vector<4x8xbf16>, vector<8x16xbf16>, vector<4x16xf32> -> vector<4x16xf32>
    %762 = arith.addf %752, %761 : vector<4x16xf32>
    %763 = vector.extract_strided_slice %757 {offsets = [4, 0], sizes = [4, 8], strides = [1, 1]} : vector<12x8xbf16> to vector<4x8xbf16>
    %764 = vector.extract_strided_slice %526 {offsets = [4, 0, 0], sizes = [1, 8, 16], strides = [1, 1, 1]} : vector<9x8x16xbf16> to vector<1x8x16xbf16>
    %765 = vector.shape_cast %764 : vector<1x8x16xbf16> to vector<8x16xbf16>
    %cst_326 = arith.constant dense<0.000000e+00> : vector<4x16xf32>
    %766 = tpu.matmul %763, %765, %cst_326 {dimension_numbers = #tpu.dot_dimension_numbers<[1], [0], [0], [1], [0, 0, 1, 1], [], []>} : vector<4x8xbf16>, vector<8x16xbf16>, vector<4x16xf32> -> vector<4x16xf32>
    %767 = arith.addf %762, %766 : vector<4x16xf32>
    %768 = vector.extract_strided_slice %757 {offsets = [8, 0], sizes = [4, 8], strides = [1, 1]} : vector<12x8xbf16> to vector<4x8xbf16>
    %769 = vector.extract_strided_slice %526 {offsets = [5, 0, 0], sizes = [1, 8, 16], strides = [1, 1, 1]} : vector<9x8x16xbf16> to vector<1x8x16xbf16>
    %770 = vector.shape_cast %769 : vector<1x8x16xbf16> to vector<8x16xbf16>
    %cst_327 = arith.constant dense<0.000000e+00> : vector<4x16xf32>
    %771 = tpu.matmul %768, %770, %cst_327 {dimension_numbers = #tpu.dot_dimension_numbers<[1], [0], [0], [1], [0, 0, 1, 1], [], []>} : vector<4x8xbf16>, vector<8x16xbf16>, vector<4x16xf32> -> vector<4x16xf32>
    %772 = arith.addf %767, %771 : vector<4x16xf32>
    %c8_328 = arith.constant 8 : index
    %c0_329 = arith.constant 0 : index
    %c0_330 = arith.constant 0 : index
    %773 = vector.load %arg9[%c8_328, %c0_329, %c0_330] : memref<10x10x8xf32, #tpu.memory_space<vmem>>, vector<1x10x8xf32>
    %774 = vector.shape_cast %773 : vector<1x10x8xf32> to vector<10x8xf32>
    %775 = arith.truncf %774 : vector<10x8xf32> to vector<10x8xbf16>
    %cst_331 = arith.constant dense<0.000000e+00> : vector<12x8xf32>
    %776 = tpu.matmul %525, %775, %cst_331 {dimension_numbers = #tpu.dot_dimension_numbers<[1], [0], [0], [1], [0, 0, 1, 1], [], []>} : vector<12x10xbf16>, vector<10x8xbf16>, vector<12x8xf32> -> vector<12x8xf32>
    %777 = arith.truncf %776 : vector<12x8xf32> to vector<12x8xbf16>
    %778 = vector.extract_strided_slice %777 {offsets = [0, 0], sizes = [4, 8], strides = [1, 1]} : vector<12x8xbf16> to vector<4x8xbf16>
    %779 = vector.extract_strided_slice %526 {offsets = [6, 0, 0], sizes = [1, 8, 16], strides = [1, 1, 1]} : vector<9x8x16xbf16> to vector<1x8x16xbf16>
    %780 = vector.shape_cast %779 : vector<1x8x16xbf16> to vector<8x16xbf16>
    %cst_332 = arith.constant dense<0.000000e+00> : vector<4x16xf32>
    %781 = tpu.matmul %778, %780, %cst_332 {dimension_numbers = #tpu.dot_dimension_numbers<[1], [0], [0], [1], [0, 0, 1, 1], [], []>} : vector<4x8xbf16>, vector<8x16xbf16>, vector<4x16xf32> -> vector<4x16xf32>
    %782 = arith.addf %772, %781 : vector<4x16xf32>
    %783 = vector.extract_strided_slice %777 {offsets = [4, 0], sizes = [4, 8], strides = [1, 1]} : vector<12x8xbf16> to vector<4x8xbf16>
    %784 = vector.extract_strided_slice %526 {offsets = [7, 0, 0], sizes = [1, 8, 16], strides = [1, 1, 1]} : vector<9x8x16xbf16> to vector<1x8x16xbf16>
    %785 = vector.shape_cast %784 : vector<1x8x16xbf16> to vector<8x16xbf16>
    %cst_333 = arith.constant dense<0.000000e+00> : vector<4x16xf32>
    %786 = tpu.matmul %783, %785, %cst_333 {dimension_numbers = #tpu.dot_dimension_numbers<[1], [0], [0], [1], [0, 0, 1, 1], [], []>} : vector<4x8xbf16>, vector<8x16xbf16>, vector<4x16xf32> -> vector<4x16xf32>
    %787 = arith.addf %782, %786 : vector<4x16xf32>
    %788 = vector.extract_strided_slice %777 {offsets = [8, 0], sizes = [4, 8], strides = [1, 1]} : vector<12x8xbf16> to vector<4x8xbf16>
    %789 = vector.extract_strided_slice %526 {offsets = [8, 0, 0], sizes = [1, 8, 16], strides = [1, 1, 1]} : vector<9x8x16xbf16> to vector<1x8x16xbf16>
    %790 = vector.shape_cast %789 : vector<1x8x16xbf16> to vector<8x16xbf16>
    %cst_334 = arith.constant dense<0.000000e+00> : vector<4x16xf32>
    %791 = tpu.matmul %788, %790, %cst_334 {dimension_numbers = #tpu.dot_dimension_numbers<[1], [0], [0], [1], [0, 0, 1, 1], [], []>} : vector<4x8xbf16>, vector<8x16xbf16>, vector<4x16xf32> -> vector<4x16xf32>
    %792 = arith.addf %787, %791 : vector<4x16xf32>
    %793 = vector.broadcast %527 : vector<1x16xf32> to vector<4x16xf32>
    %794 = arith.addf %792, %793 : vector<4x16xf32>
    %cst_335 = arith.constant 0.000000e+00 : f32
    %795 = vector.broadcast %cst_335 : f32 to vector<4x16xf32>
    %796 = arith.maximumf %794, %795 : vector<4x16xf32>
    %c0_336 = arith.constant 0 : index
    %c3_337 = arith.constant 3 : index
    %c0_338 = arith.constant 0 : index
    %c0_339 = arith.constant 0 : index
    %797 = vector.load %arg8[%c0_336, %c3_337, %c0_338, %c0_339] : memref<1x4x4x16xf32, #tpu.memory_space<vmem>>, vector<1x1x4x16xf32>
    %798 = vector.shape_cast %797 : vector<1x1x4x16xf32> to vector<4x16xf32>
    %799 = vector.shape_cast %796 : vector<4x16xf32> to vector<1x1x4x16xf32>
    tpu.vector_store %arg8[%c0_336, %c3_337, %c0_338, %c0_339], %799 {strides = array<i32>} : memref<1x4x4x16xf32, #tpu.memory_space<vmem>>, vector<1x1x4x16xf32>,
    return
  }
  func.func @transform_0(%arg0: i32) -> (i32, i32, i32, i32) {
    %c0_i32 = arith.constant 0 : i32
    %c0_i32_0 = arith.constant 0 : i32
    %c0_i32_1 = arith.constant 0 : i32
    %c0_i32_2 = arith.constant 0 : i32
    return %arg0, %c0_i32, %c0_i32_0, %c0_i32_1 : i32, i32, i32, i32
  }
  func.func @transform_1(%arg0: i32) -> (i32, i32) {
    %c0_i32 = arith.constant 0 : i32
    %c0_i32_0 = arith.constant 0 : i32
    %c0_i32_1 = arith.constant 0 : i32
    return %c0_i32, %c0_i32_0 : i32, i32
  }
  func.func @transform_2(%arg0: i32) -> (i32, i32, i32) {
    %c0_i32 = arith.constant 0 : i32
    %c0_i32_0 = arith.constant 0 : i32
    %c0_i32_1 = arith.constant 0 : i32
    %c0_i32_2 = arith.constant 0 : i32
    return %c0_i32, %c0_i32_0, %c0_i32_1 : i32, i32, i32
  }
  func.func @transform_3(%arg0: i32) -> (i32, i32) {
    %c0_i32 = arith.constant 0 : i32
    %c0_i32_0 = arith.constant 0 : i32
    %c0_i32_1 = arith.constant 0 : i32
    return %c0_i32, %c0_i32_0 : i32, i32
  }
  func.func @transform_4(%arg0: i32) -> (i32, i32) {
    %c0_i32 = arith.constant 0 : i32
    %c0_i32_0 = arith.constant 0 : i32
    %c0_i32_1 = arith.constant 0 : i32
    return %c0_i32, %c0_i32_0 : i32, i32
  }
  func.func @transform_5(%arg0: i32) -> (i32, i32, i32) {
    %c0_i32 = arith.constant 0 : i32
    %c0_i32_0 = arith.constant 0 : i32
    %c0_i32_1 = arith.constant 0 : i32
    %c0_i32_2 = arith.constant 0 : i32
    return %c0_i32, %c0_i32_0, %c0_i32_1 : i32, i32, i32
  }
  func.func @transform_6(%arg0: i32) -> (i32, i32) {
    %c0_i32 = arith.constant 0 : i32
    %c0_i32_0 = arith.constant 0 : i32
    %c0_i32_1 = arith.constant 0 : i32
    return %c0_i32, %c0_i32_0 : i32, i32
  }
  func.func @transform_7(%arg0: i32) -> (i32, i32, i32, i32) {
    %c0_i32 = arith.constant 0 : i32
    %c0_i32_0 = arith.constant 0 : i32
    %c0_i32_1 = arith.constant 0 : i32
    %c0_i32_2 = arith.constant 0 : i32
    return %arg0, %c0_i32, %c0_i32_0, %c0_i32_1 : i32, i32, i32, i32
  }
}

</mosaic_0001>

<bundles_post_ra>
// kernel: image_encoder_forward.1
= control target key start
LH: loop header
LB: loop body
LE: loop exit
PB: predicated region body
PF: predicated region fallthrough
CT: control target
= control target key end

     0   :  { %s9182_s24 = smov 0   ;;  %s10229_s0 = inlined_call_operand.vmem [shape: bf16[2,18,18,4], index: 0, kind: input, shape index: {}]   ;;  %s10230_s1 = inlined_call_operand.vmem [shape: bf16[24,18], index: 1, kind: input, shape index: {}]   ;;  %s10231_s2 = inlined_call_operand.vmem [shape: bf16[9,4,8], index: 2, kind: input, shape index: {}]   ;;  %s10232_s3 = inlined_call_operand.vmem [shape: f32[1,8], index: 3, kind: input, shape index: {}]   ;;  %s10233_s4 = inlined_call_operand.vmem [shape: bf16[12,10], index: 4, kind: input, shape index: {}]   ;;  %s10234_s5 = inlined_call_operand.vmem [shape: bf16[9,8,16], index: 5, kind: input, shape index: {}]   ;;  %s10235_s6 = inlined_call_operand.vmem [shape: f32[1,16], index: 6, kind: input, shape index: {}]   ;;  %s10236_s7 = inlined_call_operand.vmem [shape: f32[2,4,4,16], index: 7, kind: output, shape index: {}]  }
   0x1 LB: > { %s7489_s25 = sadd.s32 4294967295, %s9138_s24   ;;  %p7493_p0 = scmp.ge.s32.totalorder %s9138_s24, 1  ;;  %s9138_s24 = sphi %s9182_s24, %s17_s24  }
   0x2   : > { %p237_p1 = scmp.lt.s32.totalorder %s9138_s24, 3 }
   0x4   : > { %p238_p2 = pnand %p7493_p0, %p237_p1 }
   0x5   : > { %p269_p3 = scmp.lt.s32.totalorder (!%p238_p2), %s7489_s25, 1  ;;  %v9193_v0 = vld [vmem:[%s10230_s1] sm:$0xff] (!%p238_p2)   ;;  %vm335_vm0 = vcmask (!%p238_p2), 146432   ;;  %v9140_v1 = vmov (!%p238_p2), 0.0   ;;  %vm342_vm1 = vcmask (!%p238_p2), 1040384   ;;  %vm402_vm2 = vcmask (!%p238_p2), 1041408  }
   0x6   : > { %241 = sbr.rel (%p238_p2) target bundleno = 8389 (0x20c5), region = 48  ;;  %8133 = vmatprep.mubr.msk.bf16.mxu0 (!%p238_p2), %vm335_vm0, %v9193_v0  ;;  %8137 = vmatprep.subr.bf16.mxu1 (!%p238_p2), %v9140_v1  ;;  %v9213_v5 = vld [vmem:[%s10230_s1 + $0x8] ss:$0 sps:$4 sm:$0xff] (!%p238_p2)   ;;  %v285_v6 = vld [vmem:[%s10231_s2 + $0x4] sm:$0x3] (!%p238_p2)  ;;  %vm9141_vm3 = vmmov (!%p238_p2), 0  }
   0x7   : > { %v9222_v7 = vsel (!%p238_p2), %vm402_vm2, %v285_v6, 0  ;;  %8139 = vmatprep.mubr.msk.bf16.mxu1 (!%p238_p2), %vm9141_vm3, %v9140_v1  ;;  %v284_v8 = vld [vmem:[%s10231_s2 + $0x2] sm:$0x3] (!%p238_p2)  ;;  %vm398_vm4 = vcmask (!%p238_p2), 31744   ;;  %v283_v15 = vld [vmem:[%s10231_s2] sm:$0x3] (!%p238_p2) }
   0x8   : > { %v9234_v9 = vsel (!%p238_p2), %vm402_vm2, %v284_v8, 0  ;;  %v9245_v18 = vsel (!%p238_p2), %vm402_vm2, %v283_v15, 0  ;;  %v287_v22 = vld [vmem:[%s10231_s2 + $0x8] sm:$0x3] (!%p238_p2)  ;;  %v286_v23 = vld [vmem:[%s10231_s2 + $0x6] sm:$0x3] (!%p238_p2) }
   0x9   : > { %8138 = vmatpush3.bf16.msra.mxu1 (!%p238_p2), %v9234_v9  ;;  %v9270_v24 = vsel (!%p238_p2), %vm402_vm2, %v287_v22, 0  ;;  %v9273_v25 = vsel (!%p238_p2), %vm402_vm2, %v286_v23, 0  ;;  %v288_v43 = vld [vmem:[%s10231_s2 + $0xa] sm:$0x3] (!%p238_p2)  ;;  %v290_v52 = vld [vmem:[%s10231_s2 + $0xe] sm:$0x3] (!%p238_p2) }
   0xa   : > { %8143 = vmatprep.subr.bf16.mxu1 (!%p238_p2), %v9140_v1  ;;  %v9283_v47 = vsel (!%p238_p2), %vm402_vm2, %v288_v43, 0  ;;  %v289_v53 = vld [vmem:[%s10231_s2 + $0xc] sm:$0x3] (!%p238_p2)  ;;  %v9311_v54 = vsel (!%p238_p2), %vm402_vm2, %v290_v52, 0  ;;  %v291_v15 = vld [vmem:[%s10231_s2 + $0x10] sm:$0x3] (!%p238_p2) }
   0xb   : > { %v9314_v55 = vsel (!%p238_p2), %vm402_vm2, %v289_v53, 0  ;;  %vm293_vm5 = vcmask (!%p238_p2), 64512   ;;  %vm295_vm6 = vcmask (!%p238_p2), 58368   ;;  %vm5198_vm7 = vcmask (!%p238_p2), 1044480  }
   0xc   : > { %297 = vst.msk [vmem:[#allocation2 + $0x10] sm:$0xff] (!%p238_p2), %vm293_vm5, %v9140_v1  ;;  %294 = vst.msk [vmem:[#allocation2] sm:$0xff] (!%p238_p2), %vm293_vm5, %v9140_v1  ;;  %vm5194_vm8 = vcmask (!%p238_p2), 80896   ;;  %vm5249_vm9 = vcmask (!%p238_p2), 1043456   ;;  %vm5779_vm10 = vcmask (!%p238_p2), 125952  }
   0xd   : > { %s10238_s25 = smov (!%p269_p3, %s7489_s25), 1  ;;  %298 = vst.msk [vmem:[#allocation2 + $0x18] sm:$0x3] %vm295_vm6, %v9140_v1  ;;  %296 = vst.msk [vmem:[#allocation2 + $0x8] sm:$0x3] %vm295_vm6, %v9140_v1 }
   0xe   : > { %s9065_s28 = smul.u32 216, %s10238_s25  ;;  %299 = vst.msk [vmem:[#allocation2 + $0x20] sm:$0xff] %vm293_vm5, %v9140_v1  ;;  %301 = vst.msk [vmem:[#allocation2 + $0x30] sm:$0xff] %vm293_vm5, %v9140_v1  ;;  %s7792_s21 = sshll.u32 %s10238_s25, 4 }
   0xf   : > { %300 = vst.msk [vmem:[#allocation2 + $0x28] sm:$0x3] %vm295_vm6, %v9140_v1  ;;  %302 = vst.msk [vmem:[#allocation2 + $0x38] sm:$0x3] %vm295_vm6, %v9140_v1  ;;  %s10040_s26 = scalar_lea.vmem %s10236_s7, %s7792_s21 }
  0x10   : > { %s9204_s8 = scalar_lea.vmem %s10229_s0, %s9065_s28  ;;  %303 = vst.msk [vmem:[#allocation2 + $0x40] sm:$0xff] %vm293_vm5, %v9140_v1  ;;  %305 = vst.msk [vmem:[#allocation2 + $0x50] sm:$0xff] %vm293_vm5, %v9140_v1 }
  0x11   : > { %v9076_v2 = vld [vmem:[%s9204_s8] sm:$0xff]   ;;  %v9077_v3 = vld [vmem:[%s9204_s8 + $0x8] ss:$0 sps:$4 sm:$0x11]   ;;  %v9080_v19 = vld [vmem:[%s9204_s8 + $0xc] sm:$0xff]   ;;  %307 = vst.msk [vmem:[#allocation2 + $0x60] sm:$0xff] %vm293_vm5, %v9140_v1 }
  0x12   : > { %8129 = vmatprep.subr.bf16.mxu0 %v9076_v2  ;;  %v344_v4 = vsel %vm342_vm1, %v9077_v3, 0  ;;  %v9081_v20 = vld [vmem:[%s9204_s8 + $0x14] ss:$0 sps:$4 sm:$0x11]   ;;  %v9082_v26 = vld [vmem:[%s9204_s8 + $0x18] sm:$0xff]   ;;  %309 = vst.msk [vmem:[#allocation2 + $0x70] sm:$0xff] %vm293_vm5, %v9140_v1 }
  0x13   : > { %8130 = vmatpush3.bf16.msra.mxu0 %v9076_v2  ;;  %v553_v21 = vsel %vm342_vm1, %v9081_v20, 0  ;;  %v9083_v49 = vld [vmem:[%s9204_s8 + $0x20] ss:$0 sps:$4 sm:$0x11]   ;;  %v9084_v56 = vld [vmem:[%s9204_s8 + $0x18] sm:$0xff]   ;;  %311 = vst.msk [vmem:[#allocation2 + $0x80] sm:$0xff] %vm293_vm5, %v9140_v1 }
  0x14   : > { %9041 = vmatprep.subr.msk.bf16.mxu0 %vm342_vm1, %v9077_v3  ;;  %v762_v50 = vsel %vm342_vm1, %v9083_v49, 0  ;;  %v9085_v22 = vld [vmem:[%s9204_s8 + $0x20] ss:$0 sps:$4 sm:$0x11]   ;;  %304 = vst.msk [vmem:[#allocation2 + $0x48] sm:$0x3] %vm295_vm6, %v9140_v1 }
  0x15   : > { %v980_v23 = vsel %vm342_vm1, %v9085_v22, 0  ;;  %306 = vst.msk [vmem:[#allocation2 + $0x58] sm:$0x3] %vm295_vm6, %v9140_v1  ;;  %308 = vst.msk [vmem:[#allocation2 + $0x68] sm:$0x3] %vm295_vm6, %v9140_v1 }
  0x16   : > { %310 = vst.msk [vmem:[#allocation2 + $0x78] sm:$0x3] %vm295_vm6, %v9140_v1  ;;  %312 = vst.msk [vmem:[#allocation2 + $0x88] sm:$0x3] %vm295_vm6, %v9140_v1 }
  0x17   : > { %8132 = vmatpush3.bf16.msra.mxu0 %v344_v4  ;;  %v9087_v52 = vld [vmem:[%s9204_s8 + $0x2c] ss:$0 sps:$4 sm:$0x11]  }
  0x18   : > { %8149 = vmatprep.subr.bf16.mxu0 %v9140_v1 }
  0x1a   : > { %8134 = vmatmul.mubr.msk.bf16.vlgmr.msra.gmra.mrb[0].mxu0 %vm335_vm0, %v9213_v5 }
  0x1b   : > { %8150 = vmatpush3.bf16.msra.mxu0 %v9222_v7  ;;  %8151 = vmatprep.mubr.msk.bf16.mxu0 %vm9141_vm3, %v9140_v1 }
  0x1c   : > { %8163 = vmatprep.subr.bf16.mxu0 %v9140_v1 }
  0xed   : > { %v8135_v10 = vpop.f32.mrb[0].mxu0 }
  0xee   : > { %v395_v11 = vpack.c.bf16 %v8135_v10, %v8135_v10  ;;  %v380_v12 = vpop.f32.mrb[1].mxu0 }
  0xef   : > { %v8136_v13 = vpop.f32.mrb[2].mxu0 }
  0xf0   : > { %v383_v14 = vpop.f32.mrb[3].mxu0  ;;  %8152 = vmatmul.mubr.msk.bf16.vlgmr.msra.gmra.mrb[4].mxu0 %vm398_vm4, %v395_v11 }
  0xf1   : > { %v394_v16 = vpack.c.bf16 %v383_v14, %v380_v12  ;;  %8165 = vmatprep.mubr.msk.bf16.mxu0 %vm9141_vm3, %v9140_v1  ;;  %8164 = vmatpush3.bf16.msra.mxu0 %v9273_v25 }
  0xf2   : > { %8175 = vmatprep.subr.bf16.mxu0 %v9140_v1 }
  0xf3   : > { %v397_v17 = vrot.slane %v394_v16, 4 }
  0xf5   : > { %8140 = vmatmul.mubr.msk.bf16.vlgmr.msra.gmra.mrb[0].mxu1 %vm398_vm4, %v397_v17 }
  0xf6   : > { %8144 = vmatpush3.bf16.msra.mxu1 %v9245_v18  ;;  %8145 = vmatprep.mubr.msk.bf16.mxu1 %vm9141_vm3, %v9140_v1 }
  0xf7   : > { %8155 = vmatprep.subr.bf16.mxu1 %v9080_v19 }
  0xfd   : > { %8146 = vmatmul.mubr.msk.bf16.vlgmr.msra.gmra.mrb[4].mxu1 %vm398_vm4, %v394_v16 }
  0xfe   : > { %8156 = vmatpush3.bf16.msra.mxu1 %v9080_v19  ;;  %8159 = vmatprep.mubr.msk.bf16.mxu1 %vm335_vm0, %v9193_v0 }
  0xff   : > { %9042 = vmatprep.subr.msk.bf16.mxu1 %vm342_vm1, %v9081_v20  ;;  %v9324_v20 = vsel %vm402_vm2, %v291_v15, 0 }
 0x102   : > { %8158 = vmatpush3.bf16.msra.mxu1 %v553_v21 }
 0x103   : > { %8169 = vmatprep.subr.bf16.mxu1 %v9140_v1 }
 0x105   : > { %8160 = vmatmul.mubr.msk.bf16.vlgmr.msra.gmra.mrb[8].mxu1 %vm335_vm0, %v9213_v5 }
 0x106   : > { %8171 = vmatprep.mubr.msk.bf16.mxu1 %vm9141_vm3, %v9140_v1  ;;  %8170 = vmatpush3.bf16.msra.mxu1 %v9270_v24 }
 0x107   : > { %8181 = vmatprep.subr.bf16.mxu1 %v9082_v26 }
 0x1c3   : > { %v532_v27 = vpop.f32.mrb[4].mxu0 }
 0x1c4   : > { %v8153_v28 = vpop.f32.mrb[5].mxu0 }
 0x1c5   : > { %v535_v29 = vpop.f32.mrb[6].mxu0 }
 0x1c6   : > { %v8154_v30 = vpop.f32.mrb[7].mxu0 }
 0x1c8   : > { %v440_v31 = vpop.f32.mrb[0].mxu1 }
 0x1c9   : > { %v8141_v32 = vpop.f32.mrb[1].mxu1 }
 0x1ca   : > { %v443_v33 = vpop.f32.mrb[2].mxu1 }
 0x1cb   : > { %v8142_v34 = vpop.f32.mrb[3].mxu1 }
 0x1d0   : > { %v486_v35 = vpop.f32.mrb[4].mxu1 }
 0x1d1   : > { %v487_v36 = vadd.f32 %v486_v35, %v440_v31  ;;  %v8147_v37 = vpop.f32.mrb[5].mxu1 }
 0x1d2   : > { %v489_v38 = vpop.f32.mrb[6].mxu1 }
 0x1d3   : > { %v8148_v39 = vpop.f32.mrb[7].mxu1  ;;  %v538_v40 = vadd.f32 %v532_v27, %v487_v36  ;;  %v9086_v27 = vld [vmem:[%s9204_s8 + $0x24] sm:$0xff]   ;;  %v9388_v38 = vld [vmem:[%s10232_s3] ss:$0 sm:$0xff] }
 0x1d8   : > { %v8161_v41 = vpop.f32.mrb[8].mxu1 }
 0x1d9   : > { %v589_v42 = vpop.f32.mrb[9].mxu1  ;;  %v604_v51 = vpack.c.bf16 %v8161_v41, %v8161_v41 }
 0x1da   : > { %v8162_v44 = vpop.f32.mrb[10].mxu1 }
 0x1db   : > { %v592_v45 = vpop.f32.mrb[11].mxu1 }
 0x1dc   : > { %v603_v46 = vpack.c.bf16 %v592_v45, %v589_v42 }
 0x1de   : > { %v653_v48 = vrot.slane %v603_v46, 4  ;;  %8166 = vmatmul.mubr.msk.bf16.vlgmr.msra.gmra.mrb[8].mxu0 %vm398_vm4, %v603_v46 }
 0x1df   : > { %8176 = vmatpush3.bf16.msra.mxu0 %v9283_v47  ;;  %8177 = vmatprep.mubr.msk.bf16.mxu0 %vm9141_vm3, %v9140_v1 }
 0x1e0   : > { %8172 = vmatmul.mubr.msk.bf16.vlgmr.msra.gmra.mrb[12].mxu1 %vm398_vm4, %v653_v48  ;;  %8189 = vmatprep.subr.bf16.mxu0 %v9140_v1 }
 0x1e1   : > { %8182 = vmatpush3.bf16.msra.mxu1 %v9082_v26  ;;  %8185 = vmatprep.mubr.msk.bf16.mxu1 %vm335_vm0, %v9193_v0 }
 0x1e2   : > { %9043 = vmatprep.subr.msk.bf16.mxu1 %vm342_vm1, %v9083_v49 }
 0x1e5   : > { %8184 = vmatpush3.bf16.msra.mxu1 %v762_v50 }
 0x1e6   : > { %8178 = vmatmul.mubr.msk.bf16.vlgmr.msra.gmra.mrb[12].mxu0 %vm398_vm4, %v604_v51  ;;  %8195 = vmatprep.subr.bf16.mxu1 %v9140_v1 }
 0x1e7   : > { %8191 = vmatprep.mubr.msk.bf16.mxu0 %vm9141_vm3, %v9140_v1  ;;  %8190 = vmatpush3.bf16.msra.mxu0 %v9314_v55 }
 0x1e8   : > { %8186 = vmatmul.mubr.msk.bf16.vlgmr.msra.gmra.mrb[16].mxu1 %vm335_vm0, %v9213_v5  ;;  %8201 = vmatprep.subr.bf16.mxu0 %v9140_v1 }
 0x1e9   : > { %8197 = vmatprep.mubr.msk.bf16.mxu1 %vm9141_vm3, %v9140_v1  ;;  %8196 = vmatpush3.bf16.msra.mxu1 %v9311_v54 }
 0x1ea   : > { %8207 = vmatprep.subr.bf16.mxu1 %v9084_v56 }
 0x2b1   : > { %v645_v57 = vpop.f32.mrb[8].mxu0 }
 0x2b2   : > { %v651_v58 = vadd.f32 %v645_v57, %v538_v40  ;;  %v8167_v59 = vpop.f32.mrb[9].mxu0 }
 0x2b3   : > { %v648_v60 = vpop.f32.mrb[10].mxu0  ;;  %v694_v61 = vpop.f32.mrb[12].mxu1 }
 0x2b4   : > { %v700_v62 = vadd.f32 %v694_v61, %v651_v58  ;;  %v8168_v63 = vpop.f32.mrb[11].mxu0  ;;  %v8173_v2 = vpop.f32.mrb[13].mxu1  ;;  %v9088_v58 = vld [vmem:[%s9204_s8 + $0x30] sm:$0xff]  }
 0x2b5   : > { %v697_v3 = vpop.f32.mrb[14].mxu1 }
 0x2b6   : > { %v8174_v4 = vpop.f32.mrb[15].mxu1 }
 0x2b9   : > { %v741_v6 = vpop.f32.mrb[12].mxu0 }
 0x2ba   : > { %v747_v8 = vadd.f32 %v741_v6, %v700_v62  ;;  %v8179_v10 = vpop.f32.mrb[13].mxu0 }
 0x2bb   : > { %v744_v11 = vpop.f32.mrb[14].mxu0  ;;  %v8187_v12 = vpop.f32.mrb[16].mxu1 }
 0x2bc   : > { %v8180_v13 = vpop.f32.mrb[15].mxu0  ;;  %v798_v14 = vpop.f32.mrb[17].mxu1  ;;  %v813_v26 = vpack.c.bf16 %v8187_v12, %v8187_v12 }
 0x2bd   : > { %v8188_v16 = vpop.f32.mrb[18].mxu1 }
 0x2be   : > { %v801_v17 = vpop.f32.mrb[19].mxu1 }
 0x2bf   : > { %v812_v19 = vpack.c.bf16 %v801_v17, %v798_v14 }
 0x2c1   : > { %v862_v21 = vrot.slane %v812_v19, 4  ;;  %8192 = vmatmul.mubr.msk.bf16.vlgmr.msra.gmra.mrb[16].mxu0 %vm398_vm4, %v812_v19 }
 0x2c2   : > { %8202 = vmatpush3.bf16.msra.mxu0 %v9324_v20  ;;  %8203 = vmatprep.mubr.msk.bf16.mxu0 %vm9141_vm3, %v9140_v1 }
 0x2c3   : > { %8198 = vmatmul.mubr.msk.bf16.vlgmr.msra.gmra.mrb[20].mxu1 %vm398_vm4, %v862_v21  ;;  %8215 = vmatprep.subr.bf16.mxu0 %v9140_v1 }
 0x2c4   : > { %8208 = vmatpush3.bf16.msra.mxu1 %v9084_v56  ;;  %8211 = vmatprep.mubr.msk.bf16.mxu1 %vm335_vm0, %v9193_v0  ;;  %v1178_v56 = vsel %vm342_vm1, %v9087_v52, 0 }
 0x2c5   : > { %9044 = vmatprep.subr.msk.bf16.mxu1 %vm342_vm1, %v9085_v22  ;;  %v9089_v22 = vld [vmem:[%s9204_s8 + $0x38] ss:$0 sps:$4 sm:$0x11]  }
 0x2c8   : > { %8210 = vmatpush3.bf16.msra.mxu1 %v980_v23  ;;  %v1378_v23 = vsel %vm342_vm1, %v9089_v22, 0 }
 0x2c9   : > { %8204 = vmatmul.mubr.msk.bf16.vlgmr.msra.gmra.mrb[20].mxu0 %vm398_vm4, %v813_v26  ;;  %8221 = vmatprep.subr.bf16.mxu1 %v9140_v1 }
 0x2ca   : > { %8216 = vmatpush3.bf16.msra.mxu0 %v9234_v9  ;;  %8217 = vmatprep.mubr.msk.bf16.mxu0 %vm9141_vm3, %v9140_v1 }
 0x2cb   : > { %8212 = vmatmul.mubr.msk.bf16.vlgmr.msra.gmra.mrb[24].mxu1 %vm335_vm0, %v9213_v5  ;;  %8227 = vmatprep.subr.bf16.mxu0 %v9140_v1 }
 0x2cc   : > { %8222 = vmatpush3.bf16.msra.mxu1 %v9245_v18  ;;  %8223 = vmatprep.mubr.msk.bf16.mxu1 %vm9141_vm3, %v9140_v1 }
 0x2cd   : > { %8233 = vmatprep.subr.bf16.mxu1 %v9086_v27 }
 0x394   : > { %v854_v28 = vpop.f32.mrb[16].mxu0 }
 0x395   : > { %v860_v29 = vadd.f32 %v854_v28, %v747_v8  ;;  %v8193_v30 = vpop.f32.mrb[17].mxu0 }
 0x396   : > { %v857_v31 = vpop.f32.mrb[18].mxu0  ;;  %v903_v32 = vpop.f32.mrb[20].mxu1 }
 0x397   : > { %v909_v33 = vadd.f32 %v903_v32, %v860_v29  ;;  %v8194_v34 = vpop.f32.mrb[19].mxu0  ;;  %v8199_v35 = vpop.f32.mrb[21].mxu1 }
 0x398   : > { %v906_v36 = vpop.f32.mrb[22].mxu1 }
 0x399   : > { %v8200_v37 = vpop.f32.mrb[23].mxu1 }
 0x39c   : > { %v950_v39 = vpop.f32.mrb[20].mxu0 }
 0x39d   : > { %v956_v40 = vadd.f32 %v950_v39, %v909_v33  ;;  %v8205_v41 = vpop.f32.mrb[21].mxu0 }
 0x39e   : > { %v953_v42 = vpop.f32.mrb[22].mxu0  ;;  %v8213_v43 = vpop.f32.mrb[24].mxu1 }
 0x39f   : > { %v963_v44 = vadd.f32 %v9388_v38, %v956_v40  ;;  %v8206_v45 = vpop.f32.mrb[23].mxu0  ;;  %v1016_v46 = vpop.f32.mrb[25].mxu1  ;;  %v1031_v57 = vpack.c.bf16 %v8213_v43, %v8213_v43 }
 0x3a0   : > { %v8214_v48 = vpop.f32.mrb[26].mxu1 }
 0x3a1   : > { %v964_v49 = vmax.f32 %v963_v44, 0.0  ;;  %v1019_v50 = vpop.f32.mrb[27].mxu1 }
 0x3a2   : > { %v1030_v51 = vpack.c.bf16 %v1019_v50, %v1016_v46 }
 0x3a3   : > { %966 = vst.msk [vmem:[#allocation2 + $0x11] sm:$0xff] %vm293_vm5, %v964_v49 }
 0x3a4   : > { %v1033_v53 = vrot.slane %v1030_v51, 4  ;;  %8224 = vmatmul.mubr.msk.bf16.vlgmr.msra.gmra.mrb[28].mxu1 %vm398_vm4, %v1030_v51  ;;  %v9091_v51 = vld [vmem:[%s9204_s8 + $0x38] ss:$0 sps:$4 sm:$0x11]  }
 0x3a5   : > { %8234 = vmatpush3.bf16.msra.mxu1 %v9086_v27  ;;  %8237 = vmatprep.mubr.msk.bf16.mxu1 %vm335_vm0, %v9193_v0  ;;  %v9090_v27 = vld [vmem:[%s9204_s8 + $0x30] sm:$0xff]  }
 0x3a6   : > { %8218 = vmatmul.mubr.msk.bf16.vlgmr.msra.gmra.mrb[24].mxu0 %vm398_vm4, %v1033_v53  ;;  %9045 = vmatprep.subr.msk.bf16.mxu1 %vm342_vm1, %v9087_v52  ;;  %v1581_v52 = vsel %vm342_vm1, %v9091_v51, 0 }
 0x3a7   : > { %8228 = vmatpush3.bf16.msra.mxu0 %v9222_v7  ;;  %8229 = vmatprep.mubr.msk.bf16.mxu0 %vm9141_vm3, %v9140_v1 }
 0x3a8   : > { %8241 = vmatprep.subr.bf16.mxu0 %v9140_v1 }
 0x3a9   : > { %8236 = vmatpush3.bf16.msra.mxu1 %v1178_v56  ;;  %v9092_v56 = vld [vmem:[%s9204_s8 + $0x3c] sm:$0xff]  }
 0x3aa   : > { %8247 = vmatprep.subr.bf16.mxu1 %v9140_v1 }
 0x3ac   : > { %8238 = vmatmul.mubr.msk.bf16.vlgmr.msra.gmra.mrb[32].mxu1 %vm335_vm0, %v9213_v5 }
 0x3ad   : > { %8248 = vmatpush3.bf16.msra.mxu1 %v9270_v24  ;;  %8249 = vmatprep.mubr.msk.bf16.mxu1 %vm9141_vm3, %v9140_v1 }
 0x3ae   : > { %8230 = vmatmul.mubr.msk.bf16.vlgmr.msra.gmra.mrb[28].mxu0 %vm398_vm4, %v1031_v57  ;;  %8259 = vmatprep.subr.bf16.mxu1 %v9088_v58 }
 0x3af   : > { %8242 = vmatpush3.bf16.msra.mxu0 %v9273_v25  ;;  %8243 = vmatprep.mubr.msk.bf16.mxu0 %vm9141_vm3, %v9140_v1 }
 0x3b0   : > { %8253 = vmatprep.subr.bf16.mxu0 %v9140_v1 }
 0x477   : > { %v1114_v59 = vpop.f32.mrb[28].mxu1 }
 0x478   : > { %v8225_v60 = vpop.f32.mrb[29].mxu1 }
 0x479   : > { %v1071_v61 = vpop.f32.mrb[24].mxu0  ;;  %v1117_v62 = vpop.f32.mrb[30].mxu1 }
 0x47a   : > { %v1115_v63 = vadd.f32 %v1114_v59, %v1071_v61  ;;  %v8219_v2 = vpop.f32.mrb[25].mxu0  ;;  %v8226_v3 = vpop.f32.mrb[31].mxu1 }
 0x47b   : > { %v1074_v4 = vpop.f32.mrb[26].mxu0 }
 0x47c   : > { %v8220_v6 = vpop.f32.mrb[27].mxu0 }
 0x47f   : > { %v8239_v8 = vpop.f32.mrb[32].mxu1 }
 0x480   : > { %v1214_v10 = vpop.f32.mrb[33].mxu1  ;;  %v1229_v26 = vpack.c.bf16 %v8239_v8, %v8239_v8 }
 0x481   : > { %v1157_v11 = vpop.f32.mrb[28].mxu0  ;;  %v8240_v12 = vpop.f32.mrb[34].mxu1 }
 0x482   : > { %v8231_v13 = vpop.f32.mrb[29].mxu0  ;;  %v1217_v14 = vpop.f32.mrb[35].mxu1  ;;  %v1163_v15 = vadd.f32 %v1157_v11, %v1115_v63 }
 0x483   : > { %v1228_v16 = vpack.c.bf16 %v1217_v14, %v1214_v10  ;;  %v1160_v17 = vpop.f32.mrb[30].mxu0 }
 0x484   : > { %v8232_v19 = vpop.f32.mrb[31].mxu0 }
 0x485   : > { %v1275_v21 = vrot.slane %v1228_v16, 4  ;;  %8244 = vmatmul.mubr.msk.bf16.vlgmr.msra.gmra.mrb[32].mxu0 %vm398_vm4, %v1228_v16 }
 0x486   : > { %8254 = vmatpush3.bf16.msra.mxu0 %v9283_v47  ;;  %8255 = vmatprep.mubr.msk.bf16.mxu0 %vm9141_vm3, %v9140_v1 }
 0x487   : > { %8250 = vmatmul.mubr.msk.bf16.vlgmr.msra.gmra.mrb[36].mxu1 %vm398_vm4, %v1275_v21  ;;  %8267 = vmatprep.subr.bf16.mxu0 %v9140_v1 }
 0x488   : > { %8260 = vmatpush3.bf16.msra.mxu1 %v9088_v58  ;;  %8263 = vmatprep.mubr.msk.bf16.mxu1 %vm335_vm0, %v9193_v0 }
 0x489   : > { %9046 = vmatprep.subr.msk.bf16.mxu1 %vm342_vm1, %v9089_v22  ;;  %v9093_v22 = vld [vmem:[%s9204_s8 + $0x44] ss:$0 sps:$4 sm:$0x11]  }
 0x48c   : > { %8262 = vmatpush3.bf16.msra.mxu1 %v1378_v23 }
 0x48d   : > { %8256 = vmatmul.mubr.msk.bf16.vlgmr.msra.gmra.mrb[36].mxu0 %vm398_vm4, %v1229_v26  ;;  %8273 = vmatprep.subr.bf16.mxu1 %v9140_v1  ;;  %v1779_v26 = vsel %vm342_vm1, %v9093_v22, 0 }
 0x48e   : > { %8268 = vmatpush3.bf16.msra.mxu0 %v9314_v55  ;;  %8269 = vmatprep.mubr.msk.bf16.mxu0 %vm9141_vm3, %v9140_v1 }
 0x48f   : > { %8264 = vmatmul.mubr.msk.bf16.vlgmr.msra.gmra.mrb[40].mxu1 %vm335_vm0, %v9213_v5  ;;  %8279 = vmatprep.subr.bf16.mxu0 %v9140_v1 }
 0x490   : > { %8274 = vmatpush3.bf16.msra.mxu1 %v9311_v54  ;;  %8275 = vmatprep.mubr.msk.bf16.mxu1 %vm9141_vm3, %v9140_v1 }
 0x491   : > { %8285 = vmatprep.subr.bf16.mxu1 %v9090_v27 }
 0x558   : > { %v1267_v28 = vpop.f32.mrb[32].mxu0 }
 0x559   : > { %v1273_v29 = vadd.f32 %v1267_v28, %v1163_v15  ;;  %v8245_v30 = vpop.f32.mrb[33].mxu0  ;;  %v9094_v28 = vld [vmem:[%s9204_s8 + $0x48] sm:$0xff]  }
 0x55a   : > { %v1270_v31 = vpop.f32.mrb[34].mxu0  ;;  %v1313_v32 = vpop.f32.mrb[36].mxu1 }
 0x55b   : > { %v1319_v33 = vadd.f32 %v1313_v32, %v1273_v29  ;;  %v8246_v34 = vpop.f32.mrb[35].mxu0  ;;  %v8251_v35 = vpop.f32.mrb[37].mxu1 }
 0x55c   : > { %v1316_v36 = vpop.f32.mrb[38].mxu1 }
 0x55d   : > { %v8252_v37 = vpop.f32.mrb[39].mxu1 }
 0x560   : > { %v1357_v39 = vpop.f32.mrb[36].mxu0 }
 0x561   : > { %v1363_v40 = vadd.f32 %v1357_v39, %v1319_v33  ;;  %v8257_v41 = vpop.f32.mrb[37].mxu0 }
 0x562   : > { %v1360_v42 = vpop.f32.mrb[38].mxu0  ;;  %v8265_v43 = vpop.f32.mrb[40].mxu1 }
 0x563   : > { %v8258_v44 = vpop.f32.mrb[39].mxu0  ;;  %v1414_v45 = vpop.f32.mrb[41].mxu1  ;;  %v1429_v53 = vpack.c.bf16 %v8265_v43, %v8265_v43 }
 0x564   : > { %v8266_v46 = vpop.f32.mrb[42].mxu1 }
 0x565   : > { %v1417_v48 = vpop.f32.mrb[43].mxu1 }
 0x566   : > { %v1428_v49 = vpack.c.bf16 %v1417_v48, %v1414_v45 }
 0x568   : > { %v1475_v50 = vrot.slane %v1428_v49, 4  ;;  %8270 = vmatmul.mubr.msk.bf16.vlgmr.msra.gmra.mrb[40].mxu0 %vm398_vm4, %v1428_v49 }
 0x569   : > { %8280 = vmatpush3.bf16.msra.mxu0 %v9324_v20  ;;  %8281 = vmatprep.mubr.msk.bf16.mxu0 %vm9141_vm3, %v9140_v1 }
 0x56a   : > { %8276 = vmatmul.mubr.msk.bf16.vlgmr.msra.gmra.mrb[44].mxu1 %vm398_vm4, %v1475_v50  ;;  %8293 = vmatprep.subr.bf16.mxu0 %v9140_v1 }
 0x56b   : > { %8286 = vmatpush3.bf16.msra.mxu1 %v9090_v27  ;;  %8289 = vmatprep.mubr.msk.bf16.mxu1 %vm335_vm0, %v9193_v0 }
 0x56c   : > { %9047 = vmatprep.subr.msk.bf16.mxu1 %vm342_vm1, %v9091_v51  ;;  %v9095_v51 = vld [vmem:[%s9204_s8 + $0x50] ss:$0 sps:$4 sm:$0x11]  }
 0x56f   : > { %8288 = vmatpush3.bf16.msra.mxu1 %v1581_v52  ;;  %v1979_v52 = vsel %vm342_vm1, %v9095_v51, 0 }
 0x570   : > { %8282 = vmatmul.mubr.msk.bf16.vlgmr.msra.gmra.mrb[44].mxu0 %vm398_vm4, %v1429_v53  ;;  %8299 = vmatprep.subr.bf16.mxu1 %v9140_v1 }
 0x571   : > { %8294 = vmatpush3.bf16.msra.mxu0 %v9234_v9  ;;  %8295 = vmatprep.mubr.msk.bf16.mxu0 %vm9141_vm3, %v9140_v1 }
 0x572   : > { %8290 = vmatmul.mubr.msk.bf16.vlgmr.msra.gmra.mrb[48].mxu1 %vm335_vm0, %v9213_v5  ;;  %8305 = vmatprep.subr.bf16.mxu0 %v9140_v1 }
 0x573   : > { %8300 = vmatpush3.bf16.msra.mxu1 %v9245_v18  ;;  %8301 = vmatprep.mubr.msk.bf16.mxu1 %vm9141_vm3, %v9140_v1 }
 0x574   : > { %8311 = vmatprep.subr.bf16.mxu1 %v9092_v56 }
 0x63b   : > { %v1467_v57 = vpop.f32.mrb[40].mxu0 }
 0x63c   : > { %v1473_v58 = vadd.f32 %v1467_v57, %v1363_v40  ;;  %v8271_v59 = vpop.f32.mrb[41].mxu0 }
 0x63d   : > { %v1470_v60 = vpop.f32.mrb[42].mxu0  ;;  %v1513_v61 = vpop.f32.mrb[44].mxu1 }
 0x63e   : > { %v1519_v62 = vadd.f32 %v1513_v61, %v1473_v58  ;;  %v8272_v63 = vpop.f32.mrb[43].mxu0  ;;  %v8277_v2 = vpop.f32.mrb[45].mxu1 }
 0x63f   : > { %v1516_v3 = vpop.f32.mrb[46].mxu1 }
 0x640   : > { %v8278_v4 = vpop.f32.mrb[47].mxu1 }
 0x643   : > { %v1557_v6 = vpop.f32.mrb[44].mxu0 }
 0x644   : > { %v1563_v8 = vadd.f32 %v1557_v6, %v1519_v62  ;;  %v8283_v10 = vpop.f32.mrb[45].mxu0 }
 0x645   : > { %v1560_v11 = vpop.f32.mrb[46].mxu0  ;;  %v8291_v12 = vpop.f32.mrb[48].mxu1 }
 0x646   : > { %v1564_v13 = vadd.f32 %v9388_v38, %v1563_v8  ;;  %v8284_v14 = vpop.f32.mrb[47].mxu0  ;;  %v1617_v15 = vpop.f32.mrb[49].mxu1  ;;  %v1632_v27 = vpack.c.bf16 %v8291_v12, %v8291_v12 }
 0x647   : > { %v8292_v16 = vpop.f32.mrb[50].mxu1 }
 0x648   : > { %v1565_v17 = vmax.f32 %v1564_v13, 0.0  ;;  %v1620_v19 = vpop.f32.mrb[51].mxu1 }
 0x649   : > { %v1631_v21 = vpack.c.bf16 %v1620_v19, %v1617_v15 }
 0x64a   : > { %1567 = vst.msk [vmem:[#allocation2 + $0x21] sm:$0xff] %vm293_vm5, %v1565_v17 }
 0x64b   : > { %v1634_v23 = vrot.slane %v1631_v21, 4  ;;  %8302 = vmatmul.mubr.msk.bf16.vlgmr.msra.gmra.mrb[52].mxu1 %vm398_vm4, %v1631_v21  ;;  %v9097_v21 = vld [vmem:[%s9204_s8 + $0x50] ss:$0 sps:$4 sm:$0x11]  }
 0x64c   : > { %8312 = vmatpush3.bf16.msra.mxu1 %v9092_v56  ;;  %8315 = vmatprep.mubr.msk.bf16.mxu1 %vm335_vm0, %v9193_v0  ;;  %v9096_v56 = vld [vmem:[%s9204_s8 + $0x48] sm:$0xff]  }
 0x64d   : > { %8296 = vmatmul.mubr.msk.bf16.vlgmr.msra.gmra.mrb[48].mxu0 %vm398_vm4, %v1634_v23  ;;  %9048 = vmatprep.subr.msk.bf16.mxu1 %vm342_vm1, %v9093_v22  ;;  %v2182_v22 = vsel %vm342_vm1, %v9097_v21, 0 }
 0x64e   : > { %8306 = vmatpush3.bf16.msra.mxu0 %v9222_v7  ;;  %8307 = vmatprep.mubr.msk.bf16.mxu0 %vm9141_vm3, %v9140_v1 }
 0x64f   : > { %8319 = vmatprep.subr.bf16.mxu0 %v9140_v1 }
 0x650   : > { %8314 = vmatpush3.bf16.msra.mxu1 %v1779_v26 }
 0x651   : > { %8325 = vmatprep.subr.bf16.mxu1 %v9140_v1 }
 0x653   : > { %8316 = vmatmul.mubr.msk.bf16.vlgmr.msra.gmra.mrb[56].mxu1 %vm335_vm0, %v9213_v5 }
 0x654   : > { %8326 = vmatpush3.bf16.msra.mxu1 %v9270_v24  ;;  %8327 = vmatprep.mubr.msk.bf16.mxu1 %vm9141_vm3, %v9140_v1 }
 0x655   : > { %8308 = vmatmul.mubr.msk.bf16.vlgmr.msra.gmra.mrb[52].mxu0 %vm398_vm4, %v1632_v27  ;;  %8337 = vmatprep.subr.bf16.mxu1 %v9094_v28 }
 0x656   : > { %8320 = vmatpush3.bf16.msra.mxu0 %v9273_v25  ;;  %8321 = vmatprep.mubr.msk.bf16.mxu0 %vm9141_vm3, %v9140_v1 }
 0x657   : > { %8331 = vmatprep.subr.bf16.mxu0 %v9140_v1 }
 0x71e   : > { %v1715_v29 = vpop.f32.mrb[52].mxu1 }
 0x71f   : > { %v8303_v30 = vpop.f32.mrb[53].mxu1 }
 0x720   : > { %v1672_v31 = vpop.f32.mrb[48].mxu0  ;;  %v1718_v32 = vpop.f32.mrb[54].mxu1 }
 0x721   : > { %v1716_v33 = vadd.f32 %v1715_v29, %v1672_v31  ;;  %v8297_v34 = vpop.f32.mrb[49].mxu0  ;;  %v8304_v35 = vpop.f32.mrb[55].mxu1 }
 0x722   : > { %v1675_v36 = vpop.f32.mrb[50].mxu0 }
 0x723   : > { %v8298_v37 = vpop.f32.mrb[51].mxu0 }
 0x726   : > { %v8317_v39 = vpop.f32.mrb[56].mxu1 }
 0x727   : > { %v1815_v40 = vpop.f32.mrb[57].mxu1  ;;  %v1830_v53 = vpack.c.bf16 %v8317_v39, %v8317_v39 }
 0x728   : > { %v1758_v41 = vpop.f32.mrb[52].mxu0  ;;  %v8318_v42 = vpop.f32.mrb[58].mxu1 }
 0x729   : > { %v1764_v43 = vadd.f32 %v1758_v41, %v1716_v33  ;;  %v8309_v44 = vpop.f32.mrb[53].mxu0  ;;  %v1818_v45 = vpop.f32.mrb[59].mxu1 }
 0x72a   : > { %v1829_v46 = vpack.c.bf16 %v1818_v45, %v1815_v40  ;;  %v1761_v48 = vpop.f32.mrb[54].mxu0 }
 0x72b   : > { %v8310_v49 = vpop.f32.mrb[55].mxu0 }
 0x72c   : > { %v1876_v50 = vrot.slane %v1829_v46, 4  ;;  %8322 = vmatmul.mubr.msk.bf16.vlgmr.msra.gmra.mrb[56].mxu0 %vm398_vm4, %v1829_v46  ;;  %v9099_v49 = vld [vmem:[%s9204_s8 + $0x5c] ss:$0 sps:$4 sm:$0x11]  }
 0x72d   : > { %8332 = vmatpush3.bf16.msra.mxu0 %v9283_v47  ;;  %8333 = vmatprep.mubr.msk.bf16.mxu0 %vm9141_vm3, %v9140_v1 }
 0x72e   : > { %8328 = vmatmul.mubr.msk.bf16.vlgmr.msra.gmra.mrb[60].mxu1 %vm398_vm4, %v1876_v50  ;;  %8345 = vmatprep.subr.bf16.mxu0 %v9140_v1 }
 0x72f   : > { %8338 = vmatpush3.bf16.msra.mxu1 %v9094_v28  ;;  %8341 = vmatprep.mubr.msk.bf16.mxu1 %vm335_vm0, %v9193_v0 }
 0x730   : > { %9049 = vmatprep.subr.msk.bf16.mxu1 %vm342_vm1, %v9095_v51  ;;  %v9539_v51 = vld [vmem:[%s10230_s1] sm:$0xff]  }
 0x733   : > { %8340 = vmatpush3.bf16.msra.mxu1 %v1979_v52  ;;  %v2380_v52 = vsel %vm342_vm1, %v9099_v49, 0 }
 0x734   : > { %8334 = vmatmul.mubr.msk.bf16.vlgmr.msra.gmra.mrb[60].mxu0 %vm398_vm4, %v1830_v53  ;;  %8351 = vmatprep.subr.bf16.mxu1 %v9140_v1 }
 0x735   : > { %8346 = vmatpush3.bf16.msra.mxu0 %v9314_v55  ;;  %8347 = vmatprep.mubr.msk.bf16.mxu0 %vm9141_vm3, %v9140_v1 }
 0x736   : > { %8342 = vmatmul.mubr.msk.bf16.vlgmr.msra.gmra.mrb[64].mxu1 %vm335_vm0, %v9213_v5  ;;  %8357 = vmatprep.subr.bf16.mxu0 %v9140_v1 }
 0x737   : > { %8352 = vmatpush3.bf16.msra.mxu1 %v9311_v54  ;;  %8353 = vmatprep.mubr.msk.bf16.mxu1 %vm9141_vm3, %v9140_v1 }
 0x738   : > { %8363 = vmatprep.subr.bf16.mxu1 %v9096_v56 }
 0x7ff   : > { %v1868_v57 = vpop.f32.mrb[56].mxu0 }
 0x800   : > { %v1874_v58 = vadd.f32 %v1868_v57, %v1764_v43  ;;  %v8323_v59 = vpop.f32.mrb[57].mxu0  ;;  %v9100_v57 = vld [vmem:[%s9204_s8 + $0x60] sm:$0xff]  }
 0x801   : > { %v1871_v60 = vpop.f32.mrb[58].mxu0  ;;  %v1914_v61 = vpop.f32.mrb[60].mxu1 }
 0x802   : > { %v1920_v62 = vadd.f32 %v1914_v61, %v1874_v58  ;;  %v8324_v63 = vpop.f32.mrb[59].mxu0  ;;  %v8329_v2 = vpop.f32.mrb[61].mxu1 }
 0x803   : > { %v1917_v3 = vpop.f32.mrb[62].mxu1 }
 0x804   : > { %v8330_v4 = vpop.f32.mrb[63].mxu1 }
 0x807   : > { %v1958_v6 = vpop.f32.mrb[60].mxu0 }
 0x808   : > { %v1964_v8 = vadd.f32 %v1958_v6, %v1920_v62  ;;  %v8335_v10 = vpop.f32.mrb[61].mxu0 }
 0x809   : > { %v1961_v11 = vpop.f32.mrb[62].mxu0  ;;  %v8343_v12 = vpop.f32.mrb[64].mxu1 }
 0x80a   : > { %v8336_v13 = vpop.f32.mrb[63].mxu0  ;;  %v2015_v14 = vpop.f32.mrb[65].mxu1  ;;  %v2030_v23 = vpack.c.bf16 %v8343_v12, %v8343_v12 }
 0x80b   : > { %v8344_v15 = vpop.f32.mrb[66].mxu1 }
 0x80c   : > { %v2018_v16 = vpop.f32.mrb[67].mxu1 }
 0x80d   : > { %v2029_v17 = vpack.c.bf16 %v2018_v16, %v2015_v14 }
 0x80f   : > { %v2076_v19 = vrot.slane %v2029_v17, 4  ;;  %8348 = vmatmul.mubr.msk.bf16.vlgmr.msra.gmra.mrb[64].mxu0 %vm398_vm4, %v2029_v17 }
 0x810   : > { %8358 = vmatpush3.bf16.msra.mxu0 %v9324_v20  ;;  %8359 = vmatprep.mubr.msk.bf16.mxu0 %vm9141_vm3, %v9140_v1 }
 0x811   : > { %8354 = vmatmul.mubr.msk.bf16.vlgmr.msra.gmra.mrb[68].mxu1 %vm398_vm4, %v2076_v19  ;;  %8371 = vmatprep.subr.bf16.mxu0 %v9140_v1 }
 0x812   : > { %8364 = vmatpush3.bf16.msra.mxu1 %v9096_v56  ;;  %8367 = vmatprep.mubr.msk.bf16.mxu1 %vm335_vm0, %v9193_v0  ;;  %v9098_v0 = vld [vmem:[%s9204_s8 + $0x54] sm:$0xff]   ;;  %v9554_v56 = vld [vmem:[%s10230_s1 + $0x8] ss:$0 sps:$4 sm:$0xff]  }
 0x813   : > { %9050 = vmatprep.subr.msk.bf16.mxu1 %vm342_vm1, %v9097_v21  ;;  %v9101_v21 = vld [vmem:[%s9204_s8 + $0x68] ss:$0 sps:$4 sm:$0x11]  }
 0x816   : > { %8366 = vmatpush3.bf16.msra.mxu1 %v2182_v22  ;;  %v2580_v22 = vsel %vm342_vm1, %v9101_v21, 0 }
 0x817   : > { %8360 = vmatmul.mubr.msk.bf16.vlgmr.msra.gmra.mrb[68].mxu0 %vm398_vm4, %v2030_v23  ;;  %8377 = vmatprep.subr.bf16.mxu1 %v9140_v1 }
 0x818   : > { %8372 = vmatpush3.bf16.msra.mxu0 %v9234_v9  ;;  %8373 = vmatprep.mubr.msk.bf16.mxu0 %vm9141_vm3, %v9140_v1 }
 0x819   : > { %8368 = vmatmul.mubr.msk.bf16.vlgmr.msra.gmra.mrb[72].mxu1 %vm335_vm0, %v9213_v5  ;;  %8383 = vmatprep.subr.bf16.mxu0 %v9140_v1 }
 0x81a   : > { %8378 = vmatpush3.bf16.msra.mxu1 %v9245_v18  ;;  %8379 = vmatprep.mubr.msk.bf16.mxu1 %vm9141_vm3, %v9140_v1 }
 0x81b   : > { %8389 = vmatprep.subr.bf16.mxu1 %v9098_v0 }
 0x8e2   : > { %v2068_v26 = vpop.f32.mrb[64].mxu0 }
 0x8e3   : > { %v2074_v27 = vadd.f32 %v2068_v26, %v1964_v8  ;;  %v8349_v28 = vpop.f32.mrb[65].mxu0 }
 0x8e4   : > { %v2071_v29 = vpop.f32.mrb[66].mxu0  ;;  %v2114_v30 = vpop.f32.mrb[68].mxu1 }
 0x8e5   : > { %v2120_v31 = vadd.f32 %v2114_v30, %v2074_v27  ;;  %v8350_v32 = vpop.f32.mrb[67].mxu0  ;;  %v8355_v33 = vpop.f32.mrb[69].mxu1 }
 0x8e6   : > { %v2117_v34 = vpop.f32.mrb[70].mxu1 }
 0x8e7   : > { %v8356_v5 = vpop.f32.mrb[71].mxu1 }
 0x8ea   : > { %v2158_v35 = vpop.f32.mrb[68].mxu0 }
 0x8eb   : > { %v2164_v36 = vadd.f32 %v2158_v35, %v2120_v31  ;;  %v8361_v37 = vpop.f32.mrb[69].mxu0 }
 0x8ec   : > { %v2161_v39 = vpop.f32.mrb[70].mxu0  ;;  %v8369_v40 = vpop.f32.mrb[72].mxu1 }
 0x8ed   : > { %v2165_v41 = vadd.f32 %v9388_v38, %v2164_v36  ;;  %v8362_v42 = vpop.f32.mrb[71].mxu0  ;;  %v2218_v43 = vpop.f32.mrb[73].mxu1  ;;  %v2233_v53 = vpack.c.bf16 %v8369_v40, %v8369_v40 }
 0x8ee   : > { %v8370_v44 = vpop.f32.mrb[74].mxu1 }
 0x8ef   : > { %v2166_v45 = vmax.f32 %v2165_v41, 0.0  ;;  %v2221_v46 = vpop.f32.mrb[75].mxu1 }
 0x8f0   : > { %v2232_v48 = vpack.c.bf16 %v2221_v46, %v2218_v43 }
 0x8f1   : > { %2168 = vst.msk [vmem:[#allocation2 + $0x31] sm:$0xff] %vm293_vm5, %v2166_v45 }
 0x8f2   : > { %v2235_v50 = vrot.slane %v2232_v48, 4  ;;  %8380 = vmatmul.mubr.msk.bf16.vlgmr.msra.gmra.mrb[76].mxu1 %vm398_vm4, %v2232_v48  ;;  %v9103_v48 = vld [vmem:[%s9204_s8 + $0x68] ss:$0 sps:$4 sm:$0x11]  }
 0x8f3   : > { %8390 = vmatpush3.bf16.msra.mxu1 %v9098_v0  ;;  %8393 = vmatprep.mubr.msk.bf16.mxu1 %vm335_vm0, %v9539_v51  ;;  %v9102_v0 = vld [vmem:[%s9204_s8 + $0x60] sm:$0xff]  }
 0x8f4   : > { %8374 = vmatmul.mubr.msk.bf16.vlgmr.msra.gmra.mrb[72].mxu0 %vm398_vm4, %v2235_v50  ;;  %9051 = vmatprep.subr.msk.bf16.mxu1 %vm342_vm1, %v9099_v49  ;;  %v2783_v49 = vsel %vm342_vm1, %v9103_v48, 0 }
 0x8f5   : > { %8384 = vmatpush3.bf16.msra.mxu0 %v9222_v7  ;;  %8385 = vmatprep.mubr.msk.bf16.mxu0 %vm9141_vm3, %v9140_v1 }
 0x8f6   : > { %8397 = vmatprep.subr.bf16.mxu0 %v9140_v1 }
 0x8f7   : > { %8392 = vmatpush3.bf16.msra.mxu1 %v2380_v52  ;;  %v9104_v52 = vld [vmem:[%s9204_s8 + $0x6c] sm:$0xff]  }
 0x8f8   : > { %8403 = vmatprep.subr.bf16.mxu1 %v9140_v1 }
 0x8fa   : > { %8394 = vmatmul.mubr.msk.bf16.vlgmr.msra.gmra.mrb[80].mxu1 %vm335_vm0, %v9554_v56 }
 0x8fb   : > { %8404 = vmatpush3.bf16.msra.mxu1 %v9270_v24  ;;  %8405 = vmatprep.mubr.msk.bf16.mxu1 %vm9141_vm3, %v9140_v1 }
 0x8fc   : > { %8386 = vmatmul.mubr.msk.bf16.vlgmr.msra.gmra.mrb[76].mxu0 %vm398_vm4, %v2233_v53  ;;  %8415 = vmatprep.subr.bf16.mxu1 %v9100_v57 }
 0x8fd   : > { %8398 = vmatpush3.bf16.msra.mxu0 %v9273_v25  ;;  %8399 = vmatprep.mubr.msk.bf16.mxu0 %vm9141_vm3, %v9140_v1 }
 0x8fe   : > { %8409 = vmatprep.subr.bf16.mxu0 %v9140_v1 }
 0x9c5   : > { %v2316_v58 = vpop.f32.mrb[76].mxu1 }
 0x9c6   : > { %v8381_v59 = vpop.f32.mrb[77].mxu1 }
 0x9c7   : > { %v2273_v60 = vpop.f32.mrb[72].mxu0  ;;  %v2319_v61 = vpop.f32.mrb[78].mxu1 }
 0x9c8   : > { %v2317_v62 = vadd.f32 %v2316_v58, %v2273_v60  ;;  %v8375_v63 = vpop.f32.mrb[73].mxu0  ;;  %v8382_v2 = vpop.f32.mrb[79].mxu1 }
 0x9c9   : > { %v2276_v3 = vpop.f32.mrb[74].mxu0 }
 0x9ca   : > { %v8376_v4 = vpop.f32.mrb[75].mxu0 }
 0x9cd   : > { %v8395_v6 = vpop.f32.mrb[80].mxu1 }
 0x9ce   : > { %v2416_v8 = vpop.f32.mrb[81].mxu1  ;;  %v2431_v23 = vpack.c.bf16 %v8395_v6, %v8395_v6 }
 0x9cf   : > { %v2359_v10 = vpop.f32.mrb[76].mxu0  ;;  %v8396_v11 = vpop.f32.mrb[82].mxu1 }
 0x9d0   : > { %v2365_v12 = vadd.f32 %v2359_v10, %v2317_v62  ;;  %v8387_v13 = vpop.f32.mrb[77].mxu0  ;;  %v2419_v14 = vpop.f32.mrb[83].mxu1 }
 0x9d1   : > { %v2430_v15 = vpack.c.bf16 %v2419_v14, %v2416_v8  ;;  %v2362_v16 = vpop.f32.mrb[78].mxu0 }
 0x9d2   : > { %v8388_v17 = vpop.f32.mrb[79].mxu0 }
 0x9d3   : > { %v2477_v19 = vrot.slane %v2430_v15, 4  ;;  %8400 = vmatmul.mubr.msk.bf16.vlgmr.msra.gmra.mrb[80].mxu0 %vm398_vm4, %v2430_v15 }
 0x9d4   : > { %8410 = vmatpush3.bf16.msra.mxu0 %v9283_v47  ;;  %8411 = vmatprep.mubr.msk.bf16.mxu0 %vm9141_vm3, %v9140_v1 }
 0x9d5   : > { %8406 = vmatmul.mubr.msk.bf16.vlgmr.msra.gmra.mrb[84].mxu1 %vm398_vm4, %v2477_v19  ;;  %8423 = vmatprep.subr.bf16.mxu0 %v9140_v1 }
 0x9d6   : > { %8416 = vmatpush3.bf16.msra.mxu1 %v9100_v57  ;;  %8419 = vmatprep.mubr.msk.bf16.mxu1 %vm335_vm0, %v9539_v51 }
 0x9d7   : > { %9052 = vmatprep.subr.msk.bf16.mxu1 %vm342_vm1, %v9101_v21  ;;  %v9105_v21 = vld [vmem:[%s9204_s8 + $0x74] ss:$0 sps:$4 sm:$0x11]  }
 0x9da   : > { %8418 = vmatpush3.bf16.msra.mxu1 %v2580_v22 }
 0x9db   : > { %8412 = vmatmul.mubr.msk.bf16.vlgmr.msra.gmra.mrb[84].mxu0 %vm398_vm4, %v2431_v23  ;;  %8429 = vmatprep.subr.bf16.mxu1 %v9140_v1 }
 0x9dc   : > { %8424 = vmatpush3.bf16.msra.mxu0 %v9314_v55  ;;  %8425 = vmatprep.mubr.msk.bf16.mxu0 %vm9141_vm3, %v9140_v1 }
 0x9dd   : > { %8420 = vmatmul.mubr.msk.bf16.vlgmr.msra.gmra.mrb[88].mxu1 %vm335_vm0, %v9554_v56  ;;  %8435 = vmatprep.subr.bf16.mxu0 %v9140_v1 }
 0x9de   : > { %8430 = vmatpush3.bf16.msra.mxu1 %v9311_v54  ;;  %8431 = vmatprep.mubr.msk.bf16.mxu1 %vm9141_vm3, %v9140_v1 }
 0x9df   : > { %8441 = vmatprep.subr.bf16.mxu1 %v9102_v0 }
 0xaa6   : > { %v2469_v26 = vpop.f32.mrb[80].mxu0 }
 0xaa7   : > { %v2475_v27 = vadd.f32 %v2469_v26, %v2365_v12  ;;  %v8401_v28 = vpop.f32.mrb[81].mxu0 }
 0xaa8   : > { %v2472_v29 = vpop.f32.mrb[82].mxu0  ;;  %v2515_v30 = vpop.f32.mrb[84].mxu1 }
 0xaa9   : > { %v2521_v31 = vadd.f32 %v2515_v30, %v2475_v27  ;;  %v8402_v32 = vpop.f32.mrb[83].mxu0  ;;  %v8407_v33 = vpop.f32.mrb[85].mxu1 }
 0xaaa   : > { %v2518_v34 = vpop.f32.mrb[86].mxu1 }
 0xaab   : > { %v8408_v5 = vpop.f32.mrb[87].mxu1 }
 0xaae   : > { %v2559_v35 = vpop.f32.mrb[84].mxu0 }
 0xaaf   : > { %v2565_v36 = vadd.f32 %v2559_v35, %v2521_v31  ;;  %v8413_v37 = vpop.f32.mrb[85].mxu0 }
 0xab0   : > { %v2562_v39 = vpop.f32.mrb[86].mxu0  ;;  %v8421_v40 = vpop.f32.mrb[88].mxu1 }
 0xab1   : > { %v8414_v41 = vpop.f32.mrb[87].mxu0  ;;  %v2616_v42 = vpop.f32.mrb[89].mxu1  ;;  %v2631_v50 = vpack.c.bf16 %v8421_v40, %v8421_v40 }
 0xab2   : > { %v8422_v43 = vpop.f32.mrb[90].mxu1 }
 0xab3   : > { %v2619_v44 = vpop.f32.mrb[91].mxu1 }
 0xab4   : > { %v2630_v45 = vpack.c.bf16 %v2619_v44, %v2616_v42 }
 0xab6   : > { %v2677_v46 = vrot.slane %v2630_v45, 4  ;;  %8426 = vmatmul.mubr.msk.bf16.vlgmr.msra.gmra.mrb[88].mxu0 %vm398_vm4, %v2630_v45 }
 0xab7   : > { %8436 = vmatpush3.bf16.msra.mxu0 %v9324_v20  ;;  %8437 = vmatprep.mubr.msk.bf16.mxu0 %vm9141_vm3, %v9140_v1 }
 0xab8   : > { %8432 = vmatmul.mubr.msk.bf16.vlgmr.msra.gmra.mrb[92].mxu1 %vm398_vm4, %v2677_v46  ;;  %8449 = vmatprep.subr.bf16.mxu0 %v9140_v1  ;;  %v9107_v46 = vld [vmem:[%s9204_s8 + $0x80] ss:$0 sps:$4 sm:$0x11]  }
 0xab9   : > { %8442 = vmatpush3.bf16.msra.mxu1 %v9102_v0  ;;  %8445 = vmatprep.mubr.msk.bf16.mxu1 %vm335_vm0, %v9539_v51  ;;  %v9106_v0 = vld [vmem:[%s9204_s8 + $0x78] sm:$0xff]  }
 0xaba   : > { %9053 = vmatprep.subr.msk.bf16.mxu1 %vm342_vm1, %v9103_v48  ;;  %v3181_v48 = vsel %vm342_vm1, %v9107_v46, 0 }
 0xabd   : > { %8444 = vmatpush3.bf16.msra.mxu1 %v2783_v49 }
 0xabe   : > { %8438 = vmatmul.mubr.msk.bf16.vlgmr.msra.gmra.mrb[92].mxu0 %vm398_vm4, %v2631_v50  ;;  %8455 = vmatprep.subr.bf16.mxu1 %v9140_v1  ;;  %v9108_v50 = vld [vmem:[%s9204_s8 + $0x78] sm:$0xff]  }
 0xabf   : > { %8450 = vmatpush3.bf16.msra.mxu0 %v9234_v9  ;;  %8451 = vmatprep.mubr.msk.bf16.mxu0 %vm9141_vm3, %v9140_v1 }
 0xac0   : > { %8446 = vmatmul.mubr.msk.bf16.vlgmr.msra.gmra.mrb[96].mxu1 %vm335_vm0, %v9554_v56  ;;  %8461 = vmatprep.subr.bf16.mxu0 %v9140_v1 }
 0xac1   : > { %8456 = vmatpush3.bf16.msra.mxu1 %v9245_v18  ;;  %8457 = vmatprep.mubr.msk.bf16.mxu1 %vm9141_vm3, %v9140_v1 }
 0xac2   : > { %8467 = vmatprep.subr.bf16.mxu1 %v9104_v52 }
 0xb89   : > { %v2669_v53 = vpop.f32.mrb[88].mxu0 }
 0xb8a   : > { %v2675_v57 = vadd.f32 %v2669_v53, %v2565_v36  ;;  %v8427_v58 = vpop.f32.mrb[89].mxu0 }
 0xb8b   : > { %v2672_v59 = vpop.f32.mrb[90].mxu0  ;;  %v2715_v60 = vpop.f32.mrb[92].mxu1 }
 0xb8c   : > { %v2721_v61 = vadd.f32 %v2715_v60, %v2675_v57  ;;  %v8428_v62 = vpop.f32.mrb[91].mxu0  ;;  %v8433_v63 = vpop.f32.mrb[93].mxu1 }
 0xb8d   : > { %v2718_v2 = vpop.f32.mrb[94].mxu1 }
 0xb8e   : > { %v8434_v3 = vpop.f32.mrb[95].mxu1 }
 0xb91   : > { %v2759_v4 = vpop.f32.mrb[92].mxu0 }
 0xb92   : > { %v2765_v6 = vadd.f32 %v2759_v4, %v2721_v61  ;;  %v8439_v8 = vpop.f32.mrb[93].mxu0 }
 0xb93   : > { %v2762_v10 = vpop.f32.mrb[94].mxu0  ;;  %v8447_v11 = vpop.f32.mrb[96].mxu1 }
 0xb94   : > { %v2766_v12 = vadd.f32 %v9388_v38, %v2765_v6  ;;  %v8440_v13 = vpop.f32.mrb[95].mxu0  ;;  %v2819_v14 = vpop.f32.mrb[97].mxu1  ;;  %v2981_v38 = vsel %vm342_vm1, %v9105_v21, 0  ;;  %v2834_v23 = vpack.c.bf16 %v8447_v11, %v8447_v11 }
 0xb95   : > { %v8448_v15 = vpop.f32.mrb[98].mxu1 }
 0xb96   : > { %v2767_v16 = vmax.f32 %v2766_v12, 0.0  ;;  %v2822_v17 = vpop.f32.mrb[99].mxu1 }
 0xb97   : > { %v2833_v19 = vpack.c.bf16 %v2822_v17, %v2819_v14  ;;  %v9109_v17 = vld [vmem:[%s9204_s8 + $0x80] ss:$0 sps:$4 sm:$0x11]  }
 0xb98   : > { %2769 = vst.msk [vmem:[#allocation2 + $0x41] sm:$0xff] %vm293_vm5, %v2767_v16 }
 0xb99   : > { %v2836_v22 = vrot.slane %v2833_v19, 4  ;;  %8458 = vmatmul.mubr.msk.bf16.vlgmr.msra.gmra.mrb[100].mxu1 %vm398_vm4, %v2833_v19  ;;  %v3384_v19 = vsel %vm342_vm1, %v9109_v17, 0 }
 0xb9a   : > { %8468 = vmatpush3.bf16.msra.mxu1 %v9104_v52  ;;  %8471 = vmatprep.mubr.msk.bf16.mxu1 %vm335_vm0, %v9539_v51 }
 0xb9b   : > { %8452 = vmatmul.mubr.msk.bf16.vlgmr.msra.gmra.mrb[96].mxu0 %vm398_vm4, %v2836_v22  ;;  %9054 = vmatprep.subr.msk.bf16.mxu1 %vm342_vm1, %v9105_v21  ;;  %v9110_v22 = vld [vmem:[%s9204_s8 + $0x84] sm:$0xff]  }
 0xb9c   : > { %8462 = vmatpush3.bf16.msra.mxu0 %v9222_v7  ;;  %8463 = vmatprep.mubr.msk.bf16.mxu0 %vm9141_vm3, %v9140_v1 }
 0xb9d   : > { %8475 = vmatprep.subr.bf16.mxu0 %v9140_v1 }
 0xb9e   : > { %8470 = vmatpush3.bf16.msra.mxu1 %v2981_v38 }
 0xb9f   : > { %8481 = vmatprep.subr.bf16.mxu1 %v9140_v1 }
 0xba1   : > { %8472 = vmatmul.mubr.msk.bf16.vlgmr.msra.gmra.mrb[104].mxu1 %vm335_vm0, %v9554_v56 }
 0xba2   : > { %8482 = vmatpush3.bf16.msra.mxu1 %v9270_v24  ;;  %8483 = vmatprep.mubr.msk.bf16.mxu1 %vm9141_vm3, %v9140_v1 }
 0xba3   : > { %8464 = vmatmul.mubr.msk.bf16.vlgmr.msra.gmra.mrb[100].mxu0 %vm398_vm4, %v2834_v23  ;;  %8493 = vmatprep.subr.bf16.mxu1 %v9106_v0 }
 0xba4   : > { %8476 = vmatpush3.bf16.msra.mxu0 %v9273_v25  ;;  %8477 = vmatprep.mubr.msk.bf16.mxu0 %vm9141_vm3, %v9140_v1 }
 0xba5   : > { %8487 = vmatprep.subr.bf16.mxu0 %v9140_v1 }
 0xc6c   : > { %v2917_v26 = vpop.f32.mrb[100].mxu1 }
 0xc6d   : > { %v8459_v27 = vpop.f32.mrb[101].mxu1 }
 0xc6e   : > { %v2874_v28 = vpop.f32.mrb[96].mxu0  ;;  %v2920_v29 = vpop.f32.mrb[102].mxu1 }
 0xc6f   : > { %v2918_v30 = vadd.f32 %v2917_v26, %v2874_v28  ;;  %v8453_v31 = vpop.f32.mrb[97].mxu0  ;;  %v8460_v32 = vpop.f32.mrb[103].mxu1 }
 0xc70   : > { %v2877_v33 = vpop.f32.mrb[98].mxu0 }
 0xc71   : > { %v8454_v34 = vpop.f32.mrb[99].mxu0 }
 0xc74   : > { %v8473_v5 = vpop.f32.mrb[104].mxu1 }
 0xc75   : > { %v3017_v35 = vpop.f32.mrb[105].mxu1  ;;  %v3032_v49 = vpack.c.bf16 %v8473_v5, %v8473_v5 }
 0xc76   : > { %v2960_v36 = vpop.f32.mrb[100].mxu0  ;;  %v8474_v37 = vpop.f32.mrb[106].mxu1 }
 0xc77   : > { %v2966_v39 = vadd.f32 %v2960_v36, %v2918_v30  ;;  %v8465_v40 = vpop.f32.mrb[101].mxu0  ;;  %v3020_v41 = vpop.f32.mrb[107].mxu1  ;;  %v9687_v37 = vld [vmem:[%s10232_s3] ss:$0 sm:$0xff] }
 0xc78   : > { %v3031_v42 = vpack.c.bf16 %v3020_v41, %v3017_v35  ;;  %v2963_v43 = vpop.f32.mrb[102].mxu0 }
 0xc79   : > { %v8466_v44 = vpop.f32.mrb[103].mxu0 }
 0xc7a   : > { %v3078_v45 = vrot.slane %v3031_v42, 4  ;;  %8478 = vmatmul.mubr.msk.bf16.vlgmr.msra.gmra.mrb[104].mxu0 %vm398_vm4, %v3031_v42 }
 0xc7b   : > { %8488 = vmatpush3.bf16.msra.mxu0 %v9283_v47  ;;  %8489 = vmatprep.mubr.msk.bf16.mxu0 %vm9141_vm3, %v9140_v1 }
 0xc7c   : > { %8484 = vmatmul.mubr.msk.bf16.vlgmr.msra.gmra.mrb[108].mxu1 %vm398_vm4, %v3078_v45  ;;  %8501 = vmatprep.subr.bf16.mxu0 %v9140_v1 }
 0xc7d   : > { %8494 = vmatpush3.bf16.msra.mxu1 %v9106_v0  ;;  %8497 = vmatprep.mubr.msk.bf16.mxu1 %vm335_vm0, %v9539_v51 }
 0xc7e   : > { %9055 = vmatprep.subr.msk.bf16.mxu1 %vm342_vm1, %v9107_v46  ;;  %v9111_v46 = vld [vmem:[%s9204_s8 + $0x8c] ss:$0 sps:$4 sm:$0x11]  }
 0xc81   : > { %8496 = vmatpush3.bf16.msra.mxu1 %v3181_v48 }
 0xc82   : > { %8490 = vmatmul.mubr.msk.bf16.vlgmr.msra.gmra.mrb[108].mxu0 %vm398_vm4, %v3032_v49  ;;  %8507 = vmatprep.subr.bf16.mxu1 %v9140_v1  ;;  %v3582_v49 = vsel %vm342_vm1, %v9111_v46, 0 }
 0xc83   : > { %8502 = vmatpush3.bf16.msra.mxu0 %v9314_v55  ;;  %8503 = vmatprep.mubr.msk.bf16.mxu0 %vm9141_vm3, %v9140_v1 }
 0xc84   : > { %8498 = vmatmul.mubr.msk.bf16.vlgmr.msra.gmra.mrb[112].mxu1 %vm335_vm0, %v9554_v56  ;;  %8513 = vmatprep.subr.bf16.mxu0 %v9140_v1 }
 0xc85   : > { %8508 = vmatpush3.bf16.msra.mxu1 %v9311_v54  ;;  %8509 = vmatprep.mubr.msk.bf16.mxu1 %vm9141_vm3, %v9140_v1 }
 0xc86   : > { %8519 = vmatprep.subr.bf16.mxu1 %v9108_v50 }
 0xd4d   : > { %v3070_v52 = vpop.f32.mrb[104].mxu0 }
 0xd4e   : > { %v3076_v53 = vadd.f32 %v3070_v52, %v2966_v39  ;;  %v8479_v57 = vpop.f32.mrb[105].mxu0  ;;  %v9112_v52 = vld [vmem:[%s9204_s8 + $0x90] sm:$0xff]  }
 0xd4f   : > { %v3073_v58 = vpop.f32.mrb[106].mxu0  ;;  %v3116_v59 = vpop.f32.mrb[108].mxu1 }
 0xd50   : > { %v3122_v60 = vadd.f32 %v3116_v59, %v3076_v53  ;;  %v8480_v61 = vpop.f32.mrb[107].mxu0  ;;  %v8485_v62 = vpop.f32.mrb[109].mxu1 }
 0xd51   : > { %v3119_v63 = vpop.f32.mrb[110].mxu1 }
 0xd52   : > { %v8486_v2 = vpop.f32.mrb[111].mxu1 }
 0xd55   : > { %v3160_v3 = vpop.f32.mrb[108].mxu0 }
 0xd56   : > { %v3166_v4 = vadd.f32 %v3160_v3, %v3122_v60  ;;  %v8491_v6 = vpop.f32.mrb[109].mxu0 }
 0xd57   : > { %v3163_v8 = vpop.f32.mrb[110].mxu0  ;;  %v8499_v10 = vpop.f32.mrb[112].mxu1 }
 0xd58   : > { %v8492_v11 = vpop.f32.mrb[111].mxu0  ;;  %v3217_v12 = vpop.f32.mrb[113].mxu1  ;;  %v3232_v21 = vpack.c.bf16 %v8499_v10, %v8499_v10 }
 0xd59   : > { %v8500_v13 = vpop.f32.mrb[114].mxu1 }
 0xd5a   : > { %v3220_v14 = vpop.f32.mrb[115].mxu1 }
 0xd5b   : > { %v3231_v15 = vpack.c.bf16 %v3220_v14, %v3217_v12 }
 0xd5d   : > { %v3278_v16 = vrot.slane %v3231_v15, 4  ;;  %8504 = vmatmul.mubr.msk.bf16.vlgmr.msra.gmra.mrb[112].mxu0 %vm398_vm4, %v3231_v15 }
 0xd5e   : > { %8514 = vmatpush3.bf16.msra.mxu0 %v9324_v20  ;;  %8515 = vmatprep.mubr.msk.bf16.mxu0 %vm9141_vm3, %v9140_v1 }
 0xd5f   : > { %8510 = vmatmul.mubr.msk.bf16.vlgmr.msra.gmra.mrb[116].mxu1 %vm398_vm4, %v3278_v16  ;;  %8527 = vmatprep.subr.bf16.mxu0 %v9140_v1 }
 0xd60   : > { %8520 = vmatpush3.bf16.msra.mxu1 %v9108_v50  ;;  %8523 = vmatprep.mubr.msk.bf16.mxu1 %vm335_vm0, %v9539_v51 }
 0xd61   : > { %9056 = vmatprep.subr.msk.bf16.mxu1 %vm342_vm1, %v9109_v17  ;;  %v9113_v17 = vld [vmem:[%s9204_s8 + $0x98] ss:$0 sps:$4 sm:$0x11]  }
 0xd64   : > { %8522 = vmatpush3.bf16.msra.mxu1 %v3384_v19  ;;  %v3782_v19 = vsel %vm342_vm1, %v9113_v17, 0 }
 0xd65   : > { %8516 = vmatmul.mubr.msk.bf16.vlgmr.msra.gmra.mrb[116].mxu0 %vm398_vm4, %v3232_v21  ;;  %8533 = vmatprep.subr.bf16.mxu1 %v9140_v1 }
 0xd66   : > { %8528 = vmatpush3.bf16.msra.mxu0 %v9234_v9  ;;  %8529 = vmatprep.mubr.msk.bf16.mxu0 %vm9141_vm3, %v9140_v1 }
 0xd67   : > { %8524 = vmatmul.mubr.msk.bf16.vlgmr.msra.gmra.mrb[120].mxu1 %vm335_vm0, %v9554_v56  ;;  %8539 = vmatprep.subr.bf16.mxu0 %v9140_v1 }
 0xd68   : > { %8534 = vmatpush3.bf16.msra.mxu1 %v9245_v18  ;;  %8535 = vmatprep.mubr.msk.bf16.mxu1 %vm9141_vm3, %v9140_v1 }
 0xd69   : > { %8545 = vmatprep.subr.bf16.mxu1 %v9110_v22 }
 0xe30   : > { %v3270_v38 = vpop.f32.mrb[112].mxu0 }
 0xe31   : > { %v3276_v23 = vadd.f32 %v3270_v38, %v3166_v4  ;;  %v8505_v0 = vpop.f32.mrb[113].mxu0 }
 0xe32   : > { %v3273_v26 = vpop.f32.mrb[114].mxu0  ;;  %v3316_v27 = vpop.f32.mrb[116].mxu1 }
 0xe33   : > { %v3322_v28 = vadd.f32 %v3316_v27, %v3276_v23  ;;  %v8506_v29 = vpop.f32.mrb[115].mxu0  ;;  %v8511_v30 = vpop.f32.mrb[117].mxu1 }
 0xe34   : > { %v3319_v31 = vpop.f32.mrb[118].mxu1 }
 0xe35   : > { %v8512_v32 = vpop.f32.mrb[119].mxu1 }
 0xe38   : > { %v3360_v33 = vpop.f32.mrb[116].mxu0 }
 0xe39   : > { %v3366_v34 = vadd.f32 %v3360_v33, %v3322_v28  ;;  %v8517_v5 = vpop.f32.mrb[117].mxu0 }
 0xe3a   : > { %v3363_v35 = vpop.f32.mrb[118].mxu0  ;;  %v8525_v36 = vpop.f32.mrb[120].mxu1 }
 0xe3b   : > { %v3367_v39 = vadd.f32 %v9687_v37, %v3366_v34  ;;  %v8518_v40 = vpop.f32.mrb[119].mxu0  ;;  %v3420_v41 = vpop.f32.mrb[121].mxu1  ;;  %v3435_v50 = vpack.c.bf16 %v8525_v36, %v8525_v36 }
 0xe3c   : > { %v8526_v42 = vpop.f32.mrb[122].mxu1 }
 0xe3d   : > { %v3368_v43 = vmax.f32 %v3367_v39, 0.0  ;;  %v3423_v44 = vpop.f32.mrb[123].mxu1 }
 0xe3e   : > { %v3434_v45 = vpack.c.bf16 %v3423_v44, %v3420_v41 }
 0xe3f   : > { %3370 = vst.msk [vmem:[#allocation2 + $0x51] sm:$0xff] %vm293_vm5, %v3368_v43 }
 0xe40   : > { %v3437_v48 = vrot.slane %v3434_v45, 4  ;;  %8536 = vmatmul.mubr.msk.bf16.vlgmr.msra.gmra.mrb[124].mxu1 %vm398_vm4, %v3434_v45  ;;  %v9115_v45 = vld [vmem:[%s9204_s8 + $0x98] ss:$0 sps:$4 sm:$0x11]  }
 0xe41   : > { %8546 = vmatpush3.bf16.msra.mxu1 %v9110_v22  ;;  %8549 = vmatprep.mubr.msk.bf16.mxu1 %vm335_vm0, %v9539_v51  ;;  %v9114_v22 = vld [vmem:[%s9204_s8 + $0x90] sm:$0xff]  }
 0xe42   : > { %8530 = vmatmul.mubr.msk.bf16.vlgmr.msra.gmra.mrb[120].mxu0 %vm398_vm4, %v3437_v48  ;;  %9057 = vmatprep.subr.msk.bf16.mxu1 %vm342_vm1, %v9111_v46  ;;  %v3985_v46 = vsel %vm342_vm1, %v9115_v45, 0 }
 0xe43   : > { %8540 = vmatpush3.bf16.msra.mxu0 %v9222_v7  ;;  %8541 = vmatprep.mubr.msk.bf16.mxu0 %vm9141_vm3, %v9140_v1 }
 0xe44   : > { %8553 = vmatprep.subr.bf16.mxu0 %v9140_v1 }
 0xe45   : > { %8548 = vmatpush3.bf16.msra.mxu1 %v3582_v49  ;;  %v9116_v49 = vld [vmem:[%s9204_s8 + $0x9c] sm:$0xff]  }
 0xe46   : > { %8559 = vmatprep.subr.bf16.mxu1 %v9140_v1 }
 0xe48   : > { %8550 = vmatmul.mubr.msk.bf16.vlgmr.msra.gmra.mrb[128].mxu1 %vm335_vm0, %v9554_v56 }
 0xe49   : > { %8560 = vmatpush3.bf16.msra.mxu1 %v9270_v24  ;;  %8561 = vmatprep.mubr.msk.bf16.mxu1 %vm9141_vm3, %v9140_v1 }
 0xe4a   : > { %8542 = vmatmul.mubr.msk.bf16.vlgmr.msra.gmra.mrb[124].mxu0 %vm398_vm4, %v3435_v50  ;;  %8571 = vmatprep.subr.bf16.mxu1 %v9112_v52 }
 0xe4b   : > { %8554 = vmatpush3.bf16.msra.mxu0 %v9273_v25  ;;  %8555 = vmatprep.mubr.msk.bf16.mxu0 %vm9141_vm3, %v9140_v1 }
 0xe4c   : > { %8565 = vmatprep.subr.bf16.mxu0 %v9140_v1 }
 0xf13   : > { %v3518_v53 = vpop.f32.mrb[124].mxu1 }
 0xf14   : > { %v8537_v57 = vpop.f32.mrb[125].mxu1 }
 0xf15   : > { %v3475_v58 = vpop.f32.mrb[120].mxu0  ;;  %v3521_v59 = vpop.f32.mrb[126].mxu1 }
 0xf16   : > { %v3519_v60 = vadd.f32 %v3518_v53, %v3475_v58  ;;  %v8531_v61 = vpop.f32.mrb[121].mxu0  ;;  %v8538_v62 = vpop.f32.mrb[127].mxu1 }
 0xf17   : > { %v3478_v63 = vpop.f32.mrb[122].mxu0 }
 0xf18   : > { %v8532_v2 = vpop.f32.mrb[123].mxu0 }
 0xf1b   : > { %v8551_v3 = vpop.f32.mrb[128].mxu1 }
 0xf1c   : > { %v3618_v4 = vpop.f32.mrb[129].mxu1  ;;  %v3633_v21 = vpack.c.bf16 %v8551_v3, %v8551_v3 }
 0xf1d   : > { %v3561_v6 = vpop.f32.mrb[124].mxu0  ;;  %v8552_v8 = vpop.f32.mrb[130].mxu1 }
 0xf1e   : > { %v3567_v10 = vadd.f32 %v3561_v6, %v3519_v60  ;;  %v8543_v11 = vpop.f32.mrb[125].mxu0  ;;  %v3621_v12 = vpop.f32.mrb[131].mxu1 }
 0xf1f   : > { %v3632_v13 = vpack.c.bf16 %v3621_v12, %v3618_v4  ;;  %v3564_v14 = vpop.f32.mrb[126].mxu0 }
 0xf20   : > { %v8544_v15 = vpop.f32.mrb[127].mxu0 }
 0xf21   : > { %v3679_v16 = vrot.slane %v3632_v13, 4  ;;  %8556 = vmatmul.mubr.msk.bf16.vlgmr.msra.gmra.mrb[128].mxu0 %vm398_vm4, %v3632_v13 }
 0xf22   : > { %8566 = vmatpush3.bf16.msra.mxu0 %v9283_v47  ;;  %8567 = vmatprep.mubr.msk.bf16.mxu0 %vm9141_vm3, %v9140_v1 }
 0xf23   : > { %8562 = vmatmul.mubr.msk.bf16.vlgmr.msra.gmra.mrb[132].mxu1 %vm398_vm4, %v3679_v16  ;;  %8579 = vmatprep.subr.bf16.mxu0 %v9140_v1 }
 0xf24   : > { %8572 = vmatpush3.bf16.msra.mxu1 %v9112_v52  ;;  %8575 = vmatprep.mubr.msk.bf16.mxu1 %vm335_vm0, %v9539_v51 }
 0xf25   : > { %9058 = vmatprep.subr.msk.bf16.mxu1 %vm342_vm1, %v9113_v17  ;;  %v9117_v17 = vld [vmem:[%s9204_s8 + $0xa4] ss:$0 sps:$4 sm:$0x11]  }
 0xf28   : > { %8574 = vmatpush3.bf16.msra.mxu1 %v3782_v19 }
 0xf29   : > { %8568 = vmatmul.mubr.msk.bf16.vlgmr.msra.gmra.mrb[132].mxu0 %vm398_vm4, %v3633_v21  ;;  %8585 = vmatprep.subr.bf16.mxu1 %v9140_v1  ;;  %v4183_v21 = vsel %vm342_vm1, %v9117_v17, 0 }
 0xf2a   : > { %8580 = vmatpush3.bf16.msra.mxu0 %v9314_v55  ;;  %8581 = vmatprep.mubr.msk.bf16.mxu0 %vm9141_vm3, %v9140_v1 }
 0xf2b   : > { %8576 = vmatmul.mubr.msk.bf16.vlgmr.msra.gmra.mrb[136].mxu1 %vm335_vm0, %v9554_v56  ;;  %8591 = vmatprep.subr.bf16.mxu0 %v9140_v1 }
 0xf2c   : > { %8586 = vmatpush3.bf16.msra.mxu1 %v9311_v54  ;;  %8587 = vmatprep.mubr.msk.bf16.mxu1 %vm9141_vm3, %v9140_v1 }
 0xf2d   : > { %8597 = vmatprep.subr.bf16.mxu1 %v9114_v22 }
 0xff4   : > { %v3671_v38 = vpop.f32.mrb[128].mxu0 }
 0xff5   : > { %v3677_v23 = vadd.f32 %v3671_v38, %v3567_v10  ;;  %v8557_v0 = vpop.f32.mrb[129].mxu0  ;;  %v9118_v38 = vld [vmem:[%s9204_s8 + $0xa8] sm:$0xff]  }
 0xff6   : > { %v3674_v26 = vpop.f32.mrb[130].mxu0  ;;  %v3717_v27 = vpop.f32.mrb[132].mxu1 }
 0xff7   : > { %v3723_v28 = vadd.f32 %v3717_v27, %v3677_v23  ;;  %v8558_v29 = vpop.f32.mrb[131].mxu0  ;;  %v8563_v30 = vpop.f32.mrb[133].mxu1 }
 0xff8   : > { %v3720_v31 = vpop.f32.mrb[134].mxu1 }
 0xff9   : > { %v8564_v32 = vpop.f32.mrb[135].mxu1 }
 0xffc   : > { %v3761_v33 = vpop.f32.mrb[132].mxu0 }
 0xffd   : > { %v3767_v34 = vadd.f32 %v3761_v33, %v3723_v28  ;;  %v8569_v5 = vpop.f32.mrb[133].mxu0 }
 0xffe   : > { %v3764_v35 = vpop.f32.mrb[134].mxu0  ;;  %v8577_v36 = vpop.f32.mrb[136].mxu1 }
 0xfff   : > { %v8570_v39 = vpop.f32.mrb[135].mxu0  ;;  %v3818_v40 = vpop.f32.mrb[137].mxu1  ;;  %v3833_v48 = vpack.c.bf16 %v8577_v36, %v8577_v36 }
0x1000   : > { %v8578_v41 = vpop.f32.mrb[138].mxu1 }
0x1001   : > { %v3821_v42 = vpop.f32.mrb[139].mxu1 }
0x1002   : > { %v3832_v43 = vpack.c.bf16 %v3821_v42, %v3818_v40 }
0x1004   : > { %v3879_v44 = vrot.slane %v3832_v43, 4  ;;  %8582 = vmatmul.mubr.msk.bf16.vlgmr.msra.gmra.mrb[136].mxu0 %vm398_vm4, %v3832_v43 }
0x1005   : > { %8592 = vmatpush3.bf16.msra.mxu0 %v9324_v20  ;;  %8593 = vmatprep.mubr.msk.bf16.mxu0 %vm9141_vm3, %v9140_v1 }
0x1006   : > { %8588 = vmatmul.mubr.msk.bf16.vlgmr.msra.gmra.mrb[140].mxu1 %vm398_vm4, %v3879_v44  ;;  %8605 = vmatprep.subr.bf16.mxu0 %v9140_v1 }
0x1007   : > { %8598 = vmatpush3.bf16.msra.mxu1 %v9114_v22  ;;  %8601 = vmatprep.mubr.msk.bf16.mxu1 %vm335_vm0, %v9539_v51 }
0x1008   : > { %9059 = vmatprep.subr.msk.bf16.mxu1 %vm342_vm1, %v9115_v45  ;;  %v9119_v45 = vld [vmem:[%s9204_s8 + $0xb0] ss:$0 sps:$4 sm:$0x11]  }
0x100b   : > { %8600 = vmatpush3.bf16.msra.mxu1 %v3985_v46  ;;  %v4383_v46 = vsel %vm342_vm1, %v9119_v45, 0 }
0x100c   : > { %8594 = vmatmul.mubr.msk.bf16.vlgmr.msra.gmra.mrb[140].mxu0 %vm398_vm4, %v3833_v48  ;;  %8611 = vmatprep.subr.bf16.mxu1 %v9140_v1 }
0x100d   : > { %8606 = vmatpush3.bf16.msra.mxu0 %v9234_v9  ;;  %8607 = vmatprep.mubr.msk.bf16.mxu0 %vm9141_vm3, %v9140_v1 }
0x100e   : > { %8602 = vmatmul.mubr.msk.bf16.vlgmr.msra.gmra.mrb[144].mxu1 %vm335_vm0, %v9554_v56  ;;  %8617 = vmatprep.subr.bf16.mxu0 %v9140_v1 }
0x100f   : > { %8612 = vmatpush3.bf16.msra.mxu1 %v9245_v18  ;;  %8613 = vmatprep.mubr.msk.bf16.mxu1 %vm9141_vm3, %v9140_v1 }
0x1010   : > { %8623 = vmatprep.subr.bf16.mxu1 %v9116_v49 }
0x10d7   : > { %v3871_v50 = vpop.f32.mrb[136].mxu0 }
0x10d8   : > { %v3877_v52 = vadd.f32 %v3871_v50, %v3767_v34  ;;  %v8583_v53 = vpop.f32.mrb[137].mxu0 }
0x10d9   : > { %v3874_v57 = vpop.f32.mrb[138].mxu0  ;;  %v3917_v58 = vpop.f32.mrb[140].mxu1 }
0x10da   : > { %v3923_v59 = vadd.f32 %v3917_v58, %v3877_v52  ;;  %v8584_v60 = vpop.f32.mrb[139].mxu0  ;;  %v8589_v61 = vpop.f32.mrb[141].mxu1 }
0x10db   : > { %v3920_v62 = vpop.f32.mrb[142].mxu1 }
0x10dc   : > { %v8590_v63 = vpop.f32.mrb[143].mxu1 }
0x10df   : > { %v3961_v2 = vpop.f32.mrb[140].mxu0 }
0x10e0   : > { %v3967_v3 = vadd.f32 %v3961_v2, %v3923_v59  ;;  %v8595_v4 = vpop.f32.mrb[141].mxu0 }
0x10e1   : > { %v3964_v6 = vpop.f32.mrb[142].mxu0  ;;  %v8603_v8 = vpop.f32.mrb[144].mxu1 }
0x10e2   : > { %v3968_v10 = vadd.f32 %v9687_v37, %v3967_v3  ;;  %v8596_v11 = vpop.f32.mrb[143].mxu0  ;;  %v4021_v12 = vpop.f32.mrb[145].mxu1  ;;  %v4036_v22 = vpack.c.bf16 %v8603_v8, %v8603_v8 }
0x10e3   : > { %v8604_v13 = vpop.f32.mrb[146].mxu1 }
0x10e4   : > { %v3969_v14 = vmax.f32 %v3968_v10, 0.0  ;;  %v4024_v15 = vpop.f32.mrb[147].mxu1 }
0x10e5   : > { %v4035_v16 = vpack.c.bf16 %v4024_v15, %v4021_v12 }
0x10e6   : > { %3971 = vst.msk [vmem:[#allocation2 + $0x61] sm:$0xff] %vm293_vm5, %v3969_v14 }
0x10e7   : > { %v4038_v19 = vrot.slane %v4035_v16, 4  ;;  %8614 = vmatmul.mubr.msk.bf16.vlgmr.msra.gmra.mrb[148].mxu1 %vm398_vm4, %v4035_v16  ;;  %v9121_v16 = vld [vmem:[%s9204_s8 + $0xb0] ss:$0 sps:$4 sm:$0x11]  }
0x10e8   : > { %8624 = vmatpush3.bf16.msra.mxu1 %v9116_v49  ;;  %8627 = vmatprep.mubr.msk.bf16.mxu1 %vm335_vm0, %v9539_v51  ;;  %v9120_v49 = vld [vmem:[%s9204_s8 + $0xa8] sm:$0xff]  }
0x10e9   : > { %8608 = vmatmul.mubr.msk.bf16.vlgmr.msra.gmra.mrb[144].mxu0 %vm398_vm4, %v4038_v19  ;;  %9060 = vmatprep.subr.msk.bf16.mxu1 %vm342_vm1, %v9117_v17  ;;  %v4586_v17 = vsel %vm342_vm1, %v9121_v16, 0 }
0x10ea   : > { %8618 = vmatpush3.bf16.msra.mxu0 %v9222_v7  ;;  %8619 = vmatprep.mubr.msk.bf16.mxu0 %vm9141_vm3, %v9140_v1 }
0x10eb   : > { %8631 = vmatprep.subr.bf16.mxu0 %v9140_v1 }
0x10ec   : > { %8626 = vmatpush3.bf16.msra.mxu1 %v4183_v21 }
0x10ed   : > { %8637 = vmatprep.subr.bf16.mxu1 %v9140_v1 }
0x10ef   : > { %8628 = vmatmul.mubr.msk.bf16.vlgmr.msra.gmra.mrb[152].mxu1 %vm335_vm0, %v9554_v56 }
0x10f0   : > { %8638 = vmatpush3.bf16.msra.mxu1 %v9270_v24  ;;  %8639 = vmatprep.mubr.msk.bf16.mxu1 %vm9141_vm3, %v9140_v1 }
0x10f1   : > { %8620 = vmatmul.mubr.msk.bf16.vlgmr.msra.gmra.mrb[148].mxu0 %vm398_vm4, %v4036_v22  ;;  %8649 = vmatprep.subr.bf16.mxu1 %v9118_v38 }
0x10f2   : > { %8632 = vmatpush3.bf16.msra.mxu0 %v9273_v25  ;;  %8633 = vmatprep.mubr.msk.bf16.mxu0 %vm9141_vm3, %v9140_v1 }
0x10f3   : > { %8643 = vmatprep.subr.bf16.mxu0 %v9140_v1 }
0x11ba   : > { %v4119_v23 = vpop.f32.mrb[148].mxu1 }
0x11bb   : > { %v8615_v0 = vpop.f32.mrb[149].mxu1 }
0x11bc   : > { %v4076_v26 = vpop.f32.mrb[144].mxu0  ;;  %v4122_v27 = vpop.f32.mrb[150].mxu1 }
0x11bd   : > { %v4120_v28 = vadd.f32 %v4119_v23, %v4076_v26  ;;  %v8609_v29 = vpop.f32.mrb[145].mxu0  ;;  %v8616_v30 = vpop.f32.mrb[151].mxu1 }
0x11be   : > { %v4079_v31 = vpop.f32.mrb[146].mxu0 }
0x11bf   : > { %v8610_v32 = vpop.f32.mrb[147].mxu0 }
0x11c2   : > { %v8629_v33 = vpop.f32.mrb[152].mxu1 }
0x11c3   : > { %v4219_v34 = vpop.f32.mrb[153].mxu1  ;;  %v4234_v48 = vpack.c.bf16 %v8629_v33, %v8629_v33 }
0x11c4   : > { %v4162_v5 = vpop.f32.mrb[148].mxu0  ;;  %v8630_v35 = vpop.f32.mrb[154].mxu1 }
0x11c5   : > { %v4168_v36 = vadd.f32 %v4162_v5, %v4120_v28  ;;  %v8621_v39 = vpop.f32.mrb[149].mxu0  ;;  %v4222_v40 = vpop.f32.mrb[155].mxu1 }
0x11c6   : > { %v4233_v41 = vpack.c.bf16 %v4222_v40, %v4219_v34  ;;  %v4165_v42 = vpop.f32.mrb[150].mxu0 }
0x11c7   : > { %v8622_v43 = vpop.f32.mrb[151].mxu0 }
0x11c8   : > { %v4280_v44 = vrot.slane %v4233_v41, 4  ;;  %8634 = vmatmul.mubr.msk.bf16.vlgmr.msra.gmra.mrb[152].mxu0 %vm398_vm4, %v4233_v41  ;;  %v9123_v41 = vld [vmem:[%s9204_s8 + $0xbc] ss:$0 sps:$4 sm:$0x11]   ;;  %v9130_v43 = vld [vmem:[%s10230_s1] sm:$0xff]  }
0x11c9   : > { %8644 = vmatpush3.bf16.msra.mxu0 %v9283_v47  ;;  %8645 = vmatprep.mubr.msk.bf16.mxu0 %vm9141_vm3, %v9140_v1 }
0x11ca   : > { %8640 = vmatmul.mubr.msk.bf16.vlgmr.msra.gmra.mrb[156].mxu1 %vm398_vm4, %v4280_v44  ;;  %8657 = vmatprep.subr.bf16.mxu0 %v9140_v1  ;;  %v4784_v44 = vsel %vm342_vm1, %v9123_v41, 0 }
0x11cb   : > { %8650 = vmatpush3.bf16.msra.mxu1 %v9118_v38  ;;  %8653 = vmatprep.mubr.msk.bf16.mxu1 %vm335_vm0, %v9539_v51 }
0x11cc   : > { %9061 = vmatprep.subr.msk.bf16.mxu1 %vm342_vm1, %v9119_v45 }
0x11cf   : > { %8652 = vmatpush3.bf16.msra.mxu1 %v4383_v46  ;;  %v9131_v46 = vld [vmem:[%s10230_s1 + $0x8] ss:$0 sps:$4 sm:$0xff]  }
0x11d0   : > { %8646 = vmatmul.mubr.msk.bf16.vlgmr.msra.gmra.mrb[156].mxu0 %vm398_vm4, %v4234_v48  ;;  %8663 = vmatprep.subr.bf16.mxu1 %v9140_v1 }
0x11d1   : > { %8658 = vmatpush3.bf16.msra.mxu0 %v9314_v55  ;;  %8659 = vmatprep.mubr.msk.bf16.mxu0 %vm9141_vm3, %v9140_v1 }
0x11d2   : > { %8654 = vmatmul.mubr.msk.bf16.vlgmr.msra.gmra.mrb[160].mxu1 %vm335_vm0, %v9554_v56  ;;  %8669 = vmatprep.subr.bf16.mxu0 %v9140_v1 }
0x11d3   : > { %8664 = vmatpush3.bf16.msra.mxu1 %v9311_v54  ;;  %8665 = vmatprep.mubr.msk.bf16.mxu1 %vm9141_vm3, %v9140_v1 }
0x11d4   : > { %8675 = vmatprep.subr.bf16.mxu1 %v9120_v49 }
0x129b   : > { %v4272_v50 = vpop.f32.mrb[152].mxu0 }
0x129c   : > { %v4278_v52 = vadd.f32 %v4272_v50, %v4168_v36  ;;  %v8635_v53 = vpop.f32.mrb[153].mxu0 }
0x129d   : > { %v4275_v57 = vpop.f32.mrb[154].mxu0  ;;  %v4318_v58 = vpop.f32.mrb[156].mxu1 }
0x129e   : > { %v4324_v59 = vadd.f32 %v4318_v58, %v4278_v52  ;;  %v8636_v60 = vpop.f32.mrb[155].mxu0  ;;  %v8641_v61 = vpop.f32.mrb[157].mxu1 }
0x129f   : > { %v4321_v62 = vpop.f32.mrb[158].mxu1 }
0x12a0   : > { %v8642_v63 = vpop.f32.mrb[159].mxu1 }
0x12a3   : > { %v4362_v2 = vpop.f32.mrb[156].mxu0 }
0x12a4   : > { %v4368_v3 = vadd.f32 %v4362_v2, %v4324_v59  ;;  %v8647_v4 = vpop.f32.mrb[157].mxu0 }
0x12a5   : > { %v4365_v6 = vpop.f32.mrb[158].mxu0  ;;  %v8655_v8 = vpop.f32.mrb[160].mxu1 }
0x12a6   : > { %v8648_v10 = vpop.f32.mrb[159].mxu0  ;;  %v4419_v11 = vpop.f32.mrb[161].mxu1  ;;  %v4434_v19 = vpack.c.bf16 %v8655_v8, %v8655_v8 }
0x12a7   : > { %v8656_v12 = vpop.f32.mrb[162].mxu1 }
0x12a8   : > { %v4422_v13 = vpop.f32.mrb[163].mxu1 }
0x12a9   : > { %v4433_v14 = vpack.c.bf16 %v4422_v13, %v4419_v11  ;;  %v9125_v11 = vld [vmem:[%s9204_s8 + $0xc8] ss:$0 sps:$4 sm:$0x11]  }
0x12aa   : > { %v4984_v12 = vsel %vm342_vm1, %v9125_v11, 0 }
0x12ab   : > { %v4480_v15 = vrot.slane %v4433_v14, 4  ;;  %8660 = vmatmul.mubr.msk.bf16.vlgmr.msra.gmra.mrb[160].mxu0 %vm398_vm4, %v4433_v14 }
0x12ac   : > { %8670 = vmatpush3.bf16.msra.mxu0 %v9324_v20  ;;  %8671 = vmatprep.mubr.msk.bf16.mxu0 %vm9141_vm3, %v9140_v1 }
0x12ad   : > { %8666 = vmatmul.mubr.msk.bf16.vlgmr.msra.gmra.mrb[164].mxu1 %vm398_vm4, %v4480_v15  ;;  %8683 = vmatprep.subr.bf16.mxu0 %v9140_v1 }
0x12ae   : > { %8676 = vmatpush3.bf16.msra.mxu1 %v9120_v49  ;;  %8679 = vmatprep.mubr.msk.bf16.mxu1 %vm335_vm0, %v9539_v51  ;;  %v9122_v51 = vld [vmem:[%s9204_s8 + $0xb4] sm:$0xff]  }
0x12af   : > { %9062 = vmatprep.subr.msk.bf16.mxu1 %vm342_vm1, %v9121_v16 }
0x12b2   : > { %8678 = vmatpush3.bf16.msra.mxu1 %v4586_v17 }
0x12b3   : > { %8672 = vmatmul.mubr.msk.bf16.vlgmr.msra.gmra.mrb[164].mxu0 %vm398_vm4, %v4434_v19  ;;  %8689 = vmatprep.subr.bf16.mxu1 %v9140_v1 }
0x12b4   : > { %8684 = vmatpush3.bf16.msra.mxu0 %v9234_v9  ;;  %8685 = vmatprep.mubr.msk.bf16.mxu0 %vm9141_vm3, %v9140_v1 }
0x12b5   : > { %8680 = vmatmul.mubr.msk.bf16.vlgmr.msra.gmra.mrb[168].mxu1 %vm335_vm0, %v9554_v56  ;;  %8695 = vmatprep.subr.bf16.mxu0 %v9140_v1 }
0x12b6   : > { %8690 = vmatpush3.bf16.msra.mxu1 %v9245_v18  ;;  %8691 = vmatprep.mubr.msk.bf16.mxu1 %vm9141_vm3, %v9140_v1 }
0x12b7   : > { %8701 = vmatprep.subr.bf16.mxu1 %v9122_v51 }
0x137e   : > { %v4472_v21 = vpop.f32.mrb[160].mxu0 }
0x137f   : > { %v4478_v22 = vadd.f32 %v4472_v21, %v4368_v3  ;;  %v8661_v38 = vpop.f32.mrb[161].mxu0 }
0x1380   : > { %v4475_v23 = vpop.f32.mrb[162].mxu0  ;;  %v4518_v9 = vpop.f32.mrb[164].mxu1 }
0x1381   : > { %v4524_v0 = vadd.f32 %v4518_v9, %v4478_v22  ;;  %v8662_v26 = vpop.f32.mrb[163].mxu0  ;;  %v8667_v27 = vpop.f32.mrb[165].mxu1 }
0x1382   : > { %v4521_v28 = vpop.f32.mrb[166].mxu1 }
0x1383   : > { %v8668_v56 = vpop.f32.mrb[167].mxu1 }
0x1386   : > { %v4562_v29 = vpop.f32.mrb[164].mxu0 }
0x1387   : > { %v4568_v30 = vadd.f32 %v4562_v29, %v4524_v0  ;;  %v8673_v31 = vpop.f32.mrb[165].mxu0  ;;  %v5186_v0 = vld [vmem:[#allocation2] sm:$0xff] }
0x1388   : > { %v4565_v18 = vpop.f32.mrb[166].mxu0  ;;  %v8681_v32 = vpop.f32.mrb[168].mxu1 }
0x1389   : > { %v4569_v33 = vadd.f32 %v9687_v37, %v4568_v30  ;;  %v8674_v34 = vpop.f32.mrb[167].mxu0  ;;  %v4622_v5 = vpop.f32.mrb[169].mxu1  ;;  %v4637_v45 = vpack.c.bf16 %v8681_v32, %v8681_v32 }
0x138a   : > { %v8682_v35 = vpop.f32.mrb[170].mxu1 }
0x138b   : > { %v4570_v36 = vmax.f32 %v4569_v33, 0.0  ;;  %v4625_v39 = vpop.f32.mrb[171].mxu1 }
0x138c   : > { %v4636_v40 = vpack.c.bf16 %v4625_v39, %v4622_v5  ;;  %v9894_v5 = vld [vmem:[%s10233_s4] sm:$0x3f]  }
0x138d   : > { %4572 = vst.msk [vmem:[#allocation2 + $0x71] sm:$0xff] %vm293_vm5, %v4570_v36  ;;  %v5177_v36 = vld [vmem:[%s10234_s5 + $0x4] sm:$0xf] }
0x138e   : > { %v4639_v42 = vrot.slane %v4636_v40, 4  ;;  %8692 = vmatmul.mubr.msk.bf16.vlgmr.msra.gmra.mrb[172].mxu1 %vm398_vm4, %v4636_v40  ;;  %v9915_v39 = vsel %vm5249_vm9, %v5177_v36, 0 }
0x138f   : > { %8702 = vmatpush3.bf16.msra.mxu1 %v9122_v51  ;;  %8705 = vmatprep.mubr.msk.bf16.mxu1 %vm335_vm0, %v9130_v43 }
0x1390   : > { %8686 = vmatmul.mubr.msk.bf16.vlgmr.msra.gmra.mrb[168].mxu0 %vm398_vm4, %v4639_v42  ;;  %9063 = vmatprep.subr.msk.bf16.mxu1 %vm342_vm1, %v9123_v41 }
0x1391   : > { %8696 = vmatpush3.bf16.msra.mxu0 %v9222_v7  ;;  %8697 = vmatprep.mubr.msk.bf16.mxu0 %vm9141_vm3, %v9140_v1  ;;  %v9124_v7 = vld [vmem:[%s9204_s8 + $0xc0] sm:$0xff]  }
0x1392   : > { %8709 = vmatprep.subr.bf16.mxu0 %v9140_v1 }
0x1393   : > { %8704 = vmatpush3.bf16.msra.mxu1 %v4784_v44 }
0x1394   : > { %8715 = vmatprep.subr.bf16.mxu1 %v9140_v1 }
0x1396   : > { %8706 = vmatmul.mubr.msk.bf16.vlgmr.msra.gmra.mrb[176].mxu1 %vm335_vm0, %v9131_v46 }
0x1397   : > { %8716 = vmatpush3.bf16.msra.mxu1 %v9270_v24  ;;  %8717 = vmatprep.mubr.msk.bf16.mxu1 %vm9141_vm3, %v9140_v1 }
0x1398   : > { %8698 = vmatmul.mubr.msk.bf16.vlgmr.msra.gmra.mrb[172].mxu0 %vm398_vm4, %v4637_v45  ;;  %8727 = vmatprep.subr.bf16.mxu1 %v9124_v7 }
0x1399   : > { %8710 = vmatpush3.bf16.msra.mxu0 %v9273_v25  ;;  %8711 = vmatprep.mubr.msk.bf16.mxu0 %vm9141_vm3, %v9140_v1 }
0x139a   : > { %8721 = vmatprep.subr.bf16.mxu0 %v9140_v1 }
0x1461   : > { %v4720_v48 = vpop.f32.mrb[172].mxu1 }
0x1462   : > { %v8693_v49 = vpop.f32.mrb[173].mxu1 }
0x1463   : > { %v4677_v50 = vpop.f32.mrb[168].mxu0  ;;  %v4723_v52 = vpop.f32.mrb[174].mxu1 }
0x1464   : > { %v4721_v53 = vadd.f32 %v4720_v48, %v4677_v50  ;;  %v8687_v24 = vpop.f32.mrb[169].mxu0  ;;  %v8694_v57 = vpop.f32.mrb[175].mxu1  ;;  %v5387_v52 = vld [vmem:[#allocation2 + $0x10] sm:$0xff] }
0x1465   : > { %v4680_v58 = vpop.f32.mrb[170].mxu0 }
0x1466   : > { %v8688_v59 = vpop.f32.mrb[171].mxu0 }
0x1469   : > { %v8707_v60 = vpop.f32.mrb[176].mxu1 }
0x146a   : > { %v4820_v61 = vpop.f32.mrb[177].mxu1  ;;  %v4835_v13 = vpack.c.bf16 %v8707_v60, %v8707_v60 }
0x146b   : > { %v4763_v25 = vpop.f32.mrb[172].mxu0  ;;  %v8708_v62 = vpop.f32.mrb[178].mxu1 }
0x146c   : > { %v4769_v63 = vadd.f32 %v4763_v25, %v4721_v53  ;;  %v8699_v2 = vpop.f32.mrb[173].mxu0  ;;  %v4823_v3 = vpop.f32.mrb[179].mxu1  ;;  %v5388_v53 = vld [vmem:[#allocation2 + $0x18] sm:$0x3] }
0x146d   : > { %v4834_v4 = vpack.c.bf16 %v4823_v3, %v4820_v61  ;;  %v4766_v6 = vpop.f32.mrb[174].mxu0  ;;  %v5389_v62 = vpack.c.bf16 %v5388_v53, %v5387_v52  ;;  %v5178_v2 = vld [vmem:[%s10234_s5 + $0x8] sm:$0xf] }
0x146e   : > { %v8700_v8 = vpop.f32.mrb[175].mxu0 }
0x146f   : > { %v4881_v10 = vrot.slane %v4834_v4, 4  ;;  %8712 = vmatmul.mubr.msk.bf16.vlgmr.msra.gmra.mrb[176].mxu0 %vm398_vm4, %v4834_v4 }
0x1470   : > { %8722 = vmatpush3.bf16.msra.mxu0 %v9283_v47  ;;  %8723 = vmatprep.mubr.msk.bf16.mxu0 %vm9141_vm3, %v9140_v1 }
0x1471   : > { %8718 = vmatmul.mubr.msk.bf16.vlgmr.msra.gmra.mrb[180].mxu1 %vm398_vm4, %v4881_v10  ;;  %8735 = vmatprep.subr.bf16.mxu0 %v9140_v1  ;;  %v5391_v10 = vsel %vm5198_vm7, %v5389_v62, 0  ;;  %v5782_v62 = vld [vmem:[#allocation2 + $0x28] sm:$0x3] }
0x1472   : > { %8728 = vmatpush3.bf16.msra.mxu1 %v9124_v7  ;;  %8731 = vmatprep.mubr.msk.bf16.mxu1 %vm335_vm0, %v9130_v43 }
0x1473   : > { %9064 = vmatprep.subr.msk.bf16.mxu1 %vm342_vm1, %v9125_v11 }
0x1476   : > { %8730 = vmatpush3.bf16.msra.mxu1 %v4984_v12  ;;  %v5180_v12 = vld [vmem:[%s10234_s5 + $0x10] sm:$0xf] }
0x1477   : > { %8724 = vmatmul.mubr.msk.bf16.vlgmr.msra.gmra.mrb[180].mxu0 %vm398_vm4, %v4835_v13  ;;  %8741 = vmatprep.subr.bf16.mxu1 %v9140_v1  ;;  %v9948_v13 = vsel %vm5249_vm9, %v5180_v12, 0 }
0x1478   : > { %8736 = vmatpush3.bf16.msra.mxu0 %v9314_v55  ;;  %8737 = vmatprep.mubr.msk.bf16.mxu0 %vm9141_vm3, %v9140_v1 }
0x1479   : > { %8732 = vmatmul.mubr.msk.bf16.vlgmr.msra.gmra.mrb[184].mxu1 %vm335_vm0, %v9131_v46  ;;  %8747 = vmatprep.subr.bf16.mxu0 %v9140_v1 }
0x147a   : > { %8742 = vmatpush3.bf16.msra.mxu1 %v9311_v54  ;;  %8743 = vmatprep.mubr.msk.bf16.mxu1 %vm9141_vm3, %v9140_v1  ;;  %v5187_v54 = vld [vmem:[#allocation2 + $0x8] sm:$0x3] }
0x147b   : > { %8753 = vmatprep.subr.bf16.mxu1 %v9140_v1  ;;  %v5188_v30 = vpack.c.bf16 %v5187_v54, %v5186_v0  ;;  %v5580_v0 = vld [vmem:[#allocation2 + $0x28] sm:$0x3]  ;;  %v5181_v54 = vld [vmem:[%s10234_s5 + $0x14] sm:$0xf] }
0x147d   : > { %v5200_v33 = vsel %vm5198_vm7, %v5188_v30, 0 }
0x1542   : > { %v4873_v47 = vpop.f32.mrb[176].mxu0 }
0x1543   : > { %v4879_v14 = vadd.f32 %v4873_v47, %v4769_v63  ;;  %v8713_v15 = vpop.f32.mrb[177].mxu0  ;;  %v5179_v47 = vld [vmem:[%s10234_s5 + $0xc] sm:$0xf] }
0x1544   : > { %v4876_v16 = vpop.f32.mrb[178].mxu0  ;;  %v4919_v17 = vpop.f32.mrb[180].mxu1 }
0x1545   : > { %v4925_v55 = vadd.f32 %v4919_v17, %v4879_v14  ;;  %v8714_v19 = vpop.f32.mrb[179].mxu0  ;;  %v8719_v51 = vpop.f32.mrb[181].mxu1  ;;  %v9956_v14 = vsel %vm5249_vm9, %v5179_v47, 0 }
0x1546   : > { %v4922_v21 = vpop.f32.mrb[182].mxu1 }
0x1547   : > { %v8720_v22 = vpop.f32.mrb[183].mxu1 }
0x154a   : > { %v4963_v38 = vpop.f32.mrb[180].mxu0 }
0x154b   : > { %v4969_v23 = vadd.f32 %v4963_v38, %v4925_v55  ;;  %v8725_v9 = vpop.f32.mrb[181].mxu0 }
0x154c   : > { %v4966_v26 = vpop.f32.mrb[182].mxu0  ;;  %v8733_v27 = vpop.f32.mrb[184].mxu1  ;;  %v9960_v9 = vld [vmem:[#allocation2 + $0x20] sm:$0xff] }
0x154d   : > { %v8726_v28 = vpop.f32.mrb[183].mxu0  ;;  %v5020_v56 = vpop.f32.mrb[185].mxu1  ;;  %v5035_v34 = vpack.c.bf16 %v8733_v27, %v8733_v27 }
0x154e   : > { %v8734_v29 = vpop.f32.mrb[186].mxu1 }
0x154f   : > { %v5023_v31 = vpop.f32.mrb[187].mxu1 }
0x1550   : > { %v5034_v18 = vpack.c.bf16 %v5023_v31, %v5020_v56 }
0x1552   : > { %v5081_v32 = vrot.slane %v5034_v18, 4  ;;  %8738 = vmatmul.mubr.msk.bf16.vlgmr.msra.gmra.mrb[184].mxu0 %vm398_vm4, %v5034_v18  ;;  %v5581_v18 = vpack.c.bf16 %v5580_v0, %v9960_v9  ;;  %v10033_v0 = vld [vmem:[%s10235_s6] ss:$0 sm:$0xff] }
0x1553   : > { %8748 = vmatpush3.bf16.msra.mxu0 %v9324_v20  ;;  %8749 = vmatprep.mubr.msk.bf16.mxu0 %vm9141_vm3, %v9140_v1  ;;  %v5176_v20 = vld [vmem:[%s10234_s5] sm:$0xf] }
0x1554   : > { %8744 = vmatmul.mubr.msk.bf16.vlgmr.msra.gmra.mrb[188].mxu1 %vm398_vm4, %v5081_v32  ;;  %8759 = vmatprep.subr.bf16.mxu0 %v9140_v1  ;;  %v9907_v35 = vsel %vm5249_vm9, %v5176_v20, 0  ;;  %v9967_v32 = vsel %vm5249_vm9, %v5181_v54, 0  ;;  %v5583_v36 = vsel %vm5198_vm7, %v5581_v18, 0 }
0x1555   : > { %8754 = vmatpush3.bf16.msra.mxu1 %v5200_v33  ;;  %8755 = vmatprep.mubr.msk.bf16.mxu1 %vm9141_vm3, %v9140_v1 }
0x1556   : > { %8765 = vmatprep.subr.bf16.mxu1 %v9140_v1 }
0x155a   : > { %8750 = vmatmul.mubr.msk.bf16.vlgmr.msra.gmra.mrb[188].mxu0 %vm398_vm4, %v5035_v34 }
0x155b   : > { %8761 = vmatprep.mubr.msk.bf16.mxu0 %vm9141_vm3, %v9140_v1  ;;  %8760 = vmatpush3.bf16.msra.mxu0 %v9915_v39 }
0x155c   : > { %8756 = vmatmul.mubr.msk.bf16.vlgmr.msra.gmra.mrb[192].mxu1 %vm5194_vm8, %v9894_v5  ;;  %8771 = vmatprep.subr.bf16.mxu0 %v9140_v1 }
0x155d   : > { %8767 = vmatprep.mubr.msk.bf16.mxu1 %vm9141_vm3, %v9140_v1  ;;  %8766 = vmatpush3.bf16.msra.mxu1 %v9907_v35 }
0x155e   : > { %8777 = vmatprep.subr.bf16.mxu1 %v9140_v1 }
0x1625   : > { %v5073_v40 = vpop.f32.mrb[184].mxu0 }
0x1626   : > { %v5079_v41 = vadd.f32 %v5073_v40, %v4969_v23  ;;  %v8739_v42 = vpop.f32.mrb[185].mxu0 }
0x1627   : > { %v5076_v43 = vpop.f32.mrb[186].mxu0  ;;  %v5119_v44 = vpop.f32.mrb[188].mxu1 }
0x1628   : > { %v5125_v45 = vadd.f32 %v5119_v44, %v5079_v41  ;;  %v8740_v46 = vpop.f32.mrb[187].mxu0  ;;  %v8745_v7 = vpop.f32.mrb[189].mxu1  ;;  %v5183_v41 = vld [vmem:[%s10234_s5 + $0x1c] sm:$0xf]  ;;  %v5182_v43 = vld [vmem:[%s10234_s5 + $0x18] sm:$0xf] }
0x1629   : > { %v5122_v48 = vpop.f32.mrb[190].mxu1  ;;  %v9990_v42 = vsel %vm5249_vm9, %v5183_v41, 0  ;;  %v9997_v44 = vsel %vm5249_vm9, %v5182_v43, 0 }
0x162a   : > { %v8746_v49 = vpop.f32.mrb[191].mxu1 }
0x162d   : > { %v5163_v50 = vpop.f32.mrb[188].mxu0 }
0x162e   : > { %v5169_v24 = vadd.f32 %v5163_v50, %v5125_v45  ;;  %v8751_v57 = vpop.f32.mrb[189].mxu0 }
0x162f   : > { %v5166_v58 = vpop.f32.mrb[190].mxu0  ;;  %v5236_v59 = vpop.f32.mrb[192].mxu1 }
0x1630   : > { %v5170_v60 = vadd.f32 %v9687_v37, %v5169_v24  ;;  %v8752_v61 = vpop.f32.mrb[191].mxu0  ;;  %v8757_v25 = vpop.f32.mrb[193].mxu1  ;;  %v9927_v37 = vsel %vm5249_vm9, %v5178_v2, 0 }
0x1631   : > { %v5239_v63 = vpop.f32.mrb[194].mxu1 }
0x1632   : > { %v5171_v3 = vmax.f32 %v5170_v60, 0.0  ;;  %v5243_v4 = vpack.c.bf16 %v5239_v63, %v5236_v59  ;;  %v8758_v6 = vpop.f32.mrb[195].mxu1  ;;  %v5184_v63 = vld [vmem:[%s10234_s5 + $0x20] sm:$0xf] }
0x1634   : > { %5173 = vst.msk [vmem:[#allocation2 + $0x81] sm:$0xff] %vm293_vm5, %v5171_v3  ;;  %v5245_v8 = vrot.slane %v5243_v4, 2  ;;  %8768 = vmatmul.mubr.msk.bf16.vlgmr.msra.gmra.mrb[196].mxu1 %vm293_vm5, %v5243_v4  ;;  %v5339_v11 = vrot.slane %v5243_v4, 4 }
0x1635   : > { %8778 = vmatpush3.bf16.msra.mxu1 %v5391_v10  ;;  %8779 = vmatprep.mubr.msk.bf16.mxu1 %vm9141_vm3, %v9140_v1  ;;  %v5783_v10 = vpack.c.bf16 %v5782_v62, %v9960_v9 }
0x1636   : > { %8762 = vmatmul.mubr.msk.bf16.vlgmr.msra.gmra.mrb[192].mxu0 %vm293_vm5, %v5245_v8  ;;  %8789 = vmatprep.subr.bf16.mxu1 %v9140_v1 }
0x1637   : > { %8772 = vmatpush3.bf16.msra.mxu0 %v9927_v37  ;;  %8773 = vmatprep.mubr.msk.bf16.mxu0 %vm9141_vm3, %v9140_v1  ;;  %v5785_v47 = vsel %vm5198_vm7, %v5783_v10, 0 }
0x1638   : > { %8783 = vmatprep.subr.bf16.mxu0 %v9140_v1 }
0x163c   : > { %8780 = vmatmul.mubr.msk.bf16.vlgmr.msra.gmra.mrb[200].mxu1 %vm5194_vm8, %v9894_v5 }
0x163d   : > { %8791 = vmatprep.mubr.msk.bf16.mxu1 %vm9141_vm3, %v9140_v1  ;;  %8790 = vmatpush3.bf16.msra.mxu1 %v9948_v13 }
0x163e   : > { %8774 = vmatmul.mubr.msk.bf16.vlgmr.msra.gmra.mrb[196].mxu0 %vm293_vm5, %v5339_v11  ;;  %8801 = vmatprep.subr.bf16.mxu1 %v9140_v1  ;;  %v10007_v11 = vsel %vm5249_vm9, %v5184_v63, 0 }
0x163f   : > { %8785 = vmatprep.mubr.msk.bf16.mxu0 %vm9141_vm3, %v9140_v1  ;;  %8784 = vmatpush3.bf16.msra.mxu0 %v9956_v14 }
0x1640   : > { %8795 = vmatprep.subr.bf16.mxu0 %v9140_v1 }
0x1707   : > { %v5333_v15 = vpop.f32.mrb[196].mxu1 }
0x1708   : > { %v8769_v16 = vpop.f32.mrb[197].mxu1 }
0x1709   : > { %v5287_v17 = vpop.f32.mrb[192].mxu0  ;;  %v5336_v55 = vpop.f32.mrb[198].mxu1 }
0x170a   : > { %v5334_v19 = vadd.f32 %v5333_v15, %v5287_v17  ;;  %v8763_v51 = vpop.f32.mrb[193].mxu0  ;;  %v8770_v21 = vpop.f32.mrb[199].mxu1 }
0x170b   : > { %v5290_v22 = vpop.f32.mrb[194].mxu0 }
0x170c   : > { %v8764_v38 = vpop.f32.mrb[195].mxu0 }
0x170f   : > { %v5427_v23 = vpop.f32.mrb[200].mxu1 }
0x1710   : > { %v8781_v26 = vpop.f32.mrb[201].mxu1 }
0x1711   : > { %v5380_v27 = vpop.f32.mrb[196].mxu0  ;;  %v5430_v28 = vpop.f32.mrb[202].mxu1  ;;  %v5962_v26 = vld [vmem:[#allocation2 + $0x30] sm:$0xff] }
0x1712   : > { %v5386_v56 = vadd.f32 %v5380_v27, %v5334_v19  ;;  %v5434_v29 = vpack.c.bf16 %v5430_v28, %v5427_v23  ;;  %v8775_v30 = vpop.f32.mrb[197].mxu0  ;;  %v8782_v31 = vpop.f32.mrb[203].mxu1  ;;  %v5963_v27 = vld [vmem:[#allocation2 + $0x38] sm:$0x3] }
0x1713   : > { %v5383_v33 = vpop.f32.mrb[198].mxu0 }
0x1714   : > { %v5483_v34 = vrot.slane %v5434_v29, 2  ;;  %v8776_v20 = vpop.f32.mrb[199].mxu0  ;;  %8786 = vmatmul.mubr.msk.bf16.vlgmr.msra.gmra.mrb[200].mxu0 %vm293_vm5, %v5434_v29  ;;  %v5531_v40 = vrot.slane %v5434_v29, 4 }
0x1715   : > { %8796 = vmatpush3.bf16.msra.mxu0 %v9967_v32  ;;  %8797 = vmatprep.mubr.msk.bf16.mxu0 %vm9141_vm3, %v9140_v1 }
0x1716   : > { %8792 = vmatmul.mubr.msk.bf16.vlgmr.msra.gmra.mrb[204].mxu1 %vm293_vm5, %v5483_v34  ;;  %8807 = vmatprep.subr.bf16.mxu0 %v9140_v1  ;;  %v5964_v34 = vpack.c.bf16 %v5963_v27, %v5962_v26 }
0x1717   : > { %8802 = vmatpush3.bf16.msra.mxu1 %v5583_v36  ;;  %8803 = vmatprep.mubr.msk.bf16.mxu1 %vm9141_vm3, %v9140_v1 }
0x1718   : > { %8813 = vmatprep.subr.bf16.mxu1 %v9140_v1 }
0x171c   : > { %8798 = vmatmul.mubr.msk.bf16.vlgmr.msra.gmra.mrb[204].mxu0 %vm293_vm5, %v5531_v40 }
0x171d   : > { %8809 = vmatprep.mubr.msk.bf16.mxu0 %vm9141_vm3, %v9140_v1  ;;  %8808 = vmatpush3.bf16.msra.mxu0 %v9997_v44 }
0x171e   : > { %8804 = vmatmul.mubr.msk.bf16.vlgmr.msra.gmra.mrb[208].mxu1 %vm5194_vm8, %v9894_v5  ;;  %8819 = vmatprep.subr.bf16.mxu0 %v9140_v1 }
0x171f   : > { %8815 = vmatprep.mubr.msk.bf16.mxu1 %vm9141_vm3, %v9140_v1  ;;  %8814 = vmatpush3.bf16.msra.mxu1 %v9990_v42 }
0x1720   : > { %8825 = vmatprep.subr.bf16.mxu1 %v9140_v1 }
0x17e7   : > { %v5475_v45 = vpop.f32.mrb[200].mxu0 }
0x17e8   : > { %v5481_v46 = vadd.f32 %v5475_v45, %v5386_v56  ;;  %v8787_v7 = vpop.f32.mrb[201].mxu0  ;;  %v5966_v45 = vsel %vm5198_vm7, %v5964_v34, 0 }
0x17e9   : > { %v5478_v48 = vpop.f32.mrb[202].mxu0  ;;  %v5524_v49 = vpop.f32.mrb[204].mxu1 }
0x17ea   : > { %v5530_v50 = vadd.f32 %v5524_v49, %v5481_v46  ;;  %v8788_v52 = vpop.f32.mrb[203].mxu0  ;;  %v8793_v53 = vpop.f32.mrb[205].mxu1 }
0x17eb   : > { %v5527_v24 = vpop.f32.mrb[206].mxu1 }
0x17ec   : > { %v8794_v57 = vpop.f32.mrb[207].mxu1 }
0x17ef   : > { %v5572_v58 = vpop.f32.mrb[204].mxu0 }
0x17f0   : > { %v5578_v59 = vadd.f32 %v5572_v58, %v5530_v50  ;;  %v8799_v60 = vpop.f32.mrb[205].mxu0 }
0x17f1   : > { %v5575_v61 = vpop.f32.mrb[206].mxu0  ;;  %v5619_v25 = vpop.f32.mrb[208].mxu1  ;;  %v6145_v60 = vld [vmem:[#allocation2 + $0x40] sm:$0xff] }
0x17f2   : > { %v8800_v2 = vpop.f32.mrb[207].mxu0  ;;  %v8805_v3 = vpop.f32.mrb[209].mxu1  ;;  %v6146_v61 = vld [vmem:[#allocation2 + $0x48] sm:$0x3] }
0x17f3   : > { %v5622_v4 = vpop.f32.mrb[210].mxu1 }
0x17f4   : > { %v5626_v6 = vpack.c.bf16 %v5622_v4, %v5619_v25  ;;  %v8806_v8 = vpop.f32.mrb[211].mxu1 }
0x17f5   : > { %v6147_v8 = vpack.c.bf16 %v6146_v61, %v6145_v60 }
0x17f6   : > { %v5675_v12 = vrot.slane %v5626_v6, 2  ;;  %8810 = vmatmul.mubr.msk.bf16.vlgmr.msra.gmra.mrb[208].mxu0 %vm293_vm5, %v5626_v6  ;;  %v5723_v15 = vrot.slane %v5626_v6, 4 }
0x17f7   : > { %8820 = vmatpush3.bf16.msra.mxu0 %v10007_v11  ;;  %8821 = vmatprep.mubr.msk.bf16.mxu0 %vm9141_vm3, %v9140_v1 }
0x17f8   : > { %8816 = vmatmul.mubr.msk.bf16.vlgmr.msra.gmra.mrb[212].mxu1 %vm293_vm5, %v5675_v12  ;;  %8831 = vmatprep.subr.bf16.mxu0 %v9140_v1 }
0x17f9   : > { %8826 = vmatpush3.bf16.msra.mxu1 %v5785_v47  ;;  %8827 = vmatprep.mubr.msk.bf16.mxu1 %vm9141_vm3, %v9140_v1 }
0x17fa   : > { %8837 = vmatprep.subr.bf16.mxu1 %v9140_v1 }
0x17fe   : > { %8822 = vmatmul.mubr.msk.bf16.vlgmr.msra.gmra.mrb[212].mxu0 %vm293_vm5, %v5723_v15  ;;  %v6149_v15 = vsel %vm5198_vm7, %v6147_v8, 0 }
0x17ff   : > { %8832 = vmatpush3.bf16.msra.mxu0 %v9915_v39  ;;  %8833 = vmatprep.mubr.msk.bf16.mxu0 %vm9141_vm3, %v9140_v1 }
0x1800   : > { %8828 = vmatmul.mubr.msk.bf16.vlgmr.msra.gmra.mrb[216].mxu1 %vm5194_vm8, %v9894_v5  ;;  %8843 = vmatprep.subr.bf16.mxu0 %v9140_v1 }
0x1801   : > { %8838 = vmatpush3.bf16.msra.mxu1 %v9907_v35  ;;  %8839 = vmatprep.mubr.msk.bf16.mxu1 %vm9141_vm3, %v9140_v1 }
0x1802   : > { %8849 = vmatprep.subr.bf16.mxu1 %v9140_v1 }
0x18c9   : > { %v5667_v16 = vpop.f32.mrb[208].mxu0 }
0x18ca   : > { %v5673_v17 = vadd.f32 %v5667_v16, %v5578_v59  ;;  %v8811_v55 = vpop.f32.mrb[209].mxu0 }
0x18cb   : > { %v5670_v19 = vpop.f32.mrb[210].mxu0  ;;  %v5716_v51 = vpop.f32.mrb[212].mxu1 }
0x18cc   : > { %v5722_v21 = vadd.f32 %v5716_v51, %v5673_v17  ;;  %v8812_v22 = vpop.f32.mrb[211].mxu0  ;;  %v8817_v38 = vpop.f32.mrb[213].mxu1 }
0x18cd   : > { %v5719_v23 = vpop.f32.mrb[214].mxu1 }
0x18ce   : > { %v8818_v9 = vpop.f32.mrb[215].mxu1 }
0x18d1   : > { %v5764_v54 = vpop.f32.mrb[212].mxu0 }
0x18d2   : > { %v5770_v28 = vadd.f32 %v5764_v54, %v5722_v21  ;;  %v8823_v56 = vpop.f32.mrb[213].mxu0 }
0x18d3   : > { %v5767_v29 = vpop.f32.mrb[214].mxu0  ;;  %v5821_v30 = vpop.f32.mrb[216].mxu1 }
0x18d4   : > { %v5777_v31 = vadd.f32 %v10033_v0, %v5770_v28  ;;  %v8824_v18 = vpop.f32.mrb[215].mxu0  ;;  %v8829_v33 = vpop.f32.mrb[217].mxu1 }
0x18d5   : > { %v5824_v20 = vpop.f32.mrb[218].mxu1 }
0x18d6   : > { %v5778_v36 = vmax.f32 %v5777_v31, 0.0  ;;  %v5828_v40 = vpack.c.bf16 %v5824_v20, %v5821_v30  ;;  %v8830_v41 = vpop.f32.mrb[219].mxu1  ;;  %v6333_v30 = vld [vmem:[#allocation2 + $0x48] sm:$0x3] }
0x18d8   : > { %5780 = vst.msk [vmem:[%s10040_s26] sm:$0xf] %vm5779_vm10, %v5778_v36  ;;  %v5830_v43 = vrot.slane %v5828_v40, 2  ;;  %8840 = vmatmul.mubr.msk.bf16.vlgmr.msra.gmra.mrb[220].mxu1 %vm293_vm5, %v5828_v40  ;;  %v5917_v46 = vrot.slane %v5828_v40, 4  ;;  %v6334_v36 = vpack.c.bf16 %v6333_v30, %v6145_v60  ;;  %v6514_v60 = vld [vmem:[#allocation2 + $0x58] sm:$0x3] }
0x18d9   : > { %8850 = vmatpush3.bf16.msra.mxu1 %v5966_v45  ;;  %8851 = vmatprep.mubr.msk.bf16.mxu1 %vm9141_vm3, %v9140_v1 }
0x18da   : > { %8834 = vmatmul.mubr.msk.bf16.vlgmr.msra.gmra.mrb[216].mxu0 %vm293_vm5, %v5830_v43  ;;  %8861 = vmatprep.subr.bf16.mxu1 %v9140_v1  ;;  %v6336_v41 = vsel %vm5198_vm7, %v6334_v36, 0 }
0x18db   : > { %8844 = vmatpush3.bf16.msra.mxu0 %v9927_v37  ;;  %8845 = vmatprep.mubr.msk.bf16.mxu0 %vm9141_vm3, %v9140_v1 }
0x18dc   : > { %8855 = vmatprep.subr.bf16.mxu0 %v9140_v1 }
0x18e0   : > { %8852 = vmatmul.mubr.msk.bf16.vlgmr.msra.gmra.mrb[224].mxu1 %vm5194_vm8, %v9894_v5 }
0x18e1   : > { %8862 = vmatpush3.bf16.msra.mxu1 %v9948_v13  ;;  %8863 = vmatprep.mubr.msk.bf16.mxu1 %vm9141_vm3, %v9140_v1 }
0x18e2   : > { %8846 = vmatmul.mubr.msk.bf16.vlgmr.msra.gmra.mrb[220].mxu0 %vm293_vm5, %v5917_v46  ;;  %8873 = vmatprep.subr.bf16.mxu1 %v9140_v1 }
0x18e3   : > { %8856 = vmatpush3.bf16.msra.mxu0 %v9956_v14  ;;  %8857 = vmatprep.mubr.msk.bf16.mxu0 %vm9141_vm3, %v9140_v1 }
0x18e4   : > { %8867 = vmatprep.subr.bf16.mxu0 %v9140_v1 }
0x19ab   : > { %v5911_v7 = vpop.f32.mrb[220].mxu1 }
0x19ac   : > { %v8841_v48 = vpop.f32.mrb[221].mxu1 }
0x19ad   : > { %v5868_v49 = vpop.f32.mrb[216].mxu0  ;;  %v5914_v50 = vpop.f32.mrb[222].mxu1 }
0x19ae   : > { %v5912_v52 = vadd.f32 %v5911_v7, %v5868_v49  ;;  %v8835_v53 = vpop.f32.mrb[217].mxu0  ;;  %v8842_v24 = vpop.f32.mrb[223].mxu1 }
0x19af   : > { %v5871_v57 = vpop.f32.mrb[218].mxu0 }
0x19b0   : > { %v8836_v58 = vpop.f32.mrb[219].mxu0 }
0x19b3   : > { %v6002_v59 = vpop.f32.mrb[224].mxu1 }
0x19b4   : > { %v8853_v25 = vpop.f32.mrb[225].mxu1 }
0x19b5   : > { %v5955_v62 = vpop.f32.mrb[220].mxu0  ;;  %v6005_v63 = vpop.f32.mrb[226].mxu1 }
0x19b6   : > { %v5961_v2 = vadd.f32 %v5955_v62, %v5912_v52  ;;  %v6009_v3 = vpack.c.bf16 %v6005_v63, %v6002_v59  ;;  %v8847_v4 = vpop.f32.mrb[221].mxu0  ;;  %v8854_v6 = vpop.f32.mrb[227].mxu1  ;;  %v6513_v59 = vld [vmem:[#allocation2 + $0x50] sm:$0xff] }
0x19b7   : > { %v5958_v10 = vpop.f32.mrb[222].mxu0  ;;  %v6515_v6 = vpack.c.bf16 %v6514_v60, %v6513_v59 }
0x19b8   : > { %v6055_v12 = vrot.slane %v6009_v3, 2  ;;  %v8848_v47 = vpop.f32.mrb[223].mxu0  ;;  %8858 = vmatmul.mubr.msk.bf16.vlgmr.msra.gmra.mrb[224].mxu0 %vm293_vm5, %v6009_v3  ;;  %v6100_v16 = vrot.slane %v6009_v3, 4 }
0x19b9   : > { %8868 = vmatpush3.bf16.msra.mxu0 %v9967_v32  ;;  %8869 = vmatprep.mubr.msk.bf16.mxu0 %vm9141_vm3, %v9140_v1 }
0x19ba   : > { %8864 = vmatmul.mubr.msk.bf16.vlgmr.msra.gmra.mrb[228].mxu1 %vm293_vm5, %v6055_v12  ;;  %8879 = vmatprep.subr.bf16.mxu0 %v9140_v1 }
0x19bb   : > { %8874 = vmatpush3.bf16.msra.mxu1 %v6149_v15  ;;  %8875 = vmatprep.mubr.msk.bf16.mxu1 %vm9141_vm3, %v9140_v1 }
0x19bc   : > { %8885 = vmatprep.subr.bf16.mxu1 %v9140_v1 }
0x19c0   : > { %8870 = vmatmul.mubr.msk.bf16.vlgmr.msra.gmra.mrb[228].mxu0 %vm293_vm5, %v6100_v16  ;;  %v6517_v16 = vsel %vm5198_vm7, %v6515_v6, 0 }
0x19c1   : > { %8880 = vmatpush3.bf16.msra.mxu0 %v9997_v44  ;;  %8881 = vmatprep.mubr.msk.bf16.mxu0 %vm9141_vm3, %v9140_v1 }
0x19c2   : > { %8876 = vmatmul.mubr.msk.bf16.vlgmr.msra.gmra.mrb[232].mxu1 %vm5194_vm8, %v9894_v5  ;;  %8891 = vmatprep.subr.bf16.mxu0 %v9140_v1 }
0x19c3   : > { %8886 = vmatpush3.bf16.msra.mxu1 %v9990_v42  ;;  %8887 = vmatprep.mubr.msk.bf16.mxu1 %vm9141_vm3, %v9140_v1 }
0x19c4   : > { %8897 = vmatprep.subr.bf16.mxu1 %v9140_v1 }
0x1a8b   : > { %v6047_v17 = vpop.f32.mrb[224].mxu0 }
0x1a8c   : > { %v6053_v55 = vadd.f32 %v6047_v17, %v5961_v2  ;;  %v8859_v19 = vpop.f32.mrb[225].mxu0 }
0x1a8d   : > { %v6050_v51 = vpop.f32.mrb[226].mxu0  ;;  %v6093_v21 = vpop.f32.mrb[228].mxu1 }
0x1a8e   : > { %v6099_v22 = vadd.f32 %v6093_v21, %v6053_v55  ;;  %v8860_v38 = vpop.f32.mrb[227].mxu0  ;;  %v8865_v23 = vpop.f32.mrb[229].mxu1 }
0x1a8f   : > { %v6096_v9 = vpop.f32.mrb[230].mxu1 }
0x1a90   : > { %v8866_v54 = vpop.f32.mrb[231].mxu1 }
0x1a93   : > { %v6138_v26 = vpop.f32.mrb[228].mxu0 }
0x1a94   : > { %v6144_v27 = vadd.f32 %v6138_v26, %v6099_v22  ;;  %v8871_v28 = vpop.f32.mrb[229].mxu0 }
0x1a95   : > { %v6141_v56 = vpop.f32.mrb[230].mxu0  ;;  %v6185_v29 = vpop.f32.mrb[232].mxu1  ;;  %v6697_v28 = vld [vmem:[#allocation2 + $0x68] sm:$0x3] }
0x1a96   : > { %v8872_v31 = vpop.f32.mrb[231].mxu0  ;;  %v8877_v18 = vpop.f32.mrb[233].mxu1 }
0x1a97   : > { %v6188_v33 = vpop.f32.mrb[234].mxu1 }
0x1a98   : > { %v6192_v34 = vpack.c.bf16 %v6188_v33, %v6185_v29  ;;  %v8878_v20 = vpop.f32.mrb[235].mxu1 }
0x1a9a   : > { %v6238_v40 = vrot.slane %v6192_v34, 2  ;;  %8882 = vmatmul.mubr.msk.bf16.vlgmr.msra.gmra.mrb[232].mxu0 %vm293_vm5, %v6192_v34  ;;  %v6283_v43 = vrot.slane %v6192_v34, 4 }
0x1a9b   : > { %8892 = vmatpush3.bf16.msra.mxu0 %v10007_v11  ;;  %8893 = vmatprep.mubr.msk.bf16.mxu0 %vm9141_vm3, %v9140_v1 }
0x1a9c   : > { %8888 = vmatmul.mubr.msk.bf16.vlgmr.msra.gmra.mrb[236].mxu1 %vm293_vm5, %v6238_v40  ;;  %8903 = vmatprep.subr.bf16.mxu0 %v9140_v1 }
0x1a9d   : > { %8898 = vmatpush3.bf16.msra.mxu1 %v6336_v41  ;;  %8899 = vmatprep.mubr.msk.bf16.mxu1 %vm9141_vm3, %v9140_v1 }
0x1a9e   : > { %8909 = vmatprep.subr.bf16.mxu1 %v9140_v1 }
0x1aa2   : > { %8894 = vmatmul.mubr.msk.bf16.vlgmr.msra.gmra.mrb[236].mxu0 %vm293_vm5, %v6283_v43 }
0x1aa3   : > { %8904 = vmatpush3.bf16.msra.mxu0 %v9915_v39  ;;  %8905 = vmatprep.mubr.msk.bf16.mxu0 %vm9141_vm3, %v9140_v1 }
0x1aa4   : > { %8900 = vmatmul.mubr.msk.bf16.vlgmr.msra.gmra.mrb[240].mxu1 %vm5194_vm8, %v9894_v5  ;;  %8915 = vmatprep.subr.bf16.mxu0 %v9140_v1 }
0x1aa5   : > { %8910 = vmatpush3.bf16.msra.mxu1 %v9907_v35  ;;  %8911 = vmatprep.mubr.msk.bf16.mxu1 %vm9141_vm3, %v9140_v1 }
0x1aa6   : > { %8921 = vmatprep.subr.bf16.mxu1 %v9140_v1 }
0x1b6d   : > { %v6230_v45 = vpop.f32.mrb[232].mxu0 }
0x1b6e   : > { %v6236_v46 = vadd.f32 %v6230_v45, %v6144_v27  ;;  %v8883_v7 = vpop.f32.mrb[233].mxu0  ;;  %v6696_v27 = vld [vmem:[#allocation2 + $0x60] sm:$0xff] }
0x1b6f   : > { %v6233_v48 = vpop.f32.mrb[234].mxu0  ;;  %v6276_v49 = vpop.f32.mrb[236].mxu1  ;;  %v6698_v20 = vpack.c.bf16 %v6697_v28, %v6696_v27 }
0x1b70   : > { %v6282_v50 = vadd.f32 %v6276_v49, %v6236_v46  ;;  %v8884_v52 = vpop.f32.mrb[235].mxu0  ;;  %v8889_v53 = vpop.f32.mrb[237].mxu1 }
0x1b71   : > { %v6279_v24 = vpop.f32.mrb[238].mxu1  ;;  %v6700_v43 = vsel %vm5198_vm7, %v6698_v20, 0 }
0x1b72   : > { %v8890_v57 = vpop.f32.mrb[239].mxu1 }
0x1b75   : > { %v6321_v58 = vpop.f32.mrb[236].mxu0 }
0x1b76   : > { %v6327_v61 = vadd.f32 %v6321_v58, %v6282_v50  ;;  %v8895_v25 = vpop.f32.mrb[237].mxu0 }
0x1b77   : > { %v6324_v62 = vpop.f32.mrb[238].mxu0  ;;  %v6372_v63 = vpop.f32.mrb[240].mxu1 }
0x1b78   : > { %v6328_v2 = vadd.f32 %v10033_v0, %v6327_v61  ;;  %v8896_v3 = vpop.f32.mrb[239].mxu0  ;;  %v8901_v4 = vpop.f32.mrb[241].mxu1 }
0x1b79   : > { %v6375_v8 = vpop.f32.mrb[242].mxu1 }
0x1b7a   : > { %v6329_v10 = vmax.f32 %v6328_v2, 0.0  ;;  %v6379_v12 = vpack.c.bf16 %v6375_v8, %v6372_v63  ;;  %v8902_v47 = vpop.f32.mrb[243].mxu1  ;;  %v6884_v63 = vld [vmem:[#allocation2 + $0x68] sm:$0x3] }
0x1b7c   : > { %7763 = vst.msk [vmem:[%s10040_s26 + $0x4] sm:$0xf] %vm5779_vm10, %v6329_v10  ;;  %v6381_v15 = vrot.slane %v6379_v12, 2  ;;  %8912 = vmatmul.mubr.msk.bf16.vlgmr.msra.gmra.mrb[244].mxu1 %vm293_vm5, %v6379_v12  ;;  %v6468_v17 = vrot.slane %v6379_v12, 4  ;;  %v6885_v10 = vpack.c.bf16 %v6884_v63, %v6696_v27 }
0x1b7d   : > { %8922 = vmatpush3.bf16.msra.mxu1 %v6517_v16  ;;  %8923 = vmatprep.mubr.msk.bf16.mxu1 %vm9141_vm3, %v9140_v1 }
0x1b7e   : > { %8906 = vmatmul.mubr.msk.bf16.vlgmr.msra.gmra.mrb[240].mxu0 %vm293_vm5, %v6381_v15  ;;  %8933 = vmatprep.subr.bf16.mxu1 %v9140_v1  ;;  %v6887_v47 = vsel %vm5198_vm7, %v6885_v10, 0 }
0x1b7f   : > { %8916 = vmatpush3.bf16.msra.mxu0 %v9927_v37  ;;  %8917 = vmatprep.mubr.msk.bf16.mxu0 %vm9141_vm3, %v9140_v1 }
0x1b80   : > { %8927 = vmatprep.subr.bf16.mxu0 %v9140_v1 }
0x1b84   : > { %8924 = vmatmul.mubr.msk.bf16.vlgmr.msra.gmra.mrb[248].mxu1 %vm5194_vm8, %v9894_v5 }
0x1b85   : > { %8934 = vmatpush3.bf16.msra.mxu1 %v9948_v13  ;;  %8935 = vmatprep.mubr.msk.bf16.mxu1 %vm9141_vm3, %v9140_v1 }
0x1b86   : > { %8918 = vmatmul.mubr.msk.bf16.vlgmr.msra.gmra.mrb[244].mxu0 %vm293_vm5, %v6468_v17  ;;  %8945 = vmatprep.subr.bf16.mxu1 %v9140_v1 }
0x1b87   : > { %8928 = vmatpush3.bf16.msra.mxu0 %v9956_v14  ;;  %8929 = vmatprep.mubr.msk.bf16.mxu0 %vm9141_vm3, %v9140_v1 }
0x1b88   : > { %8939 = vmatprep.subr.bf16.mxu0 %v9140_v1 }
0x1c4f   : > { %v6462_v55 = vpop.f32.mrb[244].mxu1 }
0x1c50   : > { %v8913_v19 = vpop.f32.mrb[245].mxu1 }
0x1c51   : > { %v6419_v51 = vpop.f32.mrb[240].mxu0  ;;  %v6465_v21 = vpop.f32.mrb[246].mxu1 }
0x1c52   : > { %v6463_v22 = vadd.f32 %v6462_v55, %v6419_v51  ;;  %v8907_v38 = vpop.f32.mrb[241].mxu0  ;;  %v8914_v23 = vpop.f32.mrb[247].mxu1 }
0x1c53   : > { %v6422_v9 = vpop.f32.mrb[242].mxu0 }
0x1c54   : > { %v8908_v54 = vpop.f32.mrb[243].mxu0 }
0x1c55   : > { %v7064_v54 = vld [vmem:[#allocation2 + $0x70] sm:$0xff] }
0x1c57   : > { %v6553_v26 = vpop.f32.mrb[248].mxu1 }
0x1c58   : > { %v8925_v56 = vpop.f32.mrb[249].mxu1 }
0x1c59   : > { %v6506_v29 = vpop.f32.mrb[244].mxu0  ;;  %v6556_v30 = vpop.f32.mrb[250].mxu1 }
0x1c5a   : > { %v6512_v31 = vadd.f32 %v6506_v29, %v6463_v22  ;;  %v6560_v18 = vpack.c.bf16 %v6556_v30, %v6553_v26  ;;  %v8919_v33 = vpop.f32.mrb[245].mxu0  ;;  %v8926_v34 = vpop.f32.mrb[251].mxu1  ;;  %v7065_v26 = vld [vmem:[#allocation2 + $0x78] sm:$0x3] }
0x1c5b   : > { %v6509_v36 = vpop.f32.mrb[246].mxu0 }
0x1c5c   : > { %v6606_v40 = vrot.slane %v6560_v18, 2  ;;  %v8920_v41 = vpop.f32.mrb[247].mxu0  ;;  %8930 = vmatmul.mubr.msk.bf16.vlgmr.msra.gmra.mrb[248].mxu0 %vm293_vm5, %v6560_v18  ;;  %v6651_v45 = vrot.slane %v6560_v18, 4  ;;  %v7066_v18 = vpack.c.bf16 %v7065_v26, %v7064_v54 }
0x1c5d   : > { %8940 = vmatpush3.bf16.msra.mxu0 %v9967_v32  ;;  %8941 = vmatprep.mubr.msk.bf16.mxu0 %vm9141_vm3, %v9140_v1 }
0x1c5e   : > { %8936 = vmatmul.mubr.msk.bf16.vlgmr.msra.gmra.mrb[252].mxu1 %vm293_vm5, %v6606_v40  ;;  %8951 = vmatprep.subr.bf16.mxu0 %v9140_v1  ;;  %v7068_v41 = vsel %vm5198_vm7, %v7066_v18, 0 }
0x1c5f   : > { %8946 = vmatpush3.bf16.msra.mxu1 %v6700_v43  ;;  %8947 = vmatprep.mubr.msk.bf16.mxu1 %vm9141_vm3, %v9140_v1 }
0x1c60   : > { %8957 = vmatprep.subr.bf16.mxu1 %v9140_v1 }
0x1c64   : > { %8942 = vmatmul.mubr.msk.bf16.vlgmr.msra.gmra.mrb[252].mxu0 %vm293_vm5, %v6651_v45 }
0x1c65   : > { %8952 = vmatpush3.bf16.msra.mxu0 %v9997_v44  ;;  %8953 = vmatprep.mubr.msk.bf16.mxu0 %vm9141_vm3, %v9140_v1 }
0x1c66   : > { %8948 = vmatmul.mubr.msk.bf16.vlgmr.msra.gmra.mrb[0].mxu1 %vm5194_vm8, %v9894_v5  ;;  %8963 = vmatprep.subr.bf16.mxu0 %v9140_v1 }
0x1c67   : > { %8958 = vmatpush3.bf16.msra.mxu1 %v9990_v42  ;;  %8959 = vmatprep.mubr.msk.bf16.mxu1 %vm9141_vm3, %v9140_v1 }
0x1c68   : > { %8969 = vmatprep.subr.bf16.mxu1 %v9140_v1 }
0x1d2f   : > { %v6598_v46 = vpop.f32.mrb[248].mxu0 }
0x1d30   : > { %v6604_v7 = vadd.f32 %v6598_v46, %v6512_v31  ;;  %v8931_v48 = vpop.f32.mrb[249].mxu0 }
0x1d31   : > { %v6601_v49 = vpop.f32.mrb[250].mxu0  ;;  %v6644_v50 = vpop.f32.mrb[252].mxu1 }
0x1d32   : > { %v6650_v52 = vadd.f32 %v6644_v50, %v6604_v7  ;;  %v8932_v53 = vpop.f32.mrb[251].mxu0  ;;  %v8937_v24 = vpop.f32.mrb[253].mxu1 }
0x1d33   : > { %v6647_v57 = vpop.f32.mrb[254].mxu1  ;;  %v7247_v24 = vld [vmem:[#allocation2 + $0x80] sm:$0xff] }
0x1d34   : > { %v8938_v58 = vpop.f32.mrb[255].mxu1  ;;  %v7248_v57 = vld [vmem:[#allocation2 + $0x88] sm:$0x3] }
0x1d35   : > { %v7249_v63 = vpack.c.bf16 %v7248_v57, %v7247_v24 }
0x1d37   : > { %v6689_v59 = vpop.f32.mrb[252].mxu0 }
0x1d38   : > { %v6695_v60 = vadd.f32 %v6689_v59, %v6650_v52  ;;  %v8943_v61 = vpop.f32.mrb[253].mxu0 }
0x1d39   : > { %v6692_v25 = vpop.f32.mrb[254].mxu0  ;;  %v6736_v62 = vpop.f32.mrb[0].mxu1 }
0x1d3a   : > { %v8944_v2 = vpop.f32.mrb[255].mxu0  ;;  %v8949_v3 = vpop.f32.mrb[1].mxu1 }
0x1d3b   : > { %v6739_v4 = vpop.f32.mrb[2].mxu1 }
0x1d3c   : > { %v6743_v6 = vpack.c.bf16 %v6739_v4, %v6736_v62  ;;  %v8950_v8 = vpop.f32.mrb[3].mxu1 }
0x1d3e   : > { %v6789_v12 = vrot.slane %v6743_v6, 2  ;;  %8954 = vmatmul.mubr.msk.bf16.vlgmr.msra.gmra.mrb[0].mxu0 %vm293_vm5, %v6743_v6  ;;  %v6834_v15 = vrot.slane %v6743_v6, 4  ;;  %v7251_v6 = vsel %vm5198_vm7, %v7249_v63, 0 }
0x1d3f   : > { %8964 = vmatpush3.bf16.msra.mxu0 %v10007_v11  ;;  %8965 = vmatprep.mubr.msk.bf16.mxu0 %vm9141_vm3, %v9140_v1 }
0x1d40   : > { %8960 = vmatmul.mubr.msk.bf16.vlgmr.msra.gmra.mrb[4].mxu1 %vm293_vm5, %v6789_v12  ;;  %8975 = vmatprep.subr.bf16.mxu0 %v9140_v1 }
0x1d41   : > { %8970 = vmatpush3.bf16.msra.mxu1 %v6887_v47  ;;  %8971 = vmatprep.mubr.msk.bf16.mxu1 %vm9141_vm3, %v9140_v1 }
0x1d42   : > { %8981 = vmatprep.subr.bf16.mxu1 %v9140_v1 }
0x1d46   : > { %8966 = vmatmul.mubr.msk.bf16.vlgmr.msra.gmra.mrb[4].mxu0 %vm293_vm5, %v6834_v15 }
0x1d47   : > { %8976 = vmatpush3.bf16.msra.mxu0 %v9915_v39  ;;  %8977 = vmatprep.mubr.msk.bf16.mxu0 %vm9141_vm3, %v9140_v1 }
0x1d48   : > { %8972 = vmatmul.mubr.msk.bf16.vlgmr.msra.gmra.mrb[8].mxu1 %vm5194_vm8, %v9894_v5  ;;  %8987 = vmatprep.subr.bf16.mxu0 %v9140_v1 }
0x1d49   : > { %8982 = vmatpush3.bf16.msra.mxu1 %v9907_v35  ;;  %8983 = vmatprep.mubr.msk.bf16.mxu1 %vm9141_vm3, %v9140_v1 }
0x1d4a   : > { %8993 = vmatprep.subr.bf16.mxu1 %v9140_v1 }
0x1e11   : > { %v6781_v16 = vpop.f32.mrb[0].mxu0 }
0x1e12   : > { %v6787_v17 = vadd.f32 %v6781_v16, %v6695_v60  ;;  %v8955_v55 = vpop.f32.mrb[1].mxu0 }
0x1e13   : > { %v6784_v19 = vpop.f32.mrb[2].mxu0  ;;  %v6827_v39 = vpop.f32.mrb[4].mxu1 }
0x1e14   : > { %v6833_v51 = vadd.f32 %v6827_v39, %v6787_v17  ;;  %v8956_v21 = vpop.f32.mrb[3].mxu0  ;;  %v8961_v22 = vpop.f32.mrb[5].mxu1 }
0x1e15   : > { %v6830_v38 = vpop.f32.mrb[6].mxu1 }
0x1e16   : > { %v8962_v23 = vpop.f32.mrb[7].mxu1 }
0x1e19   : > { %v6872_v9 = vpop.f32.mrb[4].mxu0 }
0x1e1a   : > { %v6878_v35 = vadd.f32 %v6872_v9, %v6833_v51  ;;  %v8967_v27 = vpop.f32.mrb[5].mxu0 }
0x1e1b   : > { %v6875_v28 = vpop.f32.mrb[6].mxu0  ;;  %v6923_v56 = vpop.f32.mrb[8].mxu1 }
0x1e1c   : > { %v6879_v29 = vadd.f32 %v10033_v0, %v6878_v35  ;;  %v8968_v30 = vpop.f32.mrb[7].mxu0  ;;  %v8973_v31 = vpop.f32.mrb[9].mxu1 }
0x1e1d   : > { %v6926_v33 = vpop.f32.mrb[10].mxu1 }
0x1e1e   : > { %v6880_v34 = vmax.f32 %v6879_v29, 0.0  ;;  %v6930_v20 = vpack.c.bf16 %v6926_v33, %v6923_v56  ;;  %v8974_v36 = vpop.f32.mrb[11].mxu1 }
0x1e20   : > { %7776 = vst.msk [vmem:[%s10040_s26 + $0x8] sm:$0xf] %vm5779_vm10, %v6880_v34  ;;  %v6932_v40 = vrot.slane %v6930_v20, 2  ;;  %8984 = vmatmul.mubr.msk.bf16.vlgmr.msra.gmra.mrb[12].mxu1 %vm293_vm5, %v6930_v20  ;;  %v7019_v43 = vrot.slane %v6930_v20, 4 }
0x1e21   : > { %8994 = vmatpush3.bf16.msra.mxu1 %v7068_v41  ;;  %8995 = vmatprep.mubr.msk.bf16.mxu1 %vm9141_vm3, %v9140_v1 }
0x1e22   : > { %8978 = vmatmul.mubr.msk.bf16.vlgmr.msra.gmra.mrb[8].mxu0 %vm293_vm5, %v6932_v40  ;;  %9005 = vmatprep.subr.bf16.mxu1 %v9140_v1 }
0x1e23   : > { %8988 = vmatpush3.bf16.msra.mxu0 %v9927_v37  ;;  %8989 = vmatprep.mubr.msk.bf16.mxu0 %vm9141_vm3, %v9140_v1 }
0x1e24   : > { %8999 = vmatprep.subr.bf16.mxu0 %v9140_v1 }
0x1e28   : > { %8996 = vmatmul.mubr.msk.bf16.vlgmr.msra.gmra.mrb[16].mxu1 %vm5194_vm8, %v9894_v5 }
0x1e29   : > { %9006 = vmatpush3.bf16.msra.mxu1 %v9948_v13  ;;  %9007 = vmatprep.mubr.msk.bf16.mxu1 %vm9141_vm3, %v9140_v1 }
0x1e2a   : > { %8990 = vmatmul.mubr.msk.bf16.vlgmr.msra.gmra.mrb[12].mxu0 %vm293_vm5, %v7019_v43  ;;  %9017 = vmatprep.subr.bf16.mxu1 %v9140_v1 }
0x1e2b   : > { %9000 = vmatpush3.bf16.msra.mxu0 %v9956_v14  ;;  %9001 = vmatprep.mubr.msk.bf16.mxu0 %vm9141_vm3, %v9140_v1 }
0x1e2c   : > { %9011 = vmatprep.subr.bf16.mxu0 %v9140_v1 }
0x1ef3   : > { %v7013_v37 = vpop.f32.mrb[12].mxu1 }
0x1ef4   : > { %v8985_v45 = vpop.f32.mrb[13].mxu1 }
0x1ef5   : > { %v6970_v46 = vpop.f32.mrb[8].mxu0  ;;  %v7016_v7 = vpop.f32.mrb[14].mxu1 }
0x1ef6   : > { %v7014_v48 = vadd.f32 %v7013_v37, %v6970_v46  ;;  %v8979_v13 = vpop.f32.mrb[9].mxu0  ;;  %v8986_v49 = vpop.f32.mrb[15].mxu1 }
0x1ef7   : > { %v6973_v50 = vpop.f32.mrb[10].mxu0 }
0x1ef8   : > { %v8980_v52 = vpop.f32.mrb[11].mxu0 }
0x1efb   : > { %v7104_v53 = vpop.f32.mrb[16].mxu1 }
0x1efc   : > { %v8997_v58 = vpop.f32.mrb[17].mxu1 }
0x1efd   : > { %v7057_v59 = vpop.f32.mrb[12].mxu0  ;;  %v7107_v14 = vpop.f32.mrb[18].mxu1 }
0x1efe   : > { %v7063_v60 = vadd.f32 %v7057_v59, %v7014_v48  ;;  %v7111_v61 = vpack.c.bf16 %v7107_v14, %v7104_v53  ;;  %v8991_v25 = vpop.f32.mrb[13].mxu0  ;;  %v8998_v62 = vpop.f32.mrb[19].mxu1 }
0x1eff   : > { %v7060_v2 = vpop.f32.mrb[14].mxu0 }
0x1f00   : > { %v7157_v3 = vrot.slane %v7111_v61, 2  ;;  %v8992_v4 = vpop.f32.mrb[15].mxu0  ;;  %9002 = vmatmul.mubr.msk.bf16.vlgmr.msra.gmra.mrb[16].mxu0 %vm293_vm5, %v7111_v61  ;;  %v7202_v8 = vrot.slane %v7111_v61, 4 }
0x1f01   : > { %9012 = vmatpush3.bf16.msra.mxu0 %v9967_v32  ;;  %9013 = vmatprep.mubr.msk.bf16.mxu0 %vm9141_vm3, %v9140_v1 }
0x1f02   : > { %9008 = vmatmul.mubr.msk.bf16.vlgmr.msra.gmra.mrb[20].mxu1 %vm293_vm5, %v7157_v3  ;;  %9023 = vmatprep.subr.bf16.mxu0 %v9140_v1 }
0x1f03   : > { %9018 = vmatpush3.bf16.msra.mxu1 %v7251_v6  ;;  %9019 = vmatprep.mubr.msk.bf16.mxu1 %vm9141_vm3, %v9140_v1 }
0x1f04   : > { %9029 = vmatprep.subr.bf16.mxu1 %v9140_v1 }
0x1f08   : > { %9014 = vmatmul.mubr.msk.bf16.vlgmr.msra.gmra.mrb[20].mxu0 %vm293_vm5, %v7202_v8 }
0x1f09   : > { %9024 = vmatpush3.bf16.msra.mxu0 %v9997_v44  ;;  %9025 = vmatprep.mubr.msk.bf16.mxu0 %vm9141_vm3, %v9140_v1 }
0x1f0a   : > { %9020 = vmatmul.mubr.msk.bf16.vlgmr.msra.gmra.mrb[24].mxu1 %vm5194_vm8, %v9894_v5  ;;  %9035 = vmatprep.subr.bf16.mxu0 %v9140_v1 }
0x1f0b   : > { %9030 = vmatpush3.bf16.msra.mxu1 %v9990_v42  ;;  %9031 = vmatprep.mubr.msk.bf16.mxu1 %vm9141_vm3, %v9140_v1 }
0x1fd3   : > { %v7149_v32 = vpop.f32.mrb[16].mxu0 }
0x1fd4   : > { %v7155_v10 = vadd.f32 %v7149_v32, %v7063_v60  ;;  %v9003_v12 = vpop.f32.mrb[17].mxu0 }
0x1fd5   : > { %v7152_v47 = vpop.f32.mrb[18].mxu0  ;;  %v7195_v15 = vpop.f32.mrb[20].mxu1 }
0x1fd6   : > { %v7201_v16 = vadd.f32 %v7195_v15, %v7155_v10  ;;  %v9004_v44 = vpop.f32.mrb[19].mxu0  ;;  %v9009_v17 = vpop.f32.mrb[21].mxu1 }
0x1fd7   : > { %v7198_v55 = vpop.f32.mrb[22].mxu1 }
0x1fd8   : > { %v9010_v19 = vpop.f32.mrb[23].mxu1 }
0x1fdb   : > { %v7240_v39 = vpop.f32.mrb[20].mxu0 }
0x1fdc   : > { %v7246_v51 = vadd.f32 %v7240_v39, %v7201_v16  ;;  %v9015_v5 = vpop.f32.mrb[21].mxu0 }
0x1fdd   : > { %v7243_v21 = vpop.f32.mrb[22].mxu0  ;;  %v7287_v22 = vpop.f32.mrb[24].mxu1 }
0x1fde   : > { %v9016_v38 = vpop.f32.mrb[23].mxu0  ;;  %v9021_v42 = vpop.f32.mrb[25].mxu1 }
0x1fdf   : > { %v7290_v23 = vpop.f32.mrb[26].mxu1 }
0x1fe0   : > { %v7294_v9 = vpack.c.bf16 %v7290_v23, %v7287_v22  ;;  %v9022_v54 = vpop.f32.mrb[27].mxu1 }
0x1fe2   : > { %v7340_v26 = vrot.slane %v7294_v9, 2  ;;  %9026 = vmatmul.mubr.msk.bf16.vlgmr.msra.gmra.mrb[24].mxu0 %vm293_vm5, %v7294_v9  ;;  %v7385_v35 = vrot.slane %v7294_v9, 4 }
0x1fe3   : > { %9036 = vmatpush3.bf16.msra.mxu0 %v10007_v11  ;;  %9037 = vmatprep.mubr.msk.bf16.mxu0 %vm9141_vm3, %v9140_v1 }
0x1fe4   : > { %9032 = vmatmul.mubr.msk.bf16.vlgmr.msra.gmra.mrb[28].mxu1 %vm293_vm5, %v7340_v26 }
0x1fea   : > { %9038 = vmatmul.mubr.msk.bf16.vlgmr.msra.gmra.mrb[28].mxu0 %vm293_vm5, %v7385_v35 }
0x20b5   : > { %v7332_v27 = vpop.f32.mrb[24].mxu0 }
0x20b6   : > { %v7338_v28 = vadd.f32 %v7332_v27, %v7246_v51  ;;  %v9027_v56 = vpop.f32.mrb[25].mxu0 }
0x20b7   : > { %v7335_v29 = vpop.f32.mrb[26].mxu0  ;;  %v7378_v30 = vpop.f32.mrb[28].mxu1 }
0x20b8   : > { %v7384_v31 = vadd.f32 %v7378_v30, %v7338_v28  ;;  %v9028_v18 = vpop.f32.mrb[27].mxu0  ;;  %v9033_v33 = vpop.f32.mrb[29].mxu1 }
0x20b9   : > { %v7381_v34 = vpop.f32.mrb[30].mxu1 }
0x20ba   : > { %v9034_v20 = vpop.f32.mrb[31].mxu1 }
0x20bd   : > { %v7423_v11 = vpop.f32.mrb[28].mxu0 }
0x20be   : > { %v7429_v36 = vadd.f32 %v7423_v11, %v7384_v31  ;;  %v9039_v40 = vpop.f32.mrb[29].mxu0 }
0x20bf   : > { %v7426_v1 = vpop.f32.mrb[30].mxu0 }
0x20c0   : > { %v7430_v41 = vadd.f32 %v10033_v0, %v7429_v36  ;;  %v9040_v43 = vpop.f32.mrb[31].mxu0 }
0x20c2   : > { %v7431_v37 = vmax.f32 %v7430_v41, 0.0 }
0x20c4   : > { %7789 = vst.msk [vmem:[%s10040_s26 + $0xc] sm:$0xf] %vm5779_vm10, %v7431_v37 }
0x20c5 PF: > { %s17_s24 = sadd.s32 1, %s9138_s24  }
0x20c6   : > { %p14_p4 = scmp.ge.s32.totalorder %s17_s24, 4  }
0x20c8   :  { %16 = sbr.rel (!%p14_p4) target bundleno = 1 (0x1), region = 105 }

</bundles_post_ra>
